<compile_context>
chip_gen: v6e
topology: v6e:2x2x1
jax: 0.10.0
libtpu: 0.0.40
codegen_flags: <defaults>
</compile_context>

<pallas_src>
import functools

import jax
import jax.numpy as jnp
from jax import lax
from jax.experimental import pallas as pl
from jax.experimental.pallas import tpu as pltpu


# ----------------------------------------------------------------------------
# Pallas kernels
# ----------------------------------------------------------------------------
def _conv4x4s2_kernel(*refs, H2e, OH, G, C, act, has_bias, want_stats):
    """Implicit-GEMM 4x4/stride-2/pad-1 conv for one (batch, ow-group) block.

    Refs (inputs then outputs):
      x_ref   (1, 1, 4*H2e, (G+1)*C)  bf16  space-to-depth'd padded input
      w_ref   (16, G*C, G*OC)         bf16  per-tap block-diagonal weights
      [b_ref  (1, G*OC)               f32]  bias tiled over the ow-group
      o_ref   (1, 1, OH, G*OC)        bf16  lane-dense output
      [st_ref (1, 1, 2, G*OC)         f32]  per-block [sum; sum of squares]
    """
    i = 0
    x_ref = refs[i]; i += 1
    w_ref = refs[i]; i += 1
    b_ref = None
    if has_bias:
        b_ref = refs[i]; i += 1
    o_ref = refs[i]; i += 1
    st_ref = refs[i] if want_stats else None

    gk = G * C
    acc = None
    for t in range(16):                      # static tap loop: 16 bf16 MXU dots
        ki, kj = t // 4, t % 4
        qi, ri = ki // 2, ki % 2             # row shift / row phase
        qj, rj = kj // 2, kj % 2             # col shift / col phase
        p = ri * 2 + rj
        # Contiguous per-phase slab; sublane start p*H2e is even (bf16 pair
        # aligned), lane start qj*C handled by a cheap lane offset.
        slab = x_ref[0, 0, pl.ds(p * H2e, H2e), pl.ds(qj * C, gk)]
        r = jnp.dot(slab, w_ref[t], preferred_element_type=jnp.float32)
        r = r[qi:qi + OH, :]                 # f32 sublane shift selects the tap rows
        acc = r if acc is None else acc + r

    if has_bias:
        acc = acc + b_ref[...]               # (1, G*OC) broadcast, f32
    if want_stats:                           # BN batch stats fused into epilogue
        st_ref[0, 0, pl.ds(0, 1), :] = jnp.sum(acc, axis=0, keepdims=True)
        st_ref[0, 0, pl.ds(1, 1), :] = jnp.sum(acc * acc, axis=0, keepdims=True)
    if act == "leakyrelu":
        acc = jnp.where(acc >= 0, acc, 0.2 * acc)
    o_ref[0, 0] = acc.astype(o_ref.dtype)


def _bn_leakyrelu_kernel(x_ref, scale_ref, shift_ref, o_ref):
    """y = LeakyReLU_0.2(x * scale + shift) -- f32 math, bf16 in/out."""
    x = x_ref[0, 0].astype(jnp.float32)
    y = x * scale_ref[...] + shift_ref[...]
    o_ref[0, 0] = jnp.where(y >= 0, y, 0.2 * y).astype(o_ref.dtype)


# ----------------------------------------------------------------------------
# Plain-JAX staging glue (pure data rearrangement, ~1x bytes)
# ----------------------------------------------------------------------------
def _pick_group(OW, OC):
    """How many output columns to pack into lanes so stores are 128-256 wide."""
    if OC >= 128:
        return 1
    g = 1
    for cand in range(1, OW + 1):
        if OW % cand == 0 and cand * OC <= 256:
            g = cand
    return g


def _prep_input(x_nhwc, G):
    """Pad + space-to-depth: (B,H,W,C) -> (B, OW//G, 4*H2e, (G+1)*C) bf16."""
    B, H, W, C = x_nhwc.shape
    OH, OW = H // 2, W // 2
    H2, W2 = OH + 1, OW + 1
    H2e = H2 + (H2 % 2)                      # even slab height -> aligned slices
    xp = jnp.pad(x_nhwc.astype(jnp.bfloat16), ((0, 0), (1, 1), (1, 1), (0, 0)))
    x_ph = xp.reshape(B, H2, 2, W2, 2, C).transpose(0, 2, 4, 1, 3, 5)
    x_ph = x_ph.reshape(B, 4, H2, W2, C)     # phase p = ri*2 + rj
    if H2e != H2:
        x_ph = jnp.pad(x_ph, ((0, 0), (0, 0), (0, H2e - H2), (0, 0), (0, 0)))
    NG = OW // G
    cols = jnp.arange(NG)[:, None] * G + jnp.arange(G + 1)[None, :]   # (NG, G+1)
    xg = x_ph[:, :, :, cols, :]                                       # (B,4,H2e,NG,G+1,C)
    xg = xg.transpose(0, 3, 1, 2, 4, 5).reshape(B, NG, 4 * H2e, (G + 1) * C)
    return xg, H2e


def _prep_weight(w_hwio, G):
    """(4,4,C,OC) -> (16, G*C, G*OC) bf16 block-diagonal per tap."""
    KH, KW, C, OC = w_hwio.shape
    w_t = w_hwio.reshape(KH * KW, C, OC)
    eye = jnp.eye(G, dtype=w_t.dtype)
    wb = eye[None, :, None, :, None] * w_t[:, None, :, None, :]       # (16,G,C,G,OC)
    return wb.reshape(KH * KW, G * C, G * OC).astype(jnp.bfloat16)


def packed_to_nhwc(y_packed, meta):
    OH, OW, G, OC = meta
    B, NG, _, _ = y_packed.shape
    return (y_packed.reshape(B, NG, OH, G, OC)
            .transpose(0, 2, 1, 3, 4)
            .reshape(B, OH, OW, OC))


# ----------------------------------------------------------------------------
# Kernel wrappers
# ----------------------------------------------------------------------------
def conv4x4_s2(x_nhwc, w_hwio, bias=None, act="none", want_stats=False):
    """4x4 / stride-2 / pad-1 conv (NHWC in, HWIO weights) as one Pallas call.

    Returns (y_packed (B, NG, OH, G*OC) bf16, stats_or_None, meta).
    """
    KH, KW, C, OC = w_hwio.shape
    assert (KH, KW) == (4, 4)
    B, H, W, Cin = x_nhwc.shape
    assert Cin == C and H % 2 == 0 and W % 2 == 0
    OH, OW = H // 2, W // 2
    G = _pick_group(OW, OC)
    NG = OW // G
    GK, GN = G * C, G * OC

    xg, H2e = _prep_input(x_nhwc, G)
    wb = _prep_weight(w_hwio, G)
    R, L = 4 * H2e, (G + 1) * C

    kernel = functools.partial(
        _conv4x4s2_kernel, H2e=H2e, OH=OH, G=G, C=C, act=act,
        has_bias=bias is not None, want_stats=want_stats)

    in_specs = [
        pl.BlockSpec((1, 1, R, L), lambda b, g: (b, g, 0, 0)),
        pl.BlockSpec((16, GK, GN), lambda b, g: (0, 0, 0)),
    ]
    args = [xg, wb]
    if bias is not None:
        in_specs.append(pl.BlockSpec((1, GN), lambda b, g: (0, 0)))
        args.append(jnp.tile(bias.astype(jnp.float32), G).reshape(1, GN))

    out_shape = [jax.ShapeDtypeStruct((B, NG, OH, GN), jnp.bfloat16)]
    out_specs = [pl.BlockSpec((1, 1, OH, GN), lambda b, g: (b, g, 0, 0))]
    if want_stats:
        out_shape.append(jax.ShapeDtypeStruct((B, NG, 2, GN), jnp.float32))
        out_specs.append(pl.BlockSpec((1, 1, 2, GN), lambda b, g: (b, g, 0, 0)))

    out = pl.pallas_call(
        kernel,
        out_shape=tuple(out_shape),
        grid=(B, NG),
        in_specs=in_specs,
        out_specs=tuple(out_specs),
        compiler_params=pltpu.CompilerParams(
            dimension_semantics=("parallel", "parallel")),
    )(*args)

    meta = (OH, OW, G, OC)
    if want_stats:
        return out[0], out[1], meta
    return out[0], None, meta


def batchnorm_leakyrelu(y_packed, stats, gamma, beta, meta):
    """Training-mode BatchNorm (batch stats from conv epilogue) + LeakyReLU(0.2)."""
    OH, OW, G, OC = meta
    B, NG, _, GN = y_packed.shape
    s = stats.reshape(B, NG, 2, G, OC).sum(axis=(0, 1, 3))            # (2, OC)
    n = B * OH * OW
    mean = s[0] / n
    var = s[1] / n - mean * mean                                       # biased (torch)
    inv = lax.rsqrt(var + 1e-5)
    scale = gamma * inv
    shift = beta - mean * scale
    scale_row = jnp.tile(scale, G).reshape(1, GN).astype(jnp.float32)
    shift_row = jnp.tile(shift, G).reshape(1, GN).astype(jnp.float32)
    return pl.pallas_call(
        _bn_leakyrelu_kernel,
        out_shape=jax.ShapeDtypeStruct(y_packed.shape, jnp.bfloat16),
        grid=(B, NG),
        in_specs=[
            pl.BlockSpec((1, 1, OH, GN), lambda b, g: (b, g, 0, 0)),
            pl.BlockSpec((1, GN), lambda b, g: (0, 0)),
            pl.BlockSpec((1, GN), lambda b, g: (0, 0)),
        ],
        out_specs=pl.BlockSpec((1, 1, OH, GN), lambda b, g: (b, g, 0, 0)),
        compiler_params=pltpu.CompilerParams(
            dimension_semantics=("parallel", "parallel")),
    )(y_packed, scale_row, shift_row)


# ----------------------------------------------------------------------------
# Discriminator parameters & forward
# ----------------------------------------------------------------------------
def init_discriminator_params(key, y_dim, img_dim):
    D = img_dim
    ks = list(jax.random.split(key, 13))

    def conv_w(k, kh, kw, ic, oc):
        return jax.random.normal(k, (kh, kw, ic, oc), jnp.float32) * 0.05

    return {
        # imgconv: Conv2d(3, D, 4, 2, 1) + LeakyReLU(0.2)
        "img_w": conv_w(ks[0], 4, 4, 3, D),
        "img_b": jax.random.normal(ks[1], (D,), jnp.float32) * 0.05,
        # labelconv: Conv2d(y_dim, D, 4, 2, 1) + LeakyReLU(0.2)
        "lab_w": conv_w(ks[2], 4, 4, y_dim, D),
        "lab_b": jax.random.normal(ks[3], (D,), jnp.float32) * 0.05,
        # CNN: Conv2d(2D, 4D, 4, 2, 1) + BN(4D) + LeakyReLU(0.2)
        "c1_w": conv_w(ks[4], 4, 4, 2 * D, 4 * D),
        "c1_b": jax.random.normal(ks[5], (4 * D,), jnp.float32) * 0.05,  # cancelled by BN
        "bn1_g": 1.0 + 0.1 * jax.random.normal(ks[6], (4 * D,), jnp.float32),
        "bn1_b": 0.1 * jax.random.normal(ks[7], (4 * D,), jnp.float32),
        # Conv2d(4D, 8D, 4, 2, 1) + BN(8D) + LeakyReLU(0.2)
        "c2_w": conv_w(ks[8], 4, 4, 4 * D, 8 * D),
        "c2_b": jax.random.normal(ks[9], (8 * D,), jnp.float32) * 0.05,  # cancelled by BN
        "bn2_g": 1.0 + 0.1 * jax.random.normal(ks[10], (8 * D,), jnp.float32),
        "bn2_b": 0.1 * jax.random.normal(ks[11], (8 * D,), jnp.float32),
        # final Conv2d(8D, 1, 4, 1, 0) + Sigmoid
        "c3_w": conv_w(ks[12], 4, 4, 8 * D, 1),
        "c3_b": jnp.zeros((1,), jnp.float32),
    }


@jax.jit
def discriminator_forward(params, z_nchw, c_nchw):
    B = z_nchw.shape[0]
    D = params["img_b"].shape[0]
    y_dim = params["lab_w"].shape[2]

    # PyTorch NCHW -> NHWC (channels on the lane dim).
    z = jnp.transpose(z_nchw, (0, 2, 3, 1)).astype(jnp.float32)
    c = jnp.transpose(c_nchw, (0, 2, 3, 1)).astype(jnp.float32)
    x0 = jnp.concatenate([z, c], axis=-1)                 # (B, H, W, 3 + y_dim)

    # imgconv & labelconv fused into ONE conv with block-diagonal weights, so
    # torch.cat([imgout, labelout], 1) never touches HBM.
    w_img, w_lab = params["img_w"], params["lab_w"]
    w_cat = jnp.concatenate([
        jnp.concatenate([w_img, jnp.zeros((4, 4, 3, D), w_img.dtype)], axis=3),
        jnp.concatenate([jnp.zeros((4, 4, y_dim, D), w_lab.dtype), w_lab], axis=3),
    ], axis=2)                                            # (4, 4, 3 + y_dim, 2D)
    b_cat = jnp.concatenate([params["img_b"], params["lab_b"]])

    y1, _, m1 = conv4x4_s2(x0, w_cat, bias=b_cat, act="leakyrelu")
    h1 = packed_to_nhwc(y1, m1)                           # (B, H/2, W/2, 2D) bf16

    # CNN block 1: conv (bias dropped: exactly cancelled by BN mean subtraction)
    #              -> BatchNorm (batch stats from conv epilogue) -> LeakyReLU(0.2)
    y2, st2, m2 = conv4x4_s2(h1, params["c1_w"], want_stats=True)
    h2 = packed_to_nhwc(
        batchnorm_leakyrelu(y2, st2, params["bn1_g"], params["bn1_b"], m2), m2)

    # CNN block 2
    y3, st3, m3 = conv4x4_s2(h2, params["c2_w"], want_stats=True)
    h3 = packed_to_nhwc(
        batchnorm_leakyrelu(y3, st3, params["bn2_g"], params["bn2_b"], m3), m3)

    # Final Conv2d(8D, 1, k=4, s=1, p=0) + Sigmoid: output is M=B x N=1, so a
    # Pallas call would be pure launch + masked-store overhead (perf review).
    w3 = params["c3_w"].reshape(-1, 1).astype(jnp.float32)
    logits = h3.reshape(B, -1).astype(jnp.float32) @ w3 + params["c3_b"]
    return jax.nn.sigmoid(logits).reshape(B, 1, 1, 1)


# ----------------------------------------------------------------------------
# Pure-JAX f32 reference (torch semantics) for the correctness check
# ----------------------------------------------------------------------------
@jax.jit
def _reference_forward(params, z_nchw, c_nchw):
    z = jnp.transpose(z_nchw, (0, 2, 3, 1)).astype(jnp.float32)
    c = jnp.transpose(c_nchw, (0, 2, 3, 1)).astype(jnp.float32)

    def conv(x, w, b, stride, pad):
        y = lax.conv_general_dilated(
            x, w, (stride, stride), ((pad, pad), (pad, pad)),
            dimension_numbers=("NHWC", "HWIO", "NHWC"))
        return y + b.reshape(1, 1, 1, -1)

    def lrelu(x):
        return jnp.where(x >= 0, x, 0.2 * x)

    def bn(x, g, b):
        m = jnp.mean(x, axis=(0, 1, 2))
        v = jnp.var(x, axis=(0, 1, 2))
        return (x - m) * lax.rsqrt(v + 1e-5) * g + b

    img = lrelu(conv(z, params["img_w"], params["img_b"], 2, 1))
    lab = lrelu(conv(c, params["lab_w"], params["lab_b"], 2, 1))
    x = jnp.concatenate([img, lab], axis=-1)
    h = lrelu(bn(conv(x, params["c1_w"], params["c1_b"], 2, 1),
                 params["bn1_g"], params["bn1_b"]))
    h = lrelu(bn(conv(h, params["c2_w"], params["c2_b"], 2, 1),
                 params["bn2_g"], params["bn2_b"]))
    out = jax.nn.sigmoid(conv(h, params["c3_w"], params["c3_b"], 1, 0))
    return jnp.transpose(out, (0, 3, 1, 2))


if __name__ == "__main__":
    B, Y_DIM, IMG_DIM, HW = 2, 4, 8, 32   # 32x32 inputs -> 4x4 -> 1x1 output
    key = jax.random.PRNGKey(0)
    kp, kz, kc = jax.random.split(key, 3)

    params = init_discriminator_params(kp, Y_DIM, IMG_DIM)
    z = jax.random.normal(kz, (B, 3, HW, HW), jnp.float32)       # image, NCHW
    c = jax.random.normal(kc, (B, Y_DIM, HW, HW), jnp.float32)   # label map, NCHW

    out = jax.block_until_ready(discriminator_forward(params, z, c))
    assert out.shape == (B, 1, 1, 1), out.shape
    assert bool(jnp.all((out >= 0.0) & (out <= 1.0)))            # sigmoid range

    ref = jax.block_until_ready(_reference_forward(params, z, c))
    max_err = float(jnp.max(jnp.abs(out - ref)))
    # bf16 MXU path vs f32 reference: loose bound to catch gross indexing bugs.
    assert max_err < 0.15, f"mismatch vs reference: {max_err}"
    print("KERNEL_OK")
</pallas_src>

<mosaic_0001>
module attributes {stable_mosaic.version = 11 : i64} {
  func.func @_conv4x4s2_kernel(%arg0: i32, %arg1: i32, %arg2: memref<1x1x72x119xbf16, #tpu.memory_space<vmem>>, %arg3: memref<16x112x256xbf16, #tpu.memory_space<vmem>>, %arg4: memref<1x256xf32, #tpu.memory_space<vmem>>, %arg5: memref<1x1x16x256xbf16, #tpu.memory_space<vmem>>) attributes {dimension_semantics = [#tpu.dimension_semantics<parallel>, #tpu.dimension_semantics<parallel>], iteration_bounds = array<i64: 2, 1>, scalar_prefetch = 0 : i64, scratch_operands = 0 : i64, tpu.core_type = #tpu.core_type<tc>, window_params = [{transform_indices = @transform_0, window_bounds = array<i64: 1, 1, 72, 119>}, {pipeline_mode = #tpu.pipeline_mode<synchronous>, transform_indices = @transform_1, window_bounds = array<i64: 16, 112, 256>}, {pipeline_mode = #tpu.pipeline_mode<synchronous>, transform_indices = @transform_2, window_bounds = array<i64: 1, 256>}, {transform_indices = @transform_3, window_bounds = array<i64: 1, 1, 16, 256>}]} {
    %c0 = arith.constant 0 : index
    %c0_0 = arith.constant 0 : index
    %c0_1 = arith.constant 0 : index
    %c0_2 = arith.constant 0 : index
    %0 = vector.load %arg2[%c0, %c0_0, %c0_1, %c0_2] : memref<1x1x72x119xbf16, #tpu.memory_space<vmem>>, vector<1x1x18x112xbf16>
    %1 = vector.shape_cast %0 : vector<1x1x18x112xbf16> to vector<18x112xbf16>
    %c0_3 = arith.constant 0 : index
    %c0_4 = arith.constant 0 : index
    %c0_5 = arith.constant 0 : index
    %2 = vector.load %arg3[%c0_3, %c0_4, %c0_5] : memref<16x112x256xbf16, #tpu.memory_space<vmem>>, vector<1x112x256xbf16>
    %3 = vector.shape_cast %2 : vector<1x112x256xbf16> to vector<112x256xbf16>
    %cst = arith.constant dense<0.000000e+00> : vector<18x256xf32>
    %4 = tpu.matmul %1, %3, %cst {dimension_numbers = #tpu.dot_dimension_numbers<[1], [0], [0], [1], [0, 0, 1, 1], [], []>} : vector<18x112xbf16>, vector<112x256xbf16>, vector<18x256xf32> -> vector<18x256xf32>
    %5 = vector.extract_strided_slice %4 {offsets = [0, 0], sizes = [16, 256], strides = [1, 1]} : vector<18x256xf32> to vector<16x256xf32>
    %c0_6 = arith.constant 0 : index
    %c0_7 = arith.constant 0 : index
    %c18 = arith.constant 18 : index
    %c0_8 = arith.constant 0 : index
    %6 = vector.load %arg2[%c0_6, %c0_7, %c18, %c0_8] : memref<1x1x72x119xbf16, #tpu.memory_space<vmem>>, vector<1x1x18x112xbf16>
    %7 = vector.shape_cast %6 : vector<1x1x18x112xbf16> to vector<18x112xbf16>
    %c1 = arith.constant 1 : index
    %c0_9 = arith.constant 0 : index
    %c0_10 = arith.constant 0 : index
    %8 = vector.load %arg3[%c1, %c0_9, %c0_10] : memref<16x112x256xbf16, #tpu.memory_space<vmem>>, vector<1x112x256xbf16>
    %9 = vector.shape_cast %8 : vector<1x112x256xbf16> to vector<112x256xbf16>
    %cst_11 = arith.constant dense<0.000000e+00> : vector<18x256xf32>
    %10 = tpu.matmul %7, %9, %cst_11 {dimension_numbers = #tpu.dot_dimension_numbers<[1], [0], [0], [1], [0, 0, 1, 1], [], []>} : vector<18x112xbf16>, vector<112x256xbf16>, vector<18x256xf32> -> vector<18x256xf32>
    %11 = vector.extract_strided_slice %10 {offsets = [0, 0], sizes = [16, 256], strides = [1, 1]} : vector<18x256xf32> to vector<16x256xf32>
    %12 = arith.addf %5, %11 : vector<16x256xf32>
    %c0_12 = arith.constant 0 : index
    %c0_13 = arith.constant 0 : index
    %c0_14 = arith.constant 0 : index
    %c7 = arith.constant 7 : index
    %13 = vector.load %arg2[%c0_12, %c0_13, %c0_14, %c7] : memref<1x1x72x119xbf16, #tpu.memory_space<vmem>>, vector<1x1x18x112xbf16>
    %14 = vector.shape_cast %13 : vector<1x1x18x112xbf16> to vector<18x112xbf16>
    %c2 = arith.constant 2 : index
    %c0_15 = arith.constant 0 : index
    %c0_16 = arith.constant 0 : index
    %15 = vector.load %arg3[%c2, %c0_15, %c0_16] : memref<16x112x256xbf16, #tpu.memory_space<vmem>>, vector<1x112x256xbf16>
    %16 = vector.shape_cast %15 : vector<1x112x256xbf16> to vector<112x256xbf16>
    %cst_17 = arith.constant dense<0.000000e+00> : vector<18x256xf32>
    %17 = tpu.matmul %14, %16, %cst_17 {dimension_numbers = #tpu.dot_dimension_numbers<[1], [0], [0], [1], [0, 0, 1, 1], [], []>} : vector<18x112xbf16>, vector<112x256xbf16>, vector<18x256xf32> -> vector<18x256xf32>
    %18 = vector.extract_strided_slice %17 {offsets = [0, 0], sizes = [16, 256], strides = [1, 1]} : vector<18x256xf32> to vector<16x256xf32>
    %19 = arith.addf %12, %18 : vector<16x256xf32>
    %c0_18 = arith.constant 0 : index
    %c0_19 = arith.constant 0 : index
    %c18_20 = arith.constant 18 : index
    %c7_21 = arith.constant 7 : index
    %20 = vector.load %arg2[%c0_18, %c0_19, %c18_20, %c7_21] : memref<1x1x72x119xbf16, #tpu.memory_space<vmem>>, vector<1x1x18x112xbf16>
    %21 = vector.shape_cast %20 : vector<1x1x18x112xbf16> to vector<18x112xbf16>
    %c3 = arith.constant 3 : index
    %c0_22 = arith.constant 0 : index
    %c0_23 = arith.constant 0 : index
    %22 = vector.load %arg3[%c3, %c0_22, %c0_23] : memref<16x112x256xbf16, #tpu.memory_space<vmem>>, vector<1x112x256xbf16>
    %23 = vector.shape_cast %22 : vector<1x112x256xbf16> to vector<112x256xbf16>
    %cst_24 = arith.constant dense<0.000000e+00> : vector<18x256xf32>
    %24 = tpu.matmul %21, %23, %cst_24 {dimension_numbers = #tpu.dot_dimension_numbers<[1], [0], [0], [1], [0, 0, 1, 1], [], []>} : vector<18x112xbf16>, vector<112x256xbf16>, vector<18x256xf32> -> vector<18x256xf32>
    %25 = vector.extract_strided_slice %24 {offsets = [0, 0], sizes = [16, 256], strides = [1, 1]} : vector<18x256xf32> to vector<16x256xf32>
    %26 = arith.addf %19, %25 : vector<16x256xf32>
    %c0_25 = arith.constant 0 : index
    %c0_26 = arith.constant 0 : index
    %c36 = arith.constant 36 : index
    %c0_27 = arith.constant 0 : index
    %27 = vector.load %arg2[%c0_25, %c0_26, %c36, %c0_27] : memref<1x1x72x119xbf16, #tpu.memory_space<vmem>>, vector<1x1x18x112xbf16>
    %28 = vector.shape_cast %27 : vector<1x1x18x112xbf16> to vector<18x112xbf16>
    %c4 = arith.constant 4 : index
    %c0_28 = arith.constant 0 : index
    %c0_29 = arith.constant 0 : index
    %29 = vector.load %arg3[%c4, %c0_28, %c0_29] : memref<16x112x256xbf16, #tpu.memory_space<vmem>>, vector<1x112x256xbf16>
    %30 = vector.shape_cast %29 : vector<1x112x256xbf16> to vector<112x256xbf16>
    %cst_30 = arith.constant dense<0.000000e+00> : vector<18x256xf32>
    %31 = tpu.matmul %28, %30, %cst_30 {dimension_numbers = #tpu.dot_dimension_numbers<[1], [0], [0], [1], [0, 0, 1, 1], [], []>} : vector<18x112xbf16>, vector<112x256xbf16>, vector<18x256xf32> -> vector<18x256xf32>
    %32 = vector.extract_strided_slice %31 {offsets = [0, 0], sizes = [16, 256], strides = [1, 1]} : vector<18x256xf32> to vector<16x256xf32>
    %33 = arith.addf %26, %32 : vector<16x256xf32>
    %c0_31 = arith.constant 0 : index
    %c0_32 = arith.constant 0 : index
    %c54 = arith.constant 54 : index
    %c0_33 = arith.constant 0 : index
    %34 = vector.load %arg2[%c0_31, %c0_32, %c54, %c0_33] : memref<1x1x72x119xbf16, #tpu.memory_space<vmem>>, vector<1x1x18x112xbf16>
    %35 = vector.shape_cast %34 : vector<1x1x18x112xbf16> to vector<18x112xbf16>
    %c5 = arith.constant 5 : index
    %c0_34 = arith.constant 0 : index
    %c0_35 = arith.constant 0 : index
    %36 = vector.load %arg3[%c5, %c0_34, %c0_35] : memref<16x112x256xbf16, #tpu.memory_space<vmem>>, vector<1x112x256xbf16>
    %37 = vector.shape_cast %36 : vector<1x112x256xbf16> to vector<112x256xbf16>
    %cst_36 = arith.constant dense<0.000000e+00> : vector<18x256xf32>
    %38 = tpu.matmul %35, %37, %cst_36 {dimension_numbers = #tpu.dot_dimension_numbers<[1], [0], [0], [1], [0, 0, 1, 1], [], []>} : vector<18x112xbf16>, vector<112x256xbf16>, vector<18x256xf32> -> vector<18x256xf32>
    %39 = vector.extract_strided_slice %38 {offsets = [0, 0], sizes = [16, 256], strides = [1, 1]} : vector<18x256xf32> to vector<16x256xf32>
    %40 = arith.addf %33, %39 : vector<16x256xf32>
    %c0_37 = arith.constant 0 : index
    %c0_38 = arith.constant 0 : index
    %c36_39 = arith.constant 36 : index
    %c7_40 = arith.constant 7 : index
    %41 = vector.load %arg2[%c0_37, %c0_38, %c36_39, %c7_40] : memref<1x1x72x119xbf16, #tpu.memory_space<vmem>>, vector<1x1x18x112xbf16>
    %42 = vector.shape_cast %41 : vector<1x1x18x112xbf16> to vector<18x112xbf16>
    %c6 = arith.constant 6 : index
    %c0_41 = arith.constant 0 : index
    %c0_42 = arith.constant 0 : index
    %43 = vector.load %arg3[%c6, %c0_41, %c0_42] : memref<16x112x256xbf16, #tpu.memory_space<vmem>>, vector<1x112x256xbf16>
    %44 = vector.shape_cast %43 : vector<1x112x256xbf16> to vector<112x256xbf16>
    %cst_43 = arith.constant dense<0.000000e+00> : vector<18x256xf32>
    %45 = tpu.matmul %42, %44, %cst_43 {dimension_numbers = #tpu.dot_dimension_numbers<[1], [0], [0], [1], [0, 0, 1, 1], [], []>} : vector<18x112xbf16>, vector<112x256xbf16>, vector<18x256xf32> -> vector<18x256xf32>
    %46 = vector.extract_strided_slice %45 {offsets = [0, 0], sizes = [16, 256], strides = [1, 1]} : vector<18x256xf32> to vector<16x256xf32>
    %47 = arith.addf %40, %46 : vector<16x256xf32>
    %c0_44 = arith.constant 0 : index
    %c0_45 = arith.constant 0 : index
    %c54_46 = arith.constant 54 : index
    %c7_47 = arith.constant 7 : index
    %48 = vector.load %arg2[%c0_44, %c0_45, %c54_46, %c7_47] : memref<1x1x72x119xbf16, #tpu.memory_space<vmem>>, vector<1x1x18x112xbf16>
    %49 = vector.shape_cast %48 : vector<1x1x18x112xbf16> to vector<18x112xbf16>
    %c7_48 = arith.constant 7 : index
    %c0_49 = arith.constant 0 : index
    %c0_50 = arith.constant 0 : index
    %50 = vector.load %arg3[%c7_48, %c0_49, %c0_50] : memref<16x112x256xbf16, #tpu.memory_space<vmem>>, vector<1x112x256xbf16>
    %51 = vector.shape_cast %50 : vector<1x112x256xbf16> to vector<112x256xbf16>
    %cst_51 = arith.constant dense<0.000000e+00> : vector<18x256xf32>
    %52 = tpu.matmul %49, %51, %cst_51 {dimension_numbers = #tpu.dot_dimension_numbers<[1], [0], [0], [1], [0, 0, 1, 1], [], []>} : vector<18x112xbf16>, vector<112x256xbf16>, vector<18x256xf32> -> vector<18x256xf32>
    %53 = vector.extract_strided_slice %52 {offsets = [0, 0], sizes = [16, 256], strides = [1, 1]} : vector<18x256xf32> to vector<16x256xf32>
    %54 = arith.addf %47, %53 : vector<16x256xf32>
    %c0_52 = arith.constant 0 : index
    %c0_53 = arith.constant 0 : index
    %c0_54 = arith.constant 0 : index
    %c0_55 = arith.constant 0 : index
    %55 = vector.load %arg2[%c0_52, %c0_53, %c0_54, %c0_55] : memref<1x1x72x119xbf16, #tpu.memory_space<vmem>>, vector<1x1x18x112xbf16>
    %56 = vector.shape_cast %55 : vector<1x1x18x112xbf16> to vector<18x112xbf16>
    %c8 = arith.constant 8 : index
    %c0_56 = arith.constant 0 : index
    %c0_57 = arith.constant 0 : index
    %57 = vector.load %arg3[%c8, %c0_56, %c0_57] : memref<16x112x256xbf16, #tpu.memory_space<vmem>>, vector<1x112x256xbf16>
    %58 = vector.shape_cast %57 : vector<1x112x256xbf16> to vector<112x256xbf16>
    %cst_58 = arith.constant dense<0.000000e+00> : vector<18x256xf32>
    %59 = tpu.matmul %56, %58, %cst_58 {dimension_numbers = #tpu.dot_dimension_numbers<[1], [0], [0], [1], [0, 0, 1, 1], [], []>} : vector<18x112xbf16>, vector<112x256xbf16>, vector<18x256xf32> -> vector<18x256xf32>
    %60 = vector.extract_strided_slice %59 {offsets = [1, 0], sizes = [16, 256], strides = [1, 1]} : vector<18x256xf32> to vector<16x256xf32>
    %61 = arith.addf %54, %60 : vector<16x256xf32>
    %c0_59 = arith.constant 0 : index
    %c0_60 = arith.constant 0 : index
    %c18_61 = arith.constant 18 : index
    %c0_62 = arith.constant 0 : index
    %62 = vector.load %arg2[%c0_59, %c0_60, %c18_61, %c0_62] : memref<1x1x72x119xbf16, #tpu.memory_space<vmem>>, vector<1x1x18x112xbf16>
    %63 = vector.shape_cast %62 : vector<1x1x18x112xbf16> to vector<18x112xbf16>
    %c9 = arith.constant 9 : index
    %c0_63 = arith.constant 0 : index
    %c0_64 = arith.constant 0 : index
    %64 = vector.load %arg3[%c9, %c0_63, %c0_64] : memref<16x112x256xbf16, #tpu.memory_space<vmem>>, vector<1x112x256xbf16>
    %65 = vector.shape_cast %64 : vector<1x112x256xbf16> to vector<112x256xbf16>
    %cst_65 = arith.constant dense<0.000000e+00> : vector<18x256xf32>
    %66 = tpu.matmul %63, %65, %cst_65 {dimension_numbers = #tpu.dot_dimension_numbers<[1], [0], [0], [1], [0, 0, 1, 1], [], []>} : vector<18x112xbf16>, vector<112x256xbf16>, vector<18x256xf32> -> vector<18x256xf32>
    %67 = vector.extract_strided_slice %66 {offsets = [1, 0], sizes = [16, 256], strides = [1, 1]} : vector<18x256xf32> to vector<16x256xf32>
    %68 = arith.addf %61, %67 : vector<16x256xf32>
    %c0_66 = arith.constant 0 : index
    %c0_67 = arith.constant 0 : index
    %c0_68 = arith.constant 0 : index
    %c7_69 = arith.constant 7 : index
    %69 = vector.load %arg2[%c0_66, %c0_67, %c0_68, %c7_69] : memref<1x1x72x119xbf16, #tpu.memory_space<vmem>>, vector<1x1x18x112xbf16>
    %70 = vector.shape_cast %69 : vector<1x1x18x112xbf16> to vector<18x112xbf16>
    %c10 = arith.constant 10 : index
    %c0_70 = arith.constant 0 : index
    %c0_71 = arith.constant 0 : index
    %71 = vector.load %arg3[%c10, %c0_70, %c0_71] : memref<16x112x256xbf16, #tpu.memory_space<vmem>>, vector<1x112x256xbf16>
    %72 = vector.shape_cast %71 : vector<1x112x256xbf16> to vector<112x256xbf16>
    %cst_72 = arith.constant dense<0.000000e+00> : vector<18x256xf32>
    %73 = tpu.matmul %70, %72, %cst_72 {dimension_numbers = #tpu.dot_dimension_numbers<[1], [0], [0], [1], [0, 0, 1, 1], [], []>} : vector<18x112xbf16>, vector<112x256xbf16>, vector<18x256xf32> -> vector<18x256xf32>
    %74 = vector.extract_strided_slice %73 {offsets = [1, 0], sizes = [16, 256], strides = [1, 1]} : vector<18x256xf32> to vector<16x256xf32>
    %75 = arith.addf %68, %74 : vector<16x256xf32>
    %c0_73 = arith.constant 0 : index
    %c0_74 = arith.constant 0 : index
    %c18_75 = arith.constant 18 : index
    %c7_76 = arith.constant 7 : index
    %76 = vector.load %arg2[%c0_73, %c0_74, %c18_75, %c7_76] : memref<1x1x72x119xbf16, #tpu.memory_space<vmem>>, vector<1x1x18x112xbf16>
    %77 = vector.shape_cast %76 : vector<1x1x18x112xbf16> to vector<18x112xbf16>
    %c11 = arith.constant 11 : index
    %c0_77 = arith.constant 0 : index
    %c0_78 = arith.constant 0 : index
    %78 = vector.load %arg3[%c11, %c0_77, %c0_78] : memref<16x112x256xbf16, #tpu.memory_space<vmem>>, vector<1x112x256xbf16>
    %79 = vector.shape_cast %78 : vector<1x112x256xbf16> to vector<112x256xbf16>
    %cst_79 = arith.constant dense<0.000000e+00> : vector<18x256xf32>
    %80 = tpu.matmul %77, %79, %cst_79 {dimension_numbers = #tpu.dot_dimension_numbers<[1], [0], [0], [1], [0, 0, 1, 1], [], []>} : vector<18x112xbf16>, vector<112x256xbf16>, vector<18x256xf32> -> vector<18x256xf32>
    %81 = vector.extract_strided_slice %80 {offsets = [1, 0], sizes = [16, 256], strides = [1, 1]} : vector<18x256xf32> to vector<16x256xf32>
    %82 = arith.addf %75, %81 : vector<16x256xf32>
    %c0_80 = arith.constant 0 : index
    %c0_81 = arith.constant 0 : index
    %c36_82 = arith.constant 36 : index
    %c0_83 = arith.constant 0 : index
    %83 = vector.load %arg2[%c0_80, %c0_81, %c36_82, %c0_83] : memref<1x1x72x119xbf16, #tpu.memory_space<vmem>>, vector<1x1x18x112xbf16>
    %84 = vector.shape_cast %83 : vector<1x1x18x112xbf16> to vector<18x112xbf16>
    %c12 = arith.constant 12 : index
    %c0_84 = arith.constant 0 : index
    %c0_85 = arith.constant 0 : index
    %85 = vector.load %arg3[%c12, %c0_84, %c0_85] : memref<16x112x256xbf16, #tpu.memory_space<vmem>>, vector<1x112x256xbf16>
    %86 = vector.shape_cast %85 : vector<1x112x256xbf16> to vector<112x256xbf16>
    %cst_86 = arith.constant dense<0.000000e+00> : vector<18x256xf32>
    %87 = tpu.matmul %84, %86, %cst_86 {dimension_numbers = #tpu.dot_dimension_numbers<[1], [0], [0], [1], [0, 0, 1, 1], [], []>} : vector<18x112xbf16>, vector<112x256xbf16>, vector<18x256xf32> -> vector<18x256xf32>
    %88 = vector.extract_strided_slice %87 {offsets = [1, 0], sizes = [16, 256], strides = [1, 1]} : vector<18x256xf32> to vector<16x256xf32>
    %89 = arith.addf %82, %88 : vector<16x256xf32>
    %c0_87 = arith.constant 0 : index
    %c0_88 = arith.constant 0 : index
    %c54_89 = arith.constant 54 : index
    %c0_90 = arith.constant 0 : index
    %90 = vector.load %arg2[%c0_87, %c0_88, %c54_89, %c0_90] : memref<1x1x72x119xbf16, #tpu.memory_space<vmem>>, vector<1x1x18x112xbf16>
    %91 = vector.shape_cast %90 : vector<1x1x18x112xbf16> to vector<18x112xbf16>
    %c13 = arith.constant 13 : index
    %c0_91 = arith.constant 0 : index
    %c0_92 = arith.constant 0 : index
    %92 = vector.load %arg3[%c13, %c0_91, %c0_92] : memref<16x112x256xbf16, #tpu.memory_space<vmem>>, vector<1x112x256xbf16>
    %93 = vector.shape_cast %92 : vector<1x112x256xbf16> to vector<112x256xbf16>
    %cst_93 = arith.constant dense<0.000000e+00> : vector<18x256xf32>
    %94 = tpu.matmul %91, %93, %cst_93 {dimension_numbers = #tpu.dot_dimension_numbers<[1], [0], [0], [1], [0, 0, 1, 1], [], []>} : vector<18x112xbf16>, vector<112x256xbf16>, vector<18x256xf32> -> vector<18x256xf32>
    %95 = vector.extract_strided_slice %94 {offsets = [1, 0], sizes = [16, 256], strides = [1, 1]} : vector<18x256xf32> to vector<16x256xf32>
    %96 = arith.addf %89, %95 : vector<16x256xf32>
    %c0_94 = arith.constant 0 : index
    %c0_95 = arith.constant 0 : index
    %c36_96 = arith.constant 36 : index
    %c7_97 = arith.constant 7 : index
    %97 = vector.load %arg2[%c0_94, %c0_95, %c36_96, %c7_97] : memref<1x1x72x119xbf16, #tpu.memory_space<vmem>>, vector<1x1x18x112xbf16>
    %98 = vector.shape_cast %97 : vector<1x1x18x112xbf16> to vector<18x112xbf16>
    %c14 = arith.constant 14 : index
    %c0_98 = arith.constant 0 : index
    %c0_99 = arith.constant 0 : index
    %99 = vector.load %arg3[%c14, %c0_98, %c0_99] : memref<16x112x256xbf16, #tpu.memory_space<vmem>>, vector<1x112x256xbf16>
    %100 = vector.shape_cast %99 : vector<1x112x256xbf16> to vector<112x256xbf16>
    %cst_100 = arith.constant dense<0.000000e+00> : vector<18x256xf32>
    %101 = tpu.matmul %98, %100, %cst_100 {dimension_numbers = #tpu.dot_dimension_numbers<[1], [0], [0], [1], [0, 0, 1, 1], [], []>} : vector<18x112xbf16>, vector<112x256xbf16>, vector<18x256xf32> -> vector<18x256xf32>
    %102 = vector.extract_strided_slice %101 {offsets = [1, 0], sizes = [16, 256], strides = [1, 1]} : vector<18x256xf32> to vector<16x256xf32>
    %103 = arith.addf %96, %102 : vector<16x256xf32>
    %c0_101 = arith.constant 0 : index
    %c0_102 = arith.constant 0 : index
    %c54_103 = arith.constant 54 : index
    %c7_104 = arith.constant 7 : index
    %104 = vector.load %arg2[%c0_101, %c0_102, %c54_103, %c7_104] : memref<1x1x72x119xbf16, #tpu.memory_space<vmem>>, vector<1x1x18x112xbf16>
    %105 = vector.shape_cast %104 : vector<1x1x18x112xbf16> to vector<18x112xbf16>
    %c15 = arith.constant 15 : index
    %c0_105 = arith.constant 0 : index
    %c0_106 = arith.constant 0 : index
    %106 = vector.load %arg3[%c15, %c0_105, %c0_106] : memref<16x112x256xbf16, #tpu.memory_space<vmem>>, vector<1x112x256xbf16>
    %107 = vector.shape_cast %106 : vector<1x112x256xbf16> to vector<112x256xbf16>
    %cst_107 = arith.constant dense<0.000000e+00> : vector<18x256xf32>
    %108 = tpu.matmul %105, %107, %cst_107 {dimension_numbers = #tpu.dot_dimension_numbers<[1], [0], [0], [1], [0, 0, 1, 1], [], []>} : vector<18x112xbf16>, vector<112x256xbf16>, vector<18x256xf32> -> vector<18x256xf32>
    %109 = vector.extract_strided_slice %108 {offsets = [1, 0], sizes = [16, 256], strides = [1, 1]} : vector<18x256xf32> to vector<16x256xf32>
    %110 = arith.addf %103, %109 : vector<16x256xf32>
    %c0_108 = arith.constant 0 : index
    %c0_109 = arith.constant 0 : index
    %111 = vector.load %arg4[%c0_108, %c0_109] : memref<1x256xf32, #tpu.memory_space<vmem>>, vector<1x256xf32>
    %112 = vector.broadcast %111 : vector<1x256xf32> to vector<16x256xf32>
    %113 = arith.addf %110, %112 : vector<16x256xf32>
    %cst_110 = arith.constant 0.000000e+00 : f32
    %114 = vector.broadcast %cst_110 : f32 to vector<16x256xf32>
    %115 = arith.cmpf oge, %113, %114 : vector<16x256xf32>
    %cst_111 = arith.constant 2.000000e-01 : f32
    %116 = vector.broadcast %cst_111 : f32 to vector<16x256xf32>
    %117 = arith.mulf %116, %113 : vector<16x256xf32>
    %118 = arith.select %115, %113, %117 : vector<16x256xi1>, vector<16x256xf32>
    %119 = arith.truncf %118 : vector<16x256xf32> to vector<16x256xbf16>
    %c0_112 = arith.constant 0 : index
    %c0_113 = arith.constant 0 : index
    %c0_114 = arith.constant 0 : index
    %c0_115 = arith.constant 0 : index
    %120 = vector.load %arg5[%c0_112, %c0_113, %c0_114, %c0_115] : memref<1x1x16x256xbf16, #tpu.memory_space<vmem>>, vector<1x1x16x256xbf16>
    %121 = vector.shape_cast %120 : vector<1x1x16x256xbf16> to vector<16x256xbf16>
    %122 = vector.shape_cast %119 : vector<16x256xbf16> to vector<1x1x16x256xbf16>
    tpu.vector_store %arg5[%c0_112, %c0_113, %c0_114, %c0_115], %122 {strides = array<i32>} : memref<1x1x16x256xbf16, #tpu.memory_space<vmem>>, vector<1x1x16x256xbf16>,
    return
  }
  func.func @transform_0(%arg0: i32, %arg1: i32) -> (i32, i32, i32, i32) {
    %c0_i32 = arith.constant 0 : i32
    %c0_i32_0 = arith.constant 0 : i32
    %c0_i32_1 = arith.constant 0 : i32
    return %arg0, %arg1, %c0_i32, %c0_i32_0 : i32, i32, i32, i32
  }
  func.func @transform_1(%arg0: i32, %arg1: i32) -> (i32, i32, i32) {
    %c0_i32 = arith.constant 0 : i32
    %c0_i32_0 = arith.constant 0 : i32
    %c0_i32_1 = arith.constant 0 : i32
    %c0_i32_2 = arith.constant 0 : i32
    return %c0_i32, %c0_i32_0, %c0_i32_1 : i32, i32, i32
  }
  func.func @transform_2(%arg0: i32, %arg1: i32) -> (i32, i32) {
    %c0_i32 = arith.constant 0 : i32
    %c0_i32_0 = arith.constant 0 : i32
    %c0_i32_1 = arith.constant 0 : i32
    return %c0_i32, %c0_i32_0 : i32, i32
  }
  func.func @transform_3(%arg0: i32, %arg1: i32) -> (i32, i32, i32, i32) {
    %c0_i32 = arith.constant 0 : i32
    %c0_i32_0 = arith.constant 0 : i32
    %c0_i32_1 = arith.constant 0 : i32
    return %arg0, %arg1, %c0_i32, %c0_i32_0 : i32, i32, i32, i32
  }
}

module attributes {stable_mosaic.version = 11 : i64} {
  func.func @_conv4x4s2_kernel(%arg0: i32, %arg1: i32, %arg2: memref<1x1x40x144xbf16, #tpu.memory_space<vmem>>, %arg3: memref<16x128x256xbf16, #tpu.memory_space<vmem>>, %arg4: memref<1x1x8x256xbf16, #tpu.memory_space<vmem>>, %arg5: memref<1x1x2x256xf32, #tpu.memory_space<vmem>>) attributes {dimension_semantics = [#tpu.dimension_semantics<parallel>, #tpu.dimension_semantics<parallel>], iteration_bounds = array<i64: 2, 1>, scalar_prefetch = 0 : i64, scratch_operands = 0 : i64, tpu.core_type = #tpu.core_type<tc>, window_params = [{transform_indices = @transform_0, window_bounds = array<i64: 1, 1, 40, 144>}, {pipeline_mode = #tpu.pipeline_mode<synchronous>, transform_indices = @transform_1, window_bounds = array<i64: 16, 128, 256>}, {transform_indices = @transform_2, window_bounds = array<i64: 1, 1, 8, 256>}, {transform_indices = @transform_3, window_bounds = array<i64: 1, 1, 2, 256>}]} {
    %c0 = arith.constant 0 : index
    %c0_0 = arith.constant 0 : index
    %c0_1 = arith.constant 0 : index
    %c0_2 = arith.constant 0 : index
    %0 = vector.load %arg2[%c0, %c0_0, %c0_1, %c0_2] : memref<1x1x40x144xbf16, #tpu.memory_space<vmem>>, vector<1x1x10x128xbf16>
    %1 = vector.shape_cast %0 : vector<1x1x10x128xbf16> to vector<10x128xbf16>
    %c0_3 = arith.constant 0 : index
    %c0_4 = arith.constant 0 : index
    %c0_5 = arith.constant 0 : index
    %2 = vector.load %arg3[%c0_3, %c0_4, %c0_5] : memref<16x128x256xbf16, #tpu.memory_space<vmem>>, vector<1x128x256xbf16>
    %3 = vector.shape_cast %2 : vector<1x128x256xbf16> to vector<128x256xbf16>
    %cst = arith.constant dense<0.000000e+00> : vector<10x256xf32>
    %4 = tpu.matmul %1, %3, %cst {dimension_numbers = #tpu.dot_dimension_numbers<[1], [0], [0], [1], [0, 0, 1, 1], [], []>} : vector<10x128xbf16>, vector<128x256xbf16>, vector<10x256xf32> -> vector<10x256xf32>
    %5 = vector.extract_strided_slice %4 {offsets = [0, 0], sizes = [8, 256], strides = [1, 1]} : vector<10x256xf32> to vector<8x256xf32>
    %c0_6 = arith.constant 0 : index
    %c0_7 = arith.constant 0 : index
    %c10 = arith.constant 10 : index
    %c0_8 = arith.constant 0 : index
    %6 = vector.load %arg2[%c0_6, %c0_7, %c10, %c0_8] : memref<1x1x40x144xbf16, #tpu.memory_space<vmem>>, vector<1x1x10x128xbf16>
    %7 = vector.shape_cast %6 : vector<1x1x10x128xbf16> to vector<10x128xbf16>
    %c1 = arith.constant 1 : index
    %c0_9 = arith.constant 0 : index
    %c0_10 = arith.constant 0 : index
    %8 = vector.load %arg3[%c1, %c0_9, %c0_10] : memref<16x128x256xbf16, #tpu.memory_space<vmem>>, vector<1x128x256xbf16>
    %9 = vector.shape_cast %8 : vector<1x128x256xbf16> to vector<128x256xbf16>
    %cst_11 = arith.constant dense<0.000000e+00> : vector<10x256xf32>
    %10 = tpu.matmul %7, %9, %cst_11 {dimension_numbers = #tpu.dot_dimension_numbers<[1], [0], [0], [1], [0, 0, 1, 1], [], []>} : vector<10x128xbf16>, vector<128x256xbf16>, vector<10x256xf32> -> vector<10x256xf32>
    %11 = vector.extract_strided_slice %10 {offsets = [0, 0], sizes = [8, 256], strides = [1, 1]} : vector<10x256xf32> to vector<8x256xf32>
    %12 = arith.addf %5, %11 : vector<8x256xf32>
    %c0_12 = arith.constant 0 : index
    %c0_13 = arith.constant 0 : index
    %c0_14 = arith.constant 0 : index
    %c16 = arith.constant 16 : index
    %13 = vector.load %arg2[%c0_12, %c0_13, %c0_14, %c16] : memref<1x1x40x144xbf16, #tpu.memory_space<vmem>>, vector<1x1x10x128xbf16>
    %14 = vector.shape_cast %13 : vector<1x1x10x128xbf16> to vector<10x128xbf16>
    %c2 = arith.constant 2 : index
    %c0_15 = arith.constant 0 : index
    %c0_16 = arith.constant 0 : index
    %15 = vector.load %arg3[%c2, %c0_15, %c0_16] : memref<16x128x256xbf16, #tpu.memory_space<vmem>>, vector<1x128x256xbf16>
    %16 = vector.shape_cast %15 : vector<1x128x256xbf16> to vector<128x256xbf16>
    %cst_17 = arith.constant dense<0.000000e+00> : vector<10x256xf32>
    %17 = tpu.matmul %14, %16, %cst_17 {dimension_numbers = #tpu.dot_dimension_numbers<[1], [0], [0], [1], [0, 0, 1, 1], [], []>} : vector<10x128xbf16>, vector<128x256xbf16>, vector<10x256xf32> -> vector<10x256xf32>
    %18 = vector.extract_strided_slice %17 {offsets = [0, 0], sizes = [8, 256], strides = [1, 1]} : vector<10x256xf32> to vector<8x256xf32>
    %19 = arith.addf %12, %18 : vector<8x256xf32>
    %c0_18 = arith.constant 0 : index
    %c0_19 = arith.constant 0 : index
    %c10_20 = arith.constant 10 : index
    %c16_21 = arith.constant 16 : index
    %20 = vector.load %arg2[%c0_18, %c0_19, %c10_20, %c16_21] : memref<1x1x40x144xbf16, #tpu.memory_space<vmem>>, vector<1x1x10x128xbf16>
    %21 = vector.shape_cast %20 : vector<1x1x10x128xbf16> to vector<10x128xbf16>
    %c3 = arith.constant 3 : index
    %c0_22 = arith.constant 0 : index
    %c0_23 = arith.constant 0 : index
    %22 = vector.load %arg3[%c3, %c0_22, %c0_23] : memref<16x128x256xbf16, #tpu.memory_space<vmem>>, vector<1x128x256xbf16>
    %23 = vector.shape_cast %22 : vector<1x128x256xbf16> to vector<128x256xbf16>
    %cst_24 = arith.constant dense<0.000000e+00> : vector<10x256xf32>
    %24 = tpu.matmul %21, %23, %cst_24 {dimension_numbers = #tpu.dot_dimension_numbers<[1], [0], [0], [1], [0, 0, 1, 1], [], []>} : vector<10x128xbf16>, vector<128x256xbf16>, vector<10x256xf32> -> vector<10x256xf32>
    %25 = vector.extract_strided_slice %24 {offsets = [0, 0], sizes = [8, 256], strides = [1, 1]} : vector<10x256xf32> to vector<8x256xf32>
    %26 = arith.addf %19, %25 : vector<8x256xf32>
    %c0_25 = arith.constant 0 : index
    %c0_26 = arith.constant 0 : index
    %c20 = arith.constant 20 : index
    %c0_27 = arith.constant 0 : index
    %27 = vector.load %arg2[%c0_25, %c0_26, %c20, %c0_27] : memref<1x1x40x144xbf16, #tpu.memory_space<vmem>>, vector<1x1x10x128xbf16>
    %28 = vector.shape_cast %27 : vector<1x1x10x128xbf16> to vector<10x128xbf16>
    %c4 = arith.constant 4 : index
    %c0_28 = arith.constant 0 : index
    %c0_29 = arith.constant 0 : index
    %29 = vector.load %arg3[%c4, %c0_28, %c0_29] : memref<16x128x256xbf16, #tpu.memory_space<vmem>>, vector<1x128x256xbf16>
    %30 = vector.shape_cast %29 : vector<1x128x256xbf16> to vector<128x256xbf16>
    %cst_30 = arith.constant dense<0.000000e+00> : vector<10x256xf32>
    %31 = tpu.matmul %28, %30, %cst_30 {dimension_numbers = #tpu.dot_dimension_numbers<[1], [0], [0], [1], [0, 0, 1, 1], [], []>} : vector<10x128xbf16>, vector<128x256xbf16>, vector<10x256xf32> -> vector<10x256xf32>
    %32 = vector.extract_strided_slice %31 {offsets = [0, 0], sizes = [8, 256], strides = [1, 1]} : vector<10x256xf32> to vector<8x256xf32>
    %33 = arith.addf %26, %32 : vector<8x256xf32>
    %c0_31 = arith.constant 0 : index
    %c0_32 = arith.constant 0 : index
    %c30 = arith.constant 30 : index
    %c0_33 = arith.constant 0 : index
    %34 = vector.load %arg2[%c0_31, %c0_32, %c30, %c0_33] : memref<1x1x40x144xbf16, #tpu.memory_space<vmem>>, vector<1x1x10x128xbf16>
    %35 = vector.shape_cast %34 : vector<1x1x10x128xbf16> to vector<10x128xbf16>
    %c5 = arith.constant 5 : index
    %c0_34 = arith.constant 0 : index
    %c0_35 = arith.constant 0 : index
    %36 = vector.load %arg3[%c5, %c0_34, %c0_35] : memref<16x128x256xbf16, #tpu.memory_space<vmem>>, vector<1x128x256xbf16>
    %37 = vector.shape_cast %36 : vector<1x128x256xbf16> to vector<128x256xbf16>
    %cst_36 = arith.constant dense<0.000000e+00> : vector<10x256xf32>
    %38 = tpu.matmul %35, %37, %cst_36 {dimension_numbers = #tpu.dot_dimension_numbers<[1], [0], [0], [1], [0, 0, 1, 1], [], []>} : vector<10x128xbf16>, vector<128x256xbf16>, vector<10x256xf32> -> vector<10x256xf32>
    %39 = vector.extract_strided_slice %38 {offsets = [0, 0], sizes = [8, 256], strides = [1, 1]} : vector<10x256xf32> to vector<8x256xf32>
    %40 = arith.addf %33, %39 : vector<8x256xf32>
    %c0_37 = arith.constant 0 : index
    %c0_38 = arith.constant 0 : index
    %c20_39 = arith.constant 20 : index
    %c16_40 = arith.constant 16 : index
    %41 = vector.load %arg2[%c0_37, %c0_38, %c20_39, %c16_40] : memref<1x1x40x144xbf16, #tpu.memory_space<vmem>>, vector<1x1x10x128xbf16>
    %42 = vector.shape_cast %41 : vector<1x1x10x128xbf16> to vector<10x128xbf16>
    %c6 = arith.constant 6 : index
    %c0_41 = arith.constant 0 : index
    %c0_42 = arith.constant 0 : index
    %43 = vector.load %arg3[%c6, %c0_41, %c0_42] : memref<16x128x256xbf16, #tpu.memory_space<vmem>>, vector<1x128x256xbf16>
    %44 = vector.shape_cast %43 : vector<1x128x256xbf16> to vector<128x256xbf16>
    %cst_43 = arith.constant dense<0.000000e+00> : vector<10x256xf32>
    %45 = tpu.matmul %42, %44, %cst_43 {dimension_numbers = #tpu.dot_dimension_numbers<[1], [0], [0], [1], [0, 0, 1, 1], [], []>} : vector<10x128xbf16>, vector<128x256xbf16>, vector<10x256xf32> -> vector<10x256xf32>
    %46 = vector.extract_strided_slice %45 {offsets = [0, 0], sizes = [8, 256], strides = [1, 1]} : vector<10x256xf32> to vector<8x256xf32>
    %47 = arith.addf %40, %46 : vector<8x256xf32>
    %c0_44 = arith.constant 0 : index
    %c0_45 = arith.constant 0 : index
    %c30_46 = arith.constant 30 : index
    %c16_47 = arith.constant 16 : index
    %48 = vector.load %arg2[%c0_44, %c0_45, %c30_46, %c16_47] : memref<1x1x40x144xbf16, #tpu.memory_space<vmem>>, vector<1x1x10x128xbf16>
    %49 = vector.shape_cast %48 : vector<1x1x10x128xbf16> to vector<10x128xbf16>
    %c7 = arith.constant 7 : index
    %c0_48 = arith.constant 0 : index
    %c0_49 = arith.constant 0 : index
    %50 = vector.load %arg3[%c7, %c0_48, %c0_49] : memref<16x128x256xbf16, #tpu.memory_space<vmem>>, vector<1x128x256xbf16>
    %51 = vector.shape_cast %50 : vector<1x128x256xbf16> to vector<128x256xbf16>
    %cst_50 = arith.constant dense<0.000000e+00> : vector<10x256xf32>
    %52 = tpu.matmul %49, %51, %cst_50 {dimension_numbers = #tpu.dot_dimension_numbers<[1], [0], [0], [1], [0, 0, 1, 1], [], []>} : vector<10x128xbf16>, vector<128x256xbf16>, vector<10x256xf32> -> vector<10x256xf32>
    %53 = vector.extract_strided_slice %52 {offsets = [0, 0], sizes = [8, 256], strides = [1, 1]} : vector<10x256xf32> to vector<8x256xf32>
    %54 = arith.addf %47, %53 : vector<8x256xf32>
    %c0_51 = arith.constant 0 : index
    %c0_52 = arith.constant 0 : index
    %c0_53 = arith.constant 0 : index
    %c0_54 = arith.constant 0 : index
    %55 = vector.load %arg2[%c0_51, %c0_52, %c0_53, %c0_54] : memref<1x1x40x144xbf16, #tpu.memory_space<vmem>>, vector<1x1x10x128xbf16>
    %56 = vector.shape_cast %55 : vector<1x1x10x128xbf16> to vector<10x128xbf16>
    %c8 = arith.constant 8 : index
    %c0_55 = arith.constant 0 : index
    %c0_56 = arith.constant 0 : index
    %57 = vector.load %arg3[%c8, %c0_55, %c0_56] : memref<16x128x256xbf16, #tpu.memory_space<vmem>>, vector<1x128x256xbf16>
    %58 = vector.shape_cast %57 : vector<1x128x256xbf16> to vector<128x256xbf16>
    %cst_57 = arith.constant dense<0.000000e+00> : vector<10x256xf32>
    %59 = tpu.matmul %56, %58, %cst_57 {dimension_numbers = #tpu.dot_dimension_numbers<[1], [0], [0], [1], [0, 0, 1, 1], [], []>} : vector<10x128xbf16>, vector<128x256xbf16>, vector<10x256xf32> -> vector<10x256xf32>
    %60 = vector.extract_strided_slice %59 {offsets = [1, 0], sizes = [8, 256], strides = [1, 1]} : vector<10x256xf32> to vector<8x256xf32>
    %61 = arith.addf %54, %60 : vector<8x256xf32>
    %c0_58 = arith.constant 0 : index
    %c0_59 = arith.constant 0 : index
    %c10_60 = arith.constant 10 : index
    %c0_61 = arith.constant 0 : index
    %62 = vector.load %arg2[%c0_58, %c0_59, %c10_60, %c0_61] : memref<1x1x40x144xbf16, #tpu.memory_space<vmem>>, vector<1x1x10x128xbf16>
    %63 = vector.shape_cast %62 : vector<1x1x10x128xbf16> to vector<10x128xbf16>
    %c9 = arith.constant 9 : index
    %c0_62 = arith.constant 0 : index
    %c0_63 = arith.constant 0 : index
    %64 = vector.load %arg3[%c9, %c0_62, %c0_63] : memref<16x128x256xbf16, #tpu.memory_space<vmem>>, vector<1x128x256xbf16>
    %65 = vector.shape_cast %64 : vector<1x128x256xbf16> to vector<128x256xbf16>
    %cst_64 = arith.constant dense<0.000000e+00> : vector<10x256xf32>
    %66 = tpu.matmul %63, %65, %cst_64 {dimension_numbers = #tpu.dot_dimension_numbers<[1], [0], [0], [1], [0, 0, 1, 1], [], []>} : vector<10x128xbf16>, vector<128x256xbf16>, vector<10x256xf32> -> vector<10x256xf32>
    %67 = vector.extract_strided_slice %66 {offsets = [1, 0], sizes = [8, 256], strides = [1, 1]} : vector<10x256xf32> to vector<8x256xf32>
    %68 = arith.addf %61, %67 : vector<8x256xf32>
    %c0_65 = arith.constant 0 : index
    %c0_66 = arith.constant 0 : index
    %c0_67 = arith.constant 0 : index
    %c16_68 = arith.constant 16 : index
    %69 = vector.load %arg2[%c0_65, %c0_66, %c0_67, %c16_68] : memref<1x1x40x144xbf16, #tpu.memory_space<vmem>>, vector<1x1x10x128xbf16>
    %70 = vector.shape_cast %69 : vector<1x1x10x128xbf16> to vector<10x128xbf16>
    %c10_69 = arith.constant 10 : index
    %c0_70 = arith.constant 0 : index
    %c0_71 = arith.constant 0 : index
    %71 = vector.load %arg3[%c10_69, %c0_70, %c0_71] : memref<16x128x256xbf16, #tpu.memory_space<vmem>>, vector<1x128x256xbf16>
    %72 = vector.shape_cast %71 : vector<1x128x256xbf16> to vector<128x256xbf16>
    %cst_72 = arith.constant dense<0.000000e+00> : vector<10x256xf32>
    %73 = tpu.matmul %70, %72, %cst_72 {dimension_numbers = #tpu.dot_dimension_numbers<[1], [0], [0], [1], [0, 0, 1, 1], [], []>} : vector<10x128xbf16>, vector<128x256xbf16>, vector<10x256xf32> -> vector<10x256xf32>
    %74 = vector.extract_strided_slice %73 {offsets = [1, 0], sizes = [8, 256], strides = [1, 1]} : vector<10x256xf32> to vector<8x256xf32>
    %75 = arith.addf %68, %74 : vector<8x256xf32>
    %c0_73 = arith.constant 0 : index
    %c0_74 = arith.constant 0 : index
    %c10_75 = arith.constant 10 : index
    %c16_76 = arith.constant 16 : index
    %76 = vector.load %arg2[%c0_73, %c0_74, %c10_75, %c16_76] : memref<1x1x40x144xbf16, #tpu.memory_space<vmem>>, vector<1x1x10x128xbf16>
    %77 = vector.shape_cast %76 : vector<1x1x10x128xbf16> to vector<10x128xbf16>
    %c11 = arith.constant 11 : index
    %c0_77 = arith.constant 0 : index
    %c0_78 = arith.constant 0 : index
    %78 = vector.load %arg3[%c11, %c0_77, %c0_78] : memref<16x128x256xbf16, #tpu.memory_space<vmem>>, vector<1x128x256xbf16>
    %79 = vector.shape_cast %78 : vector<1x128x256xbf16> to vector<128x256xbf16>
    %cst_79 = arith.constant dense<0.000000e+00> : vector<10x256xf32>
    %80 = tpu.matmul %77, %79, %cst_79 {dimension_numbers = #tpu.dot_dimension_numbers<[1], [0], [0], [1], [0, 0, 1, 1], [], []>} : vector<10x128xbf16>, vector<128x256xbf16>, vector<10x256xf32> -> vector<10x256xf32>
    %81 = vector.extract_strided_slice %80 {offsets = [1, 0], sizes = [8, 256], strides = [1, 1]} : vector<10x256xf32> to vector<8x256xf32>
    %82 = arith.addf %75, %81 : vector<8x256xf32>
    %c0_80 = arith.constant 0 : index
    %c0_81 = arith.constant 0 : index
    %c20_82 = arith.constant 20 : index
    %c0_83 = arith.constant 0 : index
    %83 = vector.load %arg2[%c0_80, %c0_81, %c20_82, %c0_83] : memref<1x1x40x144xbf16, #tpu.memory_space<vmem>>, vector<1x1x10x128xbf16>
    %84 = vector.shape_cast %83 : vector<1x1x10x128xbf16> to vector<10x128xbf16>
    %c12 = arith.constant 12 : index
    %c0_84 = arith.constant 0 : index
    %c0_85 = arith.constant 0 : index
    %85 = vector.load %arg3[%c12, %c0_84, %c0_85] : memref<16x128x256xbf16, #tpu.memory_space<vmem>>, vector<1x128x256xbf16>
    %86 = vector.shape_cast %85 : vector<1x128x256xbf16> to vector<128x256xbf16>
    %cst_86 = arith.constant dense<0.000000e+00> : vector<10x256xf32>
    %87 = tpu.matmul %84, %86, %cst_86 {dimension_numbers = #tpu.dot_dimension_numbers<[1], [0], [0], [1], [0, 0, 1, 1], [], []>} : vector<10x128xbf16>, vector<128x256xbf16>, vector<10x256xf32> -> vector<10x256xf32>
    %88 = vector.extract_strided_slice %87 {offsets = [1, 0], sizes = [8, 256], strides = [1, 1]} : vector<10x256xf32> to vector<8x256xf32>
    %89 = arith.addf %82, %88 : vector<8x256xf32>
    %c0_87 = arith.constant 0 : index
    %c0_88 = arith.constant 0 : index
    %c30_89 = arith.constant 30 : index
    %c0_90 = arith.constant 0 : index
    %90 = vector.load %arg2[%c0_87, %c0_88, %c30_89, %c0_90] : memref<1x1x40x144xbf16, #tpu.memory_space<vmem>>, vector<1x1x10x128xbf16>
    %91 = vector.shape_cast %90 : vector<1x1x10x128xbf16> to vector<10x128xbf16>
    %c13 = arith.constant 13 : index
    %c0_91 = arith.constant 0 : index
    %c0_92 = arith.constant 0 : index
    %92 = vector.load %arg3[%c13, %c0_91, %c0_92] : memref<16x128x256xbf16, #tpu.memory_space<vmem>>, vector<1x128x256xbf16>
    %93 = vector.shape_cast %92 : vector<1x128x256xbf16> to vector<128x256xbf16>
    %cst_93 = arith.constant dense<0.000000e+00> : vector<10x256xf32>
    %94 = tpu.matmul %91, %93, %cst_93 {dimension_numbers = #tpu.dot_dimension_numbers<[1], [0], [0], [1], [0, 0, 1, 1], [], []>} : vector<10x128xbf16>, vector<128x256xbf16>, vector<10x256xf32> -> vector<10x256xf32>
    %95 = vector.extract_strided_slice %94 {offsets = [1, 0], sizes = [8, 256], strides = [1, 1]} : vector<10x256xf32> to vector<8x256xf32>
    %96 = arith.addf %89, %95 : vector<8x256xf32>
    %c0_94 = arith.constant 0 : index
    %c0_95 = arith.constant 0 : index
    %c20_96 = arith.constant 20 : index
    %c16_97 = arith.constant 16 : index
    %97 = vector.load %arg2[%c0_94, %c0_95, %c20_96, %c16_97] : memref<1x1x40x144xbf16, #tpu.memory_space<vmem>>, vector<1x1x10x128xbf16>
    %98 = vector.shape_cast %97 : vector<1x1x10x128xbf16> to vector<10x128xbf16>
    %c14 = arith.constant 14 : index
    %c0_98 = arith.constant 0 : index
    %c0_99 = arith.constant 0 : index
    %99 = vector.load %arg3[%c14, %c0_98, %c0_99] : memref<16x128x256xbf16, #tpu.memory_space<vmem>>, vector<1x128x256xbf16>
    %100 = vector.shape_cast %99 : vector<1x128x256xbf16> to vector<128x256xbf16>
    %cst_100 = arith.constant dense<0.000000e+00> : vector<10x256xf32>
    %101 = tpu.matmul %98, %100, %cst_100 {dimension_numbers = #tpu.dot_dimension_numbers<[1], [0], [0], [1], [0, 0, 1, 1], [], []>} : vector<10x128xbf16>, vector<128x256xbf16>, vector<10x256xf32> -> vector<10x256xf32>
    %102 = vector.extract_strided_slice %101 {offsets = [1, 0], sizes = [8, 256], strides = [1, 1]} : vector<10x256xf32> to vector<8x256xf32>
    %103 = arith.addf %96, %102 : vector<8x256xf32>
    %c0_101 = arith.constant 0 : index
    %c0_102 = arith.constant 0 : index
    %c30_103 = arith.constant 30 : index
    %c16_104 = arith.constant 16 : index
    %104 = vector.load %arg2[%c0_101, %c0_102, %c30_103, %c16_104] : memref<1x1x40x144xbf16, #tpu.memory_space<vmem>>, vector<1x1x10x128xbf16>
    %105 = vector.shape_cast %104 : vector<1x1x10x128xbf16> to vector<10x128xbf16>
    %c15 = arith.constant 15 : index
    %c0_105 = arith.constant 0 : index
    %c0_106 = arith.constant 0 : index
    %106 = vector.load %arg3[%c15, %c0_105, %c0_106] : memref<16x128x256xbf16, #tpu.memory_space<vmem>>, vector<1x128x256xbf16>
    %107 = vector.shape_cast %106 : vector<1x128x256xbf16> to vector<128x256xbf16>
    %cst_107 = arith.constant dense<0.000000e+00> : vector<10x256xf32>
    %108 = tpu.matmul %105, %107, %cst_107 {dimension_numbers = #tpu.dot_dimension_numbers<[1], [0], [0], [1], [0, 0, 1, 1], [], []>} : vector<10x128xbf16>, vector<128x256xbf16>, vector<10x256xf32> -> vector<10x256xf32>
    %109 = vector.extract_strided_slice %108 {offsets = [1, 0], sizes = [8, 256], strides = [1, 1]} : vector<10x256xf32> to vector<8x256xf32>
    %110 = arith.addf %103, %109 : vector<8x256xf32>
    %cst_108 = arith.constant dense<0.000000e+00> : vector<256xf32>
    %111 = vector.multi_reduction <add>, %110, %cst_108 [0] : vector<8x256xf32> to vector<256xf32>
    %112 = vector.shape_cast %111 : vector<256xf32> to vector<1x256xf32>
    %c0_109 = arith.constant 0 : index
    %c0_110 = arith.constant 0 : index
    %c0_111 = arith.constant 0 : index
    %c0_112 = arith.constant 0 : index
    %113 = vector.load %arg5[%c0_109, %c0_110, %c0_111, %c0_112] : memref<1x1x2x256xf32, #tpu.memory_space<vmem>>, vector<1x1x1x256xf32>
    %114 = vector.shape_cast %113 : vector<1x1x1x256xf32> to vector<1x256xf32>
    %115 = vector.shape_cast %112 : vector<1x256xf32> to vector<1x1x1x256xf32>
    tpu.vector_store %arg5[%c0_109, %c0_110, %c0_111, %c0_112], %115 {strides = array<i32>} : memref<1x1x2x256xf32, #tpu.memory_space<vmem>>, vector<1x1x1x256xf32>,
    %116 = arith.mulf %110, %110 : vector<8x256xf32>
    %cst_113 = arith.constant dense<0.000000e+00> : vector<256xf32>
    %117 = vector.multi_reduction <add>, %116, %cst_113 [0] : vector<8x256xf32> to vector<256xf32>
    %118 = vector.shape_cast %117 : vector<256xf32> to vector<1x256xf32>
    %c0_114 = arith.constant 0 : index
    %c0_115 = arith.constant 0 : index
    %c1_116 = arith.constant 1 : index
    %c0_117 = arith.constant 0 : index
    %119 = vector.load %arg5[%c0_114, %c0_115, %c1_116, %c0_117] : memref<1x1x2x256xf32, #tpu.memory_space<vmem>>, vector<1x1x1x256xf32>
    %120 = vector.shape_cast %119 : vector<1x1x1x256xf32> to vector<1x256xf32>
    %121 = vector.shape_cast %118 : vector<1x256xf32> to vector<1x1x1x256xf32>
    tpu.vector_store %arg5[%c0_114, %c0_115, %c1_116, %c0_117], %121 {strides = array<i32>} : memref<1x1x2x256xf32, #tpu.memory_space<vmem>>, vector<1x1x1x256xf32>,
    %122 = arith.truncf %110 : vector<8x256xf32> to vector<8x256xbf16>
    %c0_118 = arith.constant 0 : index
    %c0_119 = arith.constant 0 : index
    %c0_120 = arith.constant 0 : index
    %c0_121 = arith.constant 0 : index
    %123 = vector.load %arg4[%c0_118, %c0_119, %c0_120, %c0_121] : memref<1x1x8x256xbf16, #tpu.memory_space<vmem>>, vector<1x1x8x256xbf16>
    %124 = vector.shape_cast %123 : vector<1x1x8x256xbf16> to vector<8x256xbf16>
    %125 = vector.shape_cast %122 : vector<8x256xbf16> to vector<1x1x8x256xbf16>
    tpu.vector_store %arg4[%c0_118, %c0_119, %c0_120, %c0_121], %125 {strides = array<i32>} : memref<1x1x8x256xbf16, #tpu.memory_space<vmem>>, vector<1x1x8x256xbf16>,
    return
  }
  func.func @transform_0(%arg0: i32, %arg1: i32) -> (i32, i32, i32, i32) {
    %c0_i32 = arith.constant 0 : i32
    %c0_i32_0 = arith.constant 0 : i32
    %c0_i32_1 = arith.constant 0 : i32
    return %arg0, %arg1, %c0_i32, %c0_i32_0 : i32, i32, i32, i32
  }
  func.func @transform_1(%arg0: i32, %arg1: i32) -> (i32, i32, i32) {
    %c0_i32 = arith.constant 0 : i32
    %c0_i32_0 = arith.constant 0 : i32
    %c0_i32_1 = arith.constant 0 : i32
    %c0_i32_2 = arith.constant 0 : i32
    return %c0_i32, %c0_i32_0, %c0_i32_1 : i32, i32, i32
  }
  func.func @transform_2(%arg0: i32, %arg1: i32) -> (i32, i32, i32, i32) {
    %c0_i32 = arith.constant 0 : i32
    %c0_i32_0 = arith.constant 0 : i32
    %c0_i32_1 = arith.constant 0 : i32
    return %arg0, %arg1, %c0_i32, %c0_i32_0 : i32, i32, i32, i32
  }
  func.func @transform_3(%arg0: i32, %arg1: i32) -> (i32, i32, i32, i32) {
    %c0_i32 = arith.constant 0 : i32
    %c0_i32_0 = arith.constant 0 : i32
    %c0_i32_1 = arith.constant 0 : i32
    return %arg0, %arg1, %c0_i32, %c0_i32_0 : i32, i32, i32, i32
  }
}

module attributes {stable_mosaic.version = 11 : i64} {
  func.func @_bn_leakyrelu_kernel(%arg0: i32, %arg1: i32, %arg2: memref<1x1x8x256xbf16, #tpu.memory_space<vmem>>, %arg3: memref<1x256xf32, #tpu.memory_space<vmem>>, %arg4: memref<1x256xf32, #tpu.memory_space<vmem>>, %arg5: memref<1x1x8x256xbf16, #tpu.memory_space<vmem>>) attributes {dimension_semantics = [#tpu.dimension_semantics<parallel>, #tpu.dimension_semantics<parallel>], iteration_bounds = array<i64: 2, 1>, scalar_prefetch = 0 : i64, scratch_operands = 0 : i64, tpu.core_type = #tpu.core_type<tc>, window_params = [{transform_indices = @transform_0, window_bounds = array<i64: 1, 1, 8, 256>}, {pipeline_mode = #tpu.pipeline_mode<synchronous>, transform_indices = @transform_1, window_bounds = array<i64: 1, 256>}, {pipeline_mode = #tpu.pipeline_mode<synchronous>, transform_indices = @transform_2, window_bounds = array<i64: 1, 256>}, {transform_indices = @transform_3, window_bounds = array<i64: 1, 1, 8, 256>}]} {
    %c0 = arith.constant 0 : index
    %c0_0 = arith.constant 0 : index
    %c0_1 = arith.constant 0 : index
    %c0_2 = arith.constant 0 : index
    %0 = vector.load %arg2[%c0, %c0_0, %c0_1, %c0_2] : memref<1x1x8x256xbf16, #tpu.memory_space<vmem>>, vector<1x1x8x256xbf16>
    %1 = vector.shape_cast %0 : vector<1x1x8x256xbf16> to vector<8x256xbf16>
    %2 = arith.extf %1 : vector<8x256xbf16> to vector<8x256xf32>
    %c0_3 = arith.constant 0 : index
    %c0_4 = arith.constant 0 : index
    %3 = vector.load %arg3[%c0_3, %c0_4] : memref<1x256xf32, #tpu.memory_space<vmem>>, vector<1x256xf32>
    %4 = vector.broadcast %3 : vector<1x256xf32> to vector<8x256xf32>
    %5 = arith.mulf %2, %4 : vector<8x256xf32>
    %c0_5 = arith.constant 0 : index
    %c0_6 = arith.constant 0 : index
    %6 = vector.load %arg4[%c0_5, %c0_6] : memref<1x256xf32, #tpu.memory_space<vmem>>, vector<1x256xf32>
    %7 = vector.broadcast %6 : vector<1x256xf32> to vector<8x256xf32>
    %8 = arith.addf %5, %7 : vector<8x256xf32>
    %cst = arith.constant 0.000000e+00 : f32
    %9 = vector.broadcast %cst : f32 to vector<8x256xf32>
    %10 = arith.cmpf oge, %8, %9 : vector<8x256xf32>
    %cst_7 = arith.constant 2.000000e-01 : f32
    %11 = vector.broadcast %cst_7 : f32 to vector<8x256xf32>
    %12 = arith.mulf %11, %8 : vector<8x256xf32>
    %13 = arith.select %10, %8, %12 : vector<8x256xi1>, vector<8x256xf32>
    %14 = arith.truncf %13 : vector<8x256xf32> to vector<8x256xbf16>
    %c0_8 = arith.constant 0 : index
    %c0_9 = arith.constant 0 : index
    %c0_10 = arith.constant 0 : index
    %c0_11 = arith.constant 0 : index
    %15 = vector.load %arg5[%c0_8, %c0_9, %c0_10, %c0_11] : memref<1x1x8x256xbf16, #tpu.memory_space<vmem>>, vector<1x1x8x256xbf16>
    %16 = vector.shape_cast %15 : vector<1x1x8x256xbf16> to vector<8x256xbf16>
    %17 = vector.shape_cast %14 : vector<8x256xbf16> to vector<1x1x8x256xbf16>
    tpu.vector_store %arg5[%c0_8, %c0_9, %c0_10, %c0_11], %17 {strides = array<i32>} : memref<1x1x8x256xbf16, #tpu.memory_space<vmem>>, vector<1x1x8x256xbf16>,
    return
  }
  func.func @transform_0(%arg0: i32, %arg1: i32) -> (i32, i32, i32, i32) {
    %c0_i32 = arith.constant 0 : i32
    %c0_i32_0 = arith.constant 0 : i32
    %c0_i32_1 = arith.constant 0 : i32
    return %arg0, %arg1, %c0_i32, %c0_i32_0 : i32, i32, i32, i32
  }
  func.func @transform_1(%arg0: i32, %arg1: i32) -> (i32, i32) {
    %c0_i32 = arith.constant 0 : i32
    %c0_i32_0 = arith.constant 0 : i32
    %c0_i32_1 = arith.constant 0 : i32
    return %c0_i32, %c0_i32_0 : i32, i32
  }
  func.func @transform_2(%arg0: i32, %arg1: i32) -> (i32, i32) {
    %c0_i32 = arith.constant 0 : i32
    %c0_i32_0 = arith.constant 0 : i32
    %c0_i32_1 = arith.constant 0 : i32
    return %c0_i32, %c0_i32_0 : i32, i32
  }
  func.func @transform_3(%arg0: i32, %arg1: i32) -> (i32, i32, i32, i32) {
    %c0_i32 = arith.constant 0 : i32
    %c0_i32_0 = arith.constant 0 : i32
    %c0_i32_1 = arith.constant 0 : i32
    return %arg0, %arg1, %c0_i32, %c0_i32_0 : i32, i32, i32, i32
  }
}

module attributes {stable_mosaic.version = 11 : i64} {
  func.func @_conv4x4s2_kernel(%arg0: i32, %arg1: i32, %arg2: memref<1x1x24x160xbf16, #tpu.memory_space<vmem>>, %arg3: memref<16x128x256xbf16, #tpu.memory_space<vmem>>, %arg4: memref<1x1x4x256xbf16, #tpu.memory_space<vmem>>, %arg5: memref<1x1x2x256xf32, #tpu.memory_space<vmem>>) attributes {dimension_semantics = [#tpu.dimension_semantics<parallel>, #tpu.dimension_semantics<parallel>], iteration_bounds = array<i64: 2, 1>, scalar_prefetch = 0 : i64, scratch_operands = 0 : i64, tpu.core_type = #tpu.core_type<tc>, window_params = [{transform_indices = @transform_0, window_bounds = array<i64: 1, 1, 24, 160>}, {pipeline_mode = #tpu.pipeline_mode<synchronous>, transform_indices = @transform_1, window_bounds = array<i64: 16, 128, 256>}, {transform_indices = @transform_2, window_bounds = array<i64: 1, 1, 4, 256>}, {transform_indices = @transform_3, window_bounds = array<i64: 1, 1, 2, 256>}]} {
    %c0 = arith.constant 0 : index
    %c0_0 = arith.constant 0 : index
    %c0_1 = arith.constant 0 : index
    %c0_2 = arith.constant 0 : index
    %0 = vector.load %arg2[%c0, %c0_0, %c0_1, %c0_2] : memref<1x1x24x160xbf16, #tpu.memory_space<vmem>>, vector<1x1x6x128xbf16>
    %1 = vector.shape_cast %0 : vector<1x1x6x128xbf16> to vector<6x128xbf16>
    %c0_3 = arith.constant 0 : index
    %c0_4 = arith.constant 0 : index
    %c0_5 = arith.constant 0 : index
    %2 = vector.load %arg3[%c0_3, %c0_4, %c0_5] : memref<16x128x256xbf16, #tpu.memory_space<vmem>>, vector<1x128x256xbf16>
    %3 = vector.shape_cast %2 : vector<1x128x256xbf16> to vector<128x256xbf16>
    %cst = arith.constant dense<0.000000e+00> : vector<6x256xf32>
    %4 = tpu.matmul %1, %3, %cst {dimension_numbers = #tpu.dot_dimension_numbers<[1], [0], [0], [1], [0, 0, 1, 1], [], []>} : vector<6x128xbf16>, vector<128x256xbf16>, vector<6x256xf32> -> vector<6x256xf32>
    %5 = vector.extract_strided_slice %4 {offsets = [0, 0], sizes = [4, 256], strides = [1, 1]} : vector<6x256xf32> to vector<4x256xf32>
    %c0_6 = arith.constant 0 : index
    %c0_7 = arith.constant 0 : index
    %c6 = arith.constant 6 : index
    %c0_8 = arith.constant 0 : index
    %6 = vector.load %arg2[%c0_6, %c0_7, %c6, %c0_8] : memref<1x1x24x160xbf16, #tpu.memory_space<vmem>>, vector<1x1x6x128xbf16>
    %7 = vector.shape_cast %6 : vector<1x1x6x128xbf16> to vector<6x128xbf16>
    %c1 = arith.constant 1 : index
    %c0_9 = arith.constant 0 : index
    %c0_10 = arith.constant 0 : index
    %8 = vector.load %arg3[%c1, %c0_9, %c0_10] : memref<16x128x256xbf16, #tpu.memory_space<vmem>>, vector<1x128x256xbf16>
    %9 = vector.shape_cast %8 : vector<1x128x256xbf16> to vector<128x256xbf16>
    %cst_11 = arith.constant dense<0.000000e+00> : vector<6x256xf32>
    %10 = tpu.matmul %7, %9, %cst_11 {dimension_numbers = #tpu.dot_dimension_numbers<[1], [0], [0], [1], [0, 0, 1, 1], [], []>} : vector<6x128xbf16>, vector<128x256xbf16>, vector<6x256xf32> -> vector<6x256xf32>
    %11 = vector.extract_strided_slice %10 {offsets = [0, 0], sizes = [4, 256], strides = [1, 1]} : vector<6x256xf32> to vector<4x256xf32>
    %12 = arith.addf %5, %11 : vector<4x256xf32>
    %c0_12 = arith.constant 0 : index
    %c0_13 = arith.constant 0 : index
    %c0_14 = arith.constant 0 : index
    %c32 = arith.constant 32 : index
    %13 = vector.load %arg2[%c0_12, %c0_13, %c0_14, %c32] : memref<1x1x24x160xbf16, #tpu.memory_space<vmem>>, vector<1x1x6x128xbf16>
    %14 = vector.shape_cast %13 : vector<1x1x6x128xbf16> to vector<6x128xbf16>
    %c2 = arith.constant 2 : index
    %c0_15 = arith.constant 0 : index
    %c0_16 = arith.constant 0 : index
    %15 = vector.load %arg3[%c2, %c0_15, %c0_16] : memref<16x128x256xbf16, #tpu.memory_space<vmem>>, vector<1x128x256xbf16>
    %16 = vector.shape_cast %15 : vector<1x128x256xbf16> to vector<128x256xbf16>
    %cst_17 = arith.constant dense<0.000000e+00> : vector<6x256xf32>
    %17 = tpu.matmul %14, %16, %cst_17 {dimension_numbers = #tpu.dot_dimension_numbers<[1], [0], [0], [1], [0, 0, 1, 1], [], []>} : vector<6x128xbf16>, vector<128x256xbf16>, vector<6x256xf32> -> vector<6x256xf32>
    %18 = vector.extract_strided_slice %17 {offsets = [0, 0], sizes = [4, 256], strides = [1, 1]} : vector<6x256xf32> to vector<4x256xf32>
    %19 = arith.addf %12, %18 : vector<4x256xf32>
    %c0_18 = arith.constant 0 : index
    %c0_19 = arith.constant 0 : index
    %c6_20 = arith.constant 6 : index
    %c32_21 = arith.constant 32 : index
    %20 = vector.load %arg2[%c0_18, %c0_19, %c6_20, %c32_21] : memref<1x1x24x160xbf16, #tpu.memory_space<vmem>>, vector<1x1x6x128xbf16>
    %21 = vector.shape_cast %20 : vector<1x1x6x128xbf16> to vector<6x128xbf16>
    %c3 = arith.constant 3 : index
    %c0_22 = arith.constant 0 : index
    %c0_23 = arith.constant 0 : index
    %22 = vector.load %arg3[%c3, %c0_22, %c0_23] : memref<16x128x256xbf16, #tpu.memory_space<vmem>>, vector<1x128x256xbf16>
    %23 = vector.shape_cast %22 : vector<1x128x256xbf16> to vector<128x256xbf16>
    %cst_24 = arith.constant dense<0.000000e+00> : vector<6x256xf32>
    %24 = tpu.matmul %21, %23, %cst_24 {dimension_numbers = #tpu.dot_dimension_numbers<[1], [0], [0], [1], [0, 0, 1, 1], [], []>} : vector<6x128xbf16>, vector<128x256xbf16>, vector<6x256xf32> -> vector<6x256xf32>
    %25 = vector.extract_strided_slice %24 {offsets = [0, 0], sizes = [4, 256], strides = [1, 1]} : vector<6x256xf32> to vector<4x256xf32>
    %26 = arith.addf %19, %25 : vector<4x256xf32>
    %c0_25 = arith.constant 0 : index
    %c0_26 = arith.constant 0 : index
    %c12 = arith.constant 12 : index
    %c0_27 = arith.constant 0 : index
    %27 = vector.load %arg2[%c0_25, %c0_26, %c12, %c0_27] : memref<1x1x24x160xbf16, #tpu.memory_space<vmem>>, vector<1x1x6x128xbf16>
    %28 = vector.shape_cast %27 : vector<1x1x6x128xbf16> to vector<6x128xbf16>
    %c4 = arith.constant 4 : index
    %c0_28 = arith.constant 0 : index
    %c0_29 = arith.constant 0 : index
    %29 = vector.load %arg3[%c4, %c0_28, %c0_29] : memref<16x128x256xbf16, #tpu.memory_space<vmem>>, vector<1x128x256xbf16>
    %30 = vector.shape_cast %29 : vector<1x128x256xbf16> to vector<128x256xbf16>
    %cst_30 = arith.constant dense<0.000000e+00> : vector<6x256xf32>
    %31 = tpu.matmul %28, %30, %cst_30 {dimension_numbers = #tpu.dot_dimension_numbers<[1], [0], [0], [1], [0, 0, 1, 1], [], []>} : vector<6x128xbf16>, vector<128x256xbf16>, vector<6x256xf32> -> vector<6x256xf32>
    %32 = vector.extract_strided_slice %31 {offsets = [0, 0], sizes = [4, 256], strides = [1, 1]} : vector<6x256xf32> to vector<4x256xf32>
    %33 = arith.addf %26, %32 : vector<4x256xf32>
    %c0_31 = arith.constant 0 : index
    %c0_32 = arith.constant 0 : index
    %c18 = arith.constant 18 : index
    %c0_33 = arith.constant 0 : index
    %34 = vector.load %arg2[%c0_31, %c0_32, %c18, %c0_33] : memref<1x1x24x160xbf16, #tpu.memory_space<vmem>>, vector<1x1x6x128xbf16>
    %35 = vector.shape_cast %34 : vector<1x1x6x128xbf16> to vector<6x128xbf16>
    %c5 = arith.constant 5 : index
    %c0_34 = arith.constant 0 : index
    %c0_35 = arith.constant 0 : index
    %36 = vector.load %arg3[%c5, %c0_34, %c0_35] : memref<16x128x256xbf16, #tpu.memory_space<vmem>>, vector<1x128x256xbf16>
    %37 = vector.shape_cast %36 : vector<1x128x256xbf16> to vector<128x256xbf16>
    %cst_36 = arith.constant dense<0.000000e+00> : vector<6x256xf32>
    %38 = tpu.matmul %35, %37, %cst_36 {dimension_numbers = #tpu.dot_dimension_numbers<[1], [0], [0], [1], [0, 0, 1, 1], [], []>} : vector<6x128xbf16>, vector<128x256xbf16>, vector<6x256xf32> -> vector<6x256xf32>
    %39 = vector.extract_strided_slice %38 {offsets = [0, 0], sizes = [4, 256], strides = [1, 1]} : vector<6x256xf32> to vector<4x256xf32>
    %40 = arith.addf %33, %39 : vector<4x256xf32>
    %c0_37 = arith.constant 0 : index
    %c0_38 = arith.constant 0 : index
    %c12_39 = arith.constant 12 : index
    %c32_40 = arith.constant 32 : index
    %41 = vector.load %arg2[%c0_37, %c0_38, %c12_39, %c32_40] : memref<1x1x24x160xbf16, #tpu.memory_space<vmem>>, vector<1x1x6x128xbf16>
    %42 = vector.shape_cast %41 : vector<1x1x6x128xbf16> to vector<6x128xbf16>
    %c6_41 = arith.constant 6 : index
    %c0_42 = arith.constant 0 : index
    %c0_43 = arith.constant 0 : index
    %43 = vector.load %arg3[%c6_41, %c0_42, %c0_43] : memref<16x128x256xbf16, #tpu.memory_space<vmem>>, vector<1x128x256xbf16>
    %44 = vector.shape_cast %43 : vector<1x128x256xbf16> to vector<128x256xbf16>
    %cst_44 = arith.constant dense<0.000000e+00> : vector<6x256xf32>
    %45 = tpu.matmul %42, %44, %cst_44 {dimension_numbers = #tpu.dot_dimension_numbers<[1], [0], [0], [1], [0, 0, 1, 1], [], []>} : vector<6x128xbf16>, vector<128x256xbf16>, vector<6x256xf32> -> vector<6x256xf32>
    %46 = vector.extract_strided_slice %45 {offsets = [0, 0], sizes = [4, 256], strides = [1, 1]} : vector<6x256xf32> to vector<4x256xf32>
    %47 = arith.addf %40, %46 : vector<4x256xf32>
    %c0_45 = arith.constant 0 : index
    %c0_46 = arith.constant 0 : index
    %c18_47 = arith.constant 18 : index
    %c32_48 = arith.constant 32 : index
    %48 = vector.load %arg2[%c0_45, %c0_46, %c18_47, %c32_48] : memref<1x1x24x160xbf16, #tpu.memory_space<vmem>>, vector<1x1x6x128xbf16>
    %49 = vector.shape_cast %48 : vector<1x1x6x128xbf16> to vector<6x128xbf16>
    %c7 = arith.constant 7 : index
    %c0_49 = arith.constant 0 : index
    %c0_50 = arith.constant 0 : index
    %50 = vector.load %arg3[%c7, %c0_49, %c0_50] : memref<16x128x256xbf16, #tpu.memory_space<vmem>>, vector<1x128x256xbf16>
    %51 = vector.shape_cast %50 : vector<1x128x256xbf16> to vector<128x256xbf16>
    %cst_51 = arith.constant dense<0.000000e+00> : vector<6x256xf32>
    %52 = tpu.matmul %49, %51, %cst_51 {dimension_numbers = #tpu.dot_dimension_numbers<[1], [0], [0], [1], [0, 0, 1, 1], [], []>} : vector<6x128xbf16>, vector<128x256xbf16>, vector<6x256xf32> -> vector<6x256xf32>
    %53 = vector.extract_strided_slice %52 {offsets = [0, 0], sizes = [4, 256], strides = [1, 1]} : vector<6x256xf32> to vector<4x256xf32>
    %54 = arith.addf %47, %53 : vector<4x256xf32>
    %c0_52 = arith.constant 0 : index
    %c0_53 = arith.constant 0 : index
    %c0_54 = arith.constant 0 : index
    %c0_55 = arith.constant 0 : index
    %55 = vector.load %arg2[%c0_52, %c0_53, %c0_54, %c0_55] : memref<1x1x24x160xbf16, #tpu.memory_space<vmem>>, vector<1x1x6x128xbf16>
    %56 = vector.shape_cast %55 : vector<1x1x6x128xbf16> to vector<6x128xbf16>
    %c8 = arith.constant 8 : index
    %c0_56 = arith.constant 0 : index
    %c0_57 = arith.constant 0 : index
    %57 = vector.load %arg3[%c8, %c0_56, %c0_57] : memref<16x128x256xbf16, #tpu.memory_space<vmem>>, vector<1x128x256xbf16>
    %58 = vector.shape_cast %57 : vector<1x128x256xbf16> to vector<128x256xbf16>
    %cst_58 = arith.constant dense<0.000000e+00> : vector<6x256xf32>
    %59 = tpu.matmul %56, %58, %cst_58 {dimension_numbers = #tpu.dot_dimension_numbers<[1], [0], [0], [1], [0, 0, 1, 1], [], []>} : vector<6x128xbf16>, vector<128x256xbf16>, vector<6x256xf32> -> vector<6x256xf32>
    %60 = vector.extract_strided_slice %59 {offsets = [1, 0], sizes = [4, 256], strides = [1, 1]} : vector<6x256xf32> to vector<4x256xf32>
    %61 = arith.addf %54, %60 : vector<4x256xf32>
    %c0_59 = arith.constant 0 : index
    %c0_60 = arith.constant 0 : index
    %c6_61 = arith.constant 6 : index
    %c0_62 = arith.constant 0 : index
    %62 = vector.load %arg2[%c0_59, %c0_60, %c6_61, %c0_62] : memref<1x1x24x160xbf16, #tpu.memory_space<vmem>>, vector<1x1x6x128xbf16>
    %63 = vector.shape_cast %62 : vector<1x1x6x128xbf16> to vector<6x128xbf16>
    %c9 = arith.constant 9 : index
    %c0_63 = arith.constant 0 : index
    %c0_64 = arith.constant 0 : index
    %64 = vector.load %arg3[%c9, %c0_63, %c0_64] : memref<16x128x256xbf16, #tpu.memory_space<vmem>>, vector<1x128x256xbf16>
    %65 = vector.shape_cast %64 : vector<1x128x256xbf16> to vector<128x256xbf16>
    %cst_65 = arith.constant dense<0.000000e+00> : vector<6x256xf32>
    %66 = tpu.matmul %63, %65, %cst_65 {dimension_numbers = #tpu.dot_dimension_numbers<[1], [0], [0], [1], [0, 0, 1, 1], [], []>} : vector<6x128xbf16>, vector<128x256xbf16>, vector<6x256xf32> -> vector<6x256xf32>
    %67 = vector.extract_strided_slice %66 {offsets = [1, 0], sizes = [4, 256], strides = [1, 1]} : vector<6x256xf32> to vector<4x256xf32>
    %68 = arith.addf %61, %67 : vector<4x256xf32>
    %c0_66 = arith.constant 0 : index
    %c0_67 = arith.constant 0 : index
    %c0_68 = arith.constant 0 : index
    %c32_69 = arith.constant 32 : index
    %69 = vector.load %arg2[%c0_66, %c0_67, %c0_68, %c32_69] : memref<1x1x24x160xbf16, #tpu.memory_space<vmem>>, vector<1x1x6x128xbf16>
    %70 = vector.shape_cast %69 : vector<1x1x6x128xbf16> to vector<6x128xbf16>
    %c10 = arith.constant 10 : index
    %c0_70 = arith.constant 0 : index
    %c0_71 = arith.constant 0 : index
    %71 = vector.load %arg3[%c10, %c0_70, %c0_71] : memref<16x128x256xbf16, #tpu.memory_space<vmem>>, vector<1x128x256xbf16>
    %72 = vector.shape_cast %71 : vector<1x128x256xbf16> to vector<128x256xbf16>
    %cst_72 = arith.constant dense<0.000000e+00> : vector<6x256xf32>
    %73 = tpu.matmul %70, %72, %cst_72 {dimension_numbers = #tpu.dot_dimension_numbers<[1], [0], [0], [1], [0, 0, 1, 1], [], []>} : vector<6x128xbf16>, vector<128x256xbf16>, vector<6x256xf32> -> vector<6x256xf32>
    %74 = vector.extract_strided_slice %73 {offsets = [1, 0], sizes = [4, 256], strides = [1, 1]} : vector<6x256xf32> to vector<4x256xf32>
    %75 = arith.addf %68, %74 : vector<4x256xf32>
    %c0_73 = arith.constant 0 : index
    %c0_74 = arith.constant 0 : index
    %c6_75 = arith.constant 6 : index
    %c32_76 = arith.constant 32 : index
    %76 = vector.load %arg2[%c0_73, %c0_74, %c6_75, %c32_76] : memref<1x1x24x160xbf16, #tpu.memory_space<vmem>>, vector<1x1x6x128xbf16>
    %77 = vector.shape_cast %76 : vector<1x1x6x128xbf16> to vector<6x128xbf16>
    %c11 = arith.constant 11 : index
    %c0_77 = arith.constant 0 : index
    %c0_78 = arith.constant 0 : index
    %78 = vector.load %arg3[%c11, %c0_77, %c0_78] : memref<16x128x256xbf16, #tpu.memory_space<vmem>>, vector<1x128x256xbf16>
    %79 = vector.shape_cast %78 : vector<1x128x256xbf16> to vector<128x256xbf16>
    %cst_79 = arith.constant dense<0.000000e+00> : vector<6x256xf32>
    %80 = tpu.matmul %77, %79, %cst_79 {dimension_numbers = #tpu.dot_dimension_numbers<[1], [0], [0], [1], [0, 0, 1, 1], [], []>} : vector<6x128xbf16>, vector<128x256xbf16>, vector<6x256xf32> -> vector<6x256xf32>
    %81 = vector.extract_strided_slice %80 {offsets = [1, 0], sizes = [4, 256], strides = [1, 1]} : vector<6x256xf32> to vector<4x256xf32>
    %82 = arith.addf %75, %81 : vector<4x256xf32>
    %c0_80 = arith.constant 0 : index
    %c0_81 = arith.constant 0 : index
    %c12_82 = arith.constant 12 : index
    %c0_83 = arith.constant 0 : index
    %83 = vector.load %arg2[%c0_80, %c0_81, %c12_82, %c0_83] : memref<1x1x24x160xbf16, #tpu.memory_space<vmem>>, vector<1x1x6x128xbf16>
    %84 = vector.shape_cast %83 : vector<1x1x6x128xbf16> to vector<6x128xbf16>
    %c12_84 = arith.constant 12 : index
    %c0_85 = arith.constant 0 : index
    %c0_86 = arith.constant 0 : index
    %85 = vector.load %arg3[%c12_84, %c0_85, %c0_86] : memref<16x128x256xbf16, #tpu.memory_space<vmem>>, vector<1x128x256xbf16>
    %86 = vector.shape_cast %85 : vector<1x128x256xbf16> to vector<128x256xbf16>
    %cst_87 = arith.constant dense<0.000000e+00> : vector<6x256xf32>
    %87 = tpu.matmul %84, %86, %cst_87 {dimension_numbers = #tpu.dot_dimension_numbers<[1], [0], [0], [1], [0, 0, 1, 1], [], []>} : vector<6x128xbf16>, vector<128x256xbf16>, vector<6x256xf32> -> vector<6x256xf32>
    %88 = vector.extract_strided_slice %87 {offsets = [1, 0], sizes = [4, 256], strides = [1, 1]} : vector<6x256xf32> to vector<4x256xf32>
    %89 = arith.addf %82, %88 : vector<4x256xf32>
    %c0_88 = arith.constant 0 : index
    %c0_89 = arith.constant 0 : index
    %c18_90 = arith.constant 18 : index
    %c0_91 = arith.constant 0 : index
    %90 = vector.load %arg2[%c0_88, %c0_89, %c18_90, %c0_91] : memref<1x1x24x160xbf16, #tpu.memory_space<vmem>>, vector<1x1x6x128xbf16>
    %91 = vector.shape_cast %90 : vector<1x1x6x128xbf16> to vector<6x128xbf16>
    %c13 = arith.constant 13 : index
    %c0_92 = arith.constant 0 : index
    %c0_93 = arith.constant 0 : index
    %92 = vector.load %arg3[%c13, %c0_92, %c0_93] : memref<16x128x256xbf16, #tpu.memory_space<vmem>>, vector<1x128x256xbf16>
    %93 = vector.shape_cast %92 : vector<1x128x256xbf16> to vector<128x256xbf16>
    %cst_94 = arith.constant dense<0.000000e+00> : vector<6x256xf32>
    %94 = tpu.matmul %91, %93, %cst_94 {dimension_numbers = #tpu.dot_dimension_numbers<[1], [0], [0], [1], [0, 0, 1, 1], [], []>} : vector<6x128xbf16>, vector<128x256xbf16>, vector<6x256xf32> -> vector<6x256xf32>
    %95 = vector.extract_strided_slice %94 {offsets = [1, 0], sizes = [4, 256], strides = [1, 1]} : vector<6x256xf32> to vector<4x256xf32>
    %96 = arith.addf %89, %95 : vector<4x256xf32>
    %c0_95 = arith.constant 0 : index
    %c0_96 = arith.constant 0 : index
    %c12_97 = arith.constant 12 : index
    %c32_98 = arith.constant 32 : index
    %97 = vector.load %arg2[%c0_95, %c0_96, %c12_97, %c32_98] : memref<1x1x24x160xbf16, #tpu.memory_space<vmem>>, vector<1x1x6x128xbf16>
    %98 = vector.shape_cast %97 : vector<1x1x6x128xbf16> to vector<6x128xbf16>
    %c14 = arith.constant 14 : index
    %c0_99 = arith.constant 0 : index
    %c0_100 = arith.constant 0 : index
    %99 = vector.load %arg3[%c14, %c0_99, %c0_100] : memref<16x128x256xbf16, #tpu.memory_space<vmem>>, vector<1x128x256xbf16>
    %100 = vector.shape_cast %99 : vector<1x128x256xbf16> to vector<128x256xbf16>
    %cst_101 = arith.constant dense<0.000000e+00> : vector<6x256xf32>
    %101 = tpu.matmul %98, %100, %cst_101 {dimension_numbers = #tpu.dot_dimension_numbers<[1], [0], [0], [1], [0, 0, 1, 1], [], []>} : vector<6x128xbf16>, vector<128x256xbf16>, vector<6x256xf32> -> vector<6x256xf32>
    %102 = vector.extract_strided_slice %101 {offsets = [1, 0], sizes = [4, 256], strides = [1, 1]} : vector<6x256xf32> to vector<4x256xf32>
    %103 = arith.addf %96, %102 : vector<4x256xf32>
    %c0_102 = arith.constant 0 : index
    %c0_103 = arith.constant 0 : index
    %c18_104 = arith.constant 18 : index
    %c32_105 = arith.constant 32 : index
    %104 = vector.load %arg2[%c0_102, %c0_103, %c18_104, %c32_105] : memref<1x1x24x160xbf16, #tpu.memory_space<vmem>>, vector<1x1x6x128xbf16>
    %105 = vector.shape_cast %104 : vector<1x1x6x128xbf16> to vector<6x128xbf16>
    %c15 = arith.constant 15 : index
    %c0_106 = arith.constant 0 : index
    %c0_107 = arith.constant 0 : index
    %106 = vector.load %arg3[%c15, %c0_106, %c0_107] : memref<16x128x256xbf16, #tpu.memory_space<vmem>>, vector<1x128x256xbf16>
    %107 = vector.shape_cast %106 : vector<1x128x256xbf16> to vector<128x256xbf16>
    %cst_108 = arith.constant dense<0.000000e+00> : vector<6x256xf32>
    %108 = tpu.matmul %105, %107, %cst_108 {dimension_numbers = #tpu.dot_dimension_numbers<[1], [0], [0], [1], [0, 0, 1, 1], [], []>} : vector<6x128xbf16>, vector<128x256xbf16>, vector<6x256xf32> -> vector<6x256xf32>
    %109 = vector.extract_strided_slice %108 {offsets = [1, 0], sizes = [4, 256], strides = [1, 1]} : vector<6x256xf32> to vector<4x256xf32>
    %110 = arith.addf %103, %109 : vector<4x256xf32>
    %cst_109 = arith.constant dense<0.000000e+00> : vector<256xf32>
    %111 = vector.multi_reduction <add>, %110, %cst_109 [0] : vector<4x256xf32> to vector<256xf32>
    %112 = vector.shape_cast %111 : vector<256xf32> to vector<1x256xf32>
    %c0_110 = arith.constant 0 : index
    %c0_111 = arith.constant 0 : index
    %c0_112 = arith.constant 0 : index
    %c0_113 = arith.constant 0 : index
    %113 = vector.load %arg5[%c0_110, %c0_111, %c0_112, %c0_113] : memref<1x1x2x256xf32, #tpu.memory_space<vmem>>, vector<1x1x1x256xf32>
    %114 = vector.shape_cast %113 : vector<1x1x1x256xf32> to vector<1x256xf32>
    %115 = vector.shape_cast %112 : vector<1x256xf32> to vector<1x1x1x256xf32>
    tpu.vector_store %arg5[%c0_110, %c0_111, %c0_112, %c0_113], %115 {strides = array<i32>} : memref<1x1x2x256xf32, #tpu.memory_space<vmem>>, vector<1x1x1x256xf32>,
    %116 = arith.mulf %110, %110 : vector<4x256xf32>
    %cst_114 = arith.constant dense<0.000000e+00> : vector<256xf32>
    %117 = vector.multi_reduction <add>, %116, %cst_114 [0] : vector<4x256xf32> to vector<256xf32>
    %118 = vector.shape_cast %117 : vector<256xf32> to vector<1x256xf32>
    %c0_115 = arith.constant 0 : index
    %c0_116 = arith.constant 0 : index
    %c1_117 = arith.constant 1 : index
    %c0_118 = arith.constant 0 : index
    %119 = vector.load %arg5[%c0_115, %c0_116, %c1_117, %c0_118] : memref<1x1x2x256xf32, #tpu.memory_space<vmem>>, vector<1x1x1x256xf32>
    %120 = vector.shape_cast %119 : vector<1x1x1x256xf32> to vector<1x256xf32>
    %121 = vector.shape_cast %118 : vector<1x256xf32> to vector<1x1x1x256xf32>
    tpu.vector_store %arg5[%c0_115, %c0_116, %c1_117, %c0_118], %121 {strides = array<i32>} : memref<1x1x2x256xf32, #tpu.memory_space<vmem>>, vector<1x1x1x256xf32>,
    %122 = arith.truncf %110 : vector<4x256xf32> to vector<4x256xbf16>
    %c0_119 = arith.constant 0 : index
    %c0_120 = arith.constant 0 : index
    %c0_121 = arith.constant 0 : index
    %c0_122 = arith.constant 0 : index
    %123 = vector.load %arg4[%c0_119, %c0_120, %c0_121, %c0_122] : memref<1x1x4x256xbf16, #tpu.memory_space<vmem>>, vector<1x1x4x256xbf16>
    %124 = vector.shape_cast %123 : vector<1x1x4x256xbf16> to vector<4x256xbf16>
    %125 = vector.shape_cast %122 : vector<4x256xbf16> to vector<1x1x4x256xbf16>
    tpu.vector_store %arg4[%c0_119, %c0_120, %c0_121, %c0_122], %125 {strides = array<i32>} : memref<1x1x4x256xbf16, #tpu.memory_space<vmem>>, vector<1x1x4x256xbf16>,
    return
  }
  func.func @transform_0(%arg0: i32, %arg1: i32) -> (i32, i32, i32, i32) {
    %c0_i32 = arith.constant 0 : i32
    %c0_i32_0 = arith.constant 0 : i32
    %c0_i32_1 = arith.constant 0 : i32
    return %arg0, %arg1, %c0_i32, %c0_i32_0 : i32, i32, i32, i32
  }
  func.func @transform_1(%arg0: i32, %arg1: i32) -> (i32, i32, i32) {
    %c0_i32 = arith.constant 0 : i32
    %c0_i32_0 = arith.constant 0 : i32
    %c0_i32_1 = arith.constant 0 : i32
    %c0_i32_2 = arith.constant 0 : i32
    return %c0_i32, %c0_i32_0, %c0_i32_1 : i32, i32, i32
  }
  func.func @transform_2(%arg0: i32, %arg1: i32) -> (i32, i32, i32, i32) {
    %c0_i32 = arith.constant 0 : i32
    %c0_i32_0 = arith.constant 0 : i32
    %c0_i32_1 = arith.constant 0 : i32
    return %arg0, %arg1, %c0_i32, %c0_i32_0 : i32, i32, i32, i32
  }
  func.func @transform_3(%arg0: i32, %arg1: i32) -> (i32, i32, i32, i32) {
    %c0_i32 = arith.constant 0 : i32
    %c0_i32_0 = arith.constant 0 : i32
    %c0_i32_1 = arith.constant 0 : i32
    return %arg0, %arg1, %c0_i32, %c0_i32_0 : i32, i32, i32, i32
  }
}

module attributes {stable_mosaic.version = 11 : i64} {
  func.func @_bn_leakyrelu_kernel(%arg0: i32, %arg1: i32, %arg2: memref<1x1x4x256xbf16, #tpu.memory_space<vmem>>, %arg3: memref<1x256xf32, #tpu.memory_space<vmem>>, %arg4: memref<1x256xf32, #tpu.memory_space<vmem>>, %arg5: memref<1x1x4x256xbf16, #tpu.memory_space<vmem>>) attributes {dimension_semantics = [#tpu.dimension_semantics<parallel>, #tpu.dimension_semantics<parallel>], iteration_bounds = array<i64: 2, 1>, scalar_prefetch = 0 : i64, scratch_operands = 0 : i64, tpu.core_type = #tpu.core_type<tc>, window_params = [{transform_indices = @transform_0, window_bounds = array<i64: 1, 1, 4, 256>}, {pipeline_mode = #tpu.pipeline_mode<synchronous>, transform_indices = @transform_1, window_bounds = array<i64: 1, 256>}, {pipeline_mode = #tpu.pipeline_mode<synchronous>, transform_indices = @transform_2, window_bounds = array<i64: 1, 256>}, {transform_indices = @transform_3, window_bounds = array<i64: 1, 1, 4, 256>}]} {
    %c0 = arith.constant 0 : index
    %c0_0 = arith.constant 0 : index
    %c0_1 = arith.constant 0 : index
    %c0_2 = arith.constant 0 : index
    %0 = vector.load %arg2[%c0, %c0_0, %c0_1, %c0_2] : memref<1x1x4x256xbf16, #tpu.memory_space<vmem>>, vector<1x1x4x256xbf16>
    %1 = vector.shape_cast %0 : vector<1x1x4x256xbf16> to vector<4x256xbf16>
    %2 = arith.extf %1 : vector<4x256xbf16> to vector<4x256xf32>
    %c0_3 = arith.constant 0 : index
    %c0_4 = arith.constant 0 : index
    %3 = vector.load %arg3[%c0_3, %c0_4] : memref<1x256xf32, #tpu.memory_space<vmem>>, vector<1x256xf32>
    %4 = vector.broadcast %3 : vector<1x256xf32> to vector<4x256xf32>
    %5 = arith.mulf %2, %4 : vector<4x256xf32>
    %c0_5 = arith.constant 0 : index
    %c0_6 = arith.constant 0 : index
    %6 = vector.load %arg4[%c0_5, %c0_6] : memref<1x256xf32, #tpu.memory_space<vmem>>, vector<1x256xf32>
    %7 = vector.broadcast %6 : vector<1x256xf32> to vector<4x256xf32>
    %8 = arith.addf %5, %7 : vector<4x256xf32>
    %cst = arith.constant 0.000000e+00 : f32
    %9 = vector.broadcast %cst : f32 to vector<4x256xf32>
    %10 = arith.cmpf oge, %8, %9 : vector<4x256xf32>
    %cst_7 = arith.constant 2.000000e-01 : f32
    %11 = vector.broadcast %cst_7 : f32 to vector<4x256xf32>
    %12 = arith.mulf %11, %8 : vector<4x256xf32>
    %13 = arith.select %10, %8, %12 : vector<4x256xi1>, vector<4x256xf32>
    %14 = arith.truncf %13 : vector<4x256xf32> to vector<4x256xbf16>
    %c0_8 = arith.constant 0 : index
    %c0_9 = arith.constant 0 : index
    %c0_10 = arith.constant 0 : index
    %c0_11 = arith.constant 0 : index
    %15 = vector.load %arg5[%c0_8, %c0_9, %c0_10, %c0_11] : memref<1x1x4x256xbf16, #tpu.memory_space<vmem>>, vector<1x1x4x256xbf16>
    %16 = vector.shape_cast %15 : vector<1x1x4x256xbf16> to vector<4x256xbf16>
    %17 = vector.shape_cast %14 : vector<4x256xbf16> to vector<1x1x4x256xbf16>
    tpu.vector_store %arg5[%c0_8, %c0_9, %c0_10, %c0_11], %17 {strides = array<i32>} : memref<1x1x4x256xbf16, #tpu.memory_space<vmem>>, vector<1x1x4x256xbf16>,
    return
  }
  func.func @transform_0(%arg0: i32, %arg1: i32) -> (i32, i32, i32, i32) {
    %c0_i32 = arith.constant 0 : i32
    %c0_i32_0 = arith.constant 0 : i32
    %c0_i32_1 = arith.constant 0 : i32
    return %arg0, %arg1, %c0_i32, %c0_i32_0 : i32, i32, i32, i32
  }
  func.func @transform_1(%arg0: i32, %arg1: i32) -> (i32, i32) {
    %c0_i32 = arith.constant 0 : i32
    %c0_i32_0 = arith.constant 0 : i32
    %c0_i32_1 = arith.constant 0 : i32
    return %c0_i32, %c0_i32_0 : i32, i32
  }
  func.func @transform_2(%arg0: i32, %arg1: i32) -> (i32, i32) {
    %c0_i32 = arith.constant 0 : i32
    %c0_i32_0 = arith.constant 0 : i32
    %c0_i32_1 = arith.constant 0 : i32
    return %c0_i32, %c0_i32_0 : i32, i32
  }
  func.func @transform_3(%arg0: i32, %arg1: i32) -> (i32, i32, i32, i32) {
    %c0_i32 = arith.constant 0 : i32
    %c0_i32_0 = arith.constant 0 : i32
    %c0_i32_1 = arith.constant 0 : i32
    return %arg0, %arg1, %c0_i32, %c0_i32_0 : i32, i32, i32, i32
  }
}

</mosaic_0001>

<bundles_post_ra>
// kernel: tile.28
= control target key start
LH: loop header
LB: loop body
LE: loop exit
PB: predicated region body
PF: predicated region fallthrough
CT: control target
= control target key end

     0   :  { %s28_s0 = inlined_call_operand.vmem [shape: f32[16], index: 0, kind: input, shape index: {}]   ;;  %s29_s1 = inlined_call_operand.vmem [shape: f32[16,16], index: 1, kind: output, shape index: {}]  }
   0x1   :  { %v4_v0 = vld [vmem:[%s28_s0] ss:$0 sm:$0xff] }
   0x2   :  { %5 = vst [vmem:[%s29_s1] sm:$0xff] %v4_v0  ;;  %8 = vst [vmem:[%s29_s1 + $0x8] sm:$0xff] %v4_v0 }

// kernel: tile.29
= control target key start
LH: loop header
LB: loop body
LE: loop exit
PB: predicated region body
PF: predicated region fallthrough
CT: control target
= control target key end

     0   :  { %s7_s6 = smov 3  ;;  %s21_s9 = smov 3  ;;  %vm4_vm0 = vcmask 130048   ;;  %vm11_vm1 = vcmask 1048448   ;;  %vm18_vm2 = vcmask 917248   ;;  %vm25_vm3 = vcmask 786048   ;;  %s131_s0 = inlined_call_operand.vmem [shape: f32[16,16], index: 0, kind: input, shape index: {}]   ;;  %s132_s1 = inlined_call_operand.vmem [shape: f32[1,256], index: 1, kind: output, shape index: {}]  }
   0x1   :  { %v69_v0 = vld [vmem:[%s131_s0 + $0x7] ss:$8 sm:%s7_s6]   ;;  %s84_s10 = smov 112   ;;  %v71_v1 = vld [vmem:[%s131_s0 + $0x5] ss:$8 sm:%s21_s9]   ;;  %s14_s13 = smov 3 }
   0x2   :  { %9 = vrot.lane.b32.xlu0 %v69_v0, %s84_s10  ;;  %s85_s14 = smov 80   ;;  %v70_v2 = vld [vmem:[%s131_s0 + $0x6] ss:$8 sm:%s14_s13]   ;;  %s28_s17 = smov 3  ;;  %vm32_vm4 = vcmask 654848   ;;  %vm39_vm5 = vcmask 523648  }
   0x3   :  { %23 = vrot.lane.b32.xlu1 %v71_v1, %s85_s14  ;;  %v72_v3 = vld [vmem:[%s131_s0 + $0x4] ss:$8 sm:%s28_s17]   ;;  %s35_s20 = smov 3  ;;  %s42_s21 = smov 3  ;;  %vm46_vm6 = vcmask 392448   ;;  %vm53_vm7 = vcmask 261248  }
   0x4   :  { %s86_s22 = smov 96   ;;  %s87_s23 = smov 64   ;;  %v73_v4 = vld [vmem:[%s131_s0 + $0x3] ss:$8 sm:%s35_s20]   ;;  %v74_v5 = vld [vmem:[%s131_s0 + $0x2] ss:$8 sm:%s42_s21]  }
   0x5   :  { %s2_s26 = smov 3  ;;  %s49_s29 = smov 3 }
   0x6   :  { %16 = vrot.lane.b32.xlu0 %v70_v2, %s86_s22  ;;  %v3_v6 = vld [vmem:[%s131_s0] ss:$8 sm:%s2_s26]   ;;  %s88_s3 = smov 48   ;;  %s89_s4 = smov 32  }
   0x7   :  { %30 = vrot.lane.b32.xlu1 %v72_v3, %s87_s23  ;;  %5 = vst.msk [vmem:[#allocation0] ss:$8 sm:$0x3] %vm4_vm0, %v3_v6   ;;  %v75_v7 = vld [vmem:[%s131_s0 + $0x1] ss:$8 sm:%s49_s29]   ;;  %s90_s0 = smov 16  }
   0xa   :  { %37 = vrot.lane.b32.xlu0 %v73_v4, %s88_s3 }
   0xb   :  { %44 = vrot.lane.b32.xlu1 %v74_v5, %s89_s4 }
   0xe   :  { %51 = vrot.lane.b32.xlu0 %v75_v7, %s90_s0 }
  0x74   :  { %v10_v8 = vpop.permute.xlu0 %9  }
  0x75   :  { %12 = vst.msk [vmem:[#allocation0] ss:$8 sm:$0x3] %vm11_vm1, %v10_v8   ;;  %v24_v9 = vpop.permute.xlu1 %23  }
  0x78   :  { %v17_v10 = vpop.permute.xlu0 %16  }
  0x79   :  { %19 = vst.msk [vmem:[#allocation0] ss:$8 sm:$0x3] %vm18_vm2, %v17_v10   ;;  %v31_v11 = vpop.permute.xlu1 %30  }
  0x7a   :  { %26 = vst.msk [vmem:[#allocation0] ss:$8 sm:$0x3] %vm25_vm3, %v24_v9  }
  0x7b   :  { %33 = vst.msk [vmem:[#allocation0] ss:$8 sm:$0x3] %vm32_vm4, %v31_v11  }
  0x7c   :  { %v38_v12 = vpop.permute.xlu0 %37  }
  0x7d   :  { %40 = vst.msk [vmem:[#allocation0] ss:$8 sm:$0x3] %vm39_vm5, %v38_v12   ;;  %v45_v13 = vpop.permute.xlu1 %44  }
  0x7e   :  { %47 = vst.msk [vmem:[#allocation0] ss:$8 sm:$0x3] %vm46_vm6, %v45_v13  }
  0x80   :  { %v52_v14 = vpop.permute.xlu0 %51  }
  0x81   :  { %54 = vst.msk [vmem:[#allocation0] ss:$8 sm:$0x3] %vm53_vm7, %v52_v14  }
  0x88   :  { %v59_v15 = vld [vmem:[#allocation0] sm:$0x1]  ;;  %v64_v16 = vld [vmem:[#allocation0 + $0x8] sm:$0x1] }
  0x89   :  { %62 = vst [vmem:[%s132_s1] sm:$0x1] %v59_v15  ;;  %76 = vst [vmem:[%s132_s1 + $0x1] sm:$0x1] %v64_v16 }

// kernel: discriminator_forward.5
= control target key start
LH: loop header
LB: loop body
LE: loop exit
PB: predicated region body
PF: predicated region fallthrough
CT: control target
= control target key end

     0   :  { %s3751_s12 = smov 0   ;;  %s3753_s13 = smov 0   ;;  %s4720_s0 = inlined_call_operand.vmem [shape: bf16[2,1,72,119], index: 0, kind: input, shape index: {}]   ;;  %s4721_s1 = inlined_call_operand.vmem [shape: bf16[16,112,256], index: 1, kind: input, shape index: {}]   ;;  %s4722_s2 = inlined_call_operand.vmem [shape: f32[1,256], index: 2, kind: input, shape index: {}]   ;;  %s4723_s3 = inlined_call_operand.vmem [shape: bf16[2,1,16,256], index: 3, kind: output, shape index: {}]  }
   0x1   :  { %s3755_s14 = smov 0  }
   0x2 LB: > { %s25_s15 = sadd.s32 1, %s3723_s13  ;;  %p2847_p0 = scmp.ge.s32.totalorder %s3727_s14, 1  ;;  %s3727_s14 = sphi %s3755_s14, %s13_s14   ;;  %s3723_s13 = sphi %s3753_s13, %s4725_s13   ;;  %s3719_s12 = sphi %s3751_s12, %s4724_s12  }
   0x3   : > { %p27_p1 = scmp.ge.s32.totalorder %s25_s15, 2  ;;  %p157_p2 = scmp.lt.s32.totalorder %s3727_s14, 3 }
   0x5   : > { %s4727_s15 = smov (%p27_p1, %s25_s15), 0  ;;  %p158_p3 = pnand %p2847_p0, %p157_p2 }
   0x6   : > { %p189_p4 = scmp.lt.s32.totalorder (!%p158_p3), %s3719_s12, 1  ;;  %s3730_s11 = smov (!%p158_p3), 121  }
   0x7   : > { %161 = sbr.rel (%p158_p3) target bundleno = 523 (0x20b), region = 32 }
   0xc   : > { %v3363_v0 = vld [vmem:[%s4721_s1 + $0x64] ss:$8 sps:$4 sm:$0xff]   ;;  %v3365_v1 = vld [vmem:[%s4721_s1 + $0xd4] ss:$8 sps:$4 sm:$0xff]   ;;  %s4729_s12 = smov (!%p189_p4, %s3719_s12), 1  ;;  %v3729_v8 = vmov 0  }
   0xd   : > { %v3369_v2 = vld [vmem:[%s4721_s1 + $0x60] ss:$8 sps:$4 sm:$0xff]   ;;  %v3370_v3 = vld [vmem:[%s4721_s1 + $0xd0] ss:$8 sps:$4 sm:$0xff]   ;;  %312 = vmatprep.subr.bf16.mxu0 %v3363_v0  ;;  %467 = vmatprep.subr.bf16.mxu1 %v3365_v1  ;;  %v3371_v4 = vld [vmem:[%s4721_s1 + $0x54] ss:$8 sps:$4 sm:$0xff]  }
   0xe   : > { %s3332_s26 = smul.u32 36, %s4729_s12  ;;  %313 = vmatpush1.bf16.msra.mxu0 %v3369_v2  ;;  %468 = vmatpush1.bf16.msra.mxu1 %v3370_v3  ;;  %v3373_v5 = vld [vmem:[%s4721_s1 + $0xc4] ss:$8 sps:$4 sm:$0xff]   ;;  %v3377_v6 = vld [vmem:[%s4721_s1 + $0x50] ss:$8 sps:$4 sm:$0xff]   ;;  %vm385_vm0 = vcmask 1046528  }
   0xf   : > { %314 = vmatprep.subr.bf16.mxu0 %v3371_v4  ;;  %v3378_v7 = vld [vmem:[%s4721_s1 + $0xc0] ss:$8 sps:$4 sm:$0xff]   ;;  %342 = vmatprep.mubr.bf16.mxu0 %v3729_v8  ;;  %v3379_v9 = vld [vmem:[%s4721_s1 + $0x44] ss:$8 sps:$4 sm:$0xff]   ;;  %vm840_vm1 = vcmask 1045504   ;;  %vm999_vm2 = vcmask 1044480  }
  0x10   : > { %s3800_s8 = scalar_lea.vmem %s4720_s0, %s3332_s26  ;;  %469 = vmatprep.subr.bf16.mxu1 %v3373_v5  ;;  %497 = vmatprep.mubr.bf16.mxu1 %v3729_v8  ;;  %v3381_v23 = vld [vmem:[%s4721_s1 + $0xb4] ss:$8 sps:$4 sm:$0xff]   ;;  %v3383_v25 = vld [vmem:[%s4721_s1 + $0x40] ss:$8 sps:$4 sm:$0xff]   ;;  %v3384_v26 = vld [vmem:[%s4721_s1 + $0xb0] ss:$8 sps:$4 sm:$0xff]  }
  0x11   : > { %v3807_v10 = vld [vmem:[%s3800_s8] sm:$0xff]   ;;  %v3360_v11 = vld [vmem:[%s3800_s8 + $0x8] sm:$0xfe]   ;;  %v3361_v12 = vld [vmem:[%s3800_s8 + $0x10] ss:$0 sps:$4 sm:$0x33]  }
  0x12   : > { %315 = vmatpush1.bf16.msra.mxu0 %v3377_v6  ;;  %470 = vmatpush1.bf16.msra.mxu1 %v3378_v7  ;;  %v3814_v13 = vld [vmem:[%s3800_s8 + $0x8] ss:$0 sps:$4 sm:$0x11]   ;;  %v386_v14 = vrot.slane %v3360_v11, 1  ;;  %v3816_v15 = vrot.slane %v3361_v12, 1  ;;  %vm303_vm3 = vcmask 916480  }
  0x13   : > { %533 = vrot.lane.b32.xlu0 %v3807_v10, %s3730_s11  ;;  %316 = vmatprep.subr.bf16.mxu0 %v3379_v9  ;;  %v3367_v16 = vld [vmem:[%s3800_s8 + $0x10] sm:$0xfc]   ;;  %v3368_v18 = vld [vmem:[%s3800_s8 + $0x18] ss:$0 sps:$4 sm:$0x77]   ;;  %s3329_s24 = sshll.u32 %s4729_s12, 4 }
  0x14   : > { %535 = vrot.lane.b32.xlu1 %v3814_v13, %s3730_s11  ;;  %v3823_v17 = vsel %vm385_vm0, %v386_v14, %v3816_v15  ;;  %v841_v19 = vrot.slane %v3367_v16, 2  ;;  %v3375_v20 = vld [vmem:[%s3800_s8 + $0x18] sm:$0xf8]   ;;  %v3829_v21 = vrot.slane %v3368_v18, 2  ;;  %v3376_v22 = vld [vmem:[%s3800_s8 + $0x20] ss:$0 sps:$4 sm:$0xff]   ;;  %471 = vmatprep.subr.bf16.mxu1 %v3381_v23 }
  0x15   : > { %v1000_v24 = vrot.slane %v3375_v20, 3  ;;  %v3847_v28 = vrot.slane %v3376_v22, 3  ;;  %v3385_v29 = vld [vmem:[%s4721_s1 + $0x34] ss:$8 sps:$4 sm:$0xff]   ;;  %v3387_v30 = vld [vmem:[%s4721_s1 + $0xa4] ss:$8 sps:$4 sm:$0xff]  }
  0x16   : > { %v3845_v27 = vsel %vm840_vm1, %v841_v19, %v3829_v21  ;;  %317 = vmatpush1.bf16.msra.mxu0 %v3383_v25  ;;  %v3389_v31 = vld [vmem:[%s4721_s1 + $0x30] ss:$8 sps:$4 sm:$0xff]   ;;  %472 = vmatpush1.bf16.msra.mxu1 %v3384_v26  ;;  %v3390_v33 = vld [vmem:[%s4721_s1 + $0xa0] ss:$8 sps:$4 sm:$0xff]   ;;  %v3391_v34 = vld [vmem:[%s4721_s1 + $0x24] ss:$8 sps:$4 sm:$0xff]  }
  0x17   : > { %681 = vrot.lane.b32.xlu0 %v3823_v17, %s3730_s11  ;;  %v3862_v32 = vsel %vm999_vm2, %v1000_v24, %v3847_v28  ;;  %318 = vmatprep.subr.bf16.mxu0 %v3385_v29  ;;  %v3393_v35 = vld [vmem:[%s4721_s1 + $0x94] ss:$8 sps:$4 sm:$0xff]   ;;  %v3395_v36 = vld [vmem:[%s4721_s1 + $0x20] ss:$8 sps:$4 sm:$0xff]   ;;  %v3396_v37 = vld [vmem:[%s4721_s1 + $0x90] ss:$8 sps:$4 sm:$0xff]  }
  0x18   : > { %683 = vrot.lane.b32.xlu1 %v3816_v15, %s3730_s11  ;;  %473 = vmatprep.subr.bf16.mxu1 %v3387_v30  ;;  %v3397_v38 = vld [vmem:[%s4721_s1 + $0x14] ss:$8 sps:$4 sm:$0xff]   ;;  %v3399_v39 = vld [vmem:[%s4721_s1 + $0x84] ss:$8 sps:$4 sm:$0xff]   ;;  %v3401_v40 = vld [vmem:[%s4721_s1 + $0x10] ss:$8 sps:$4 sm:$0xff]  }
  0x19   : > { %v3402_v41 = vld [vmem:[%s4721_s1 + $0x80] ss:$8 sps:$4 sm:$0xff]   ;;  %v3403_v42 = vld [vmem:[%s4721_s1 + $0x4] ss:$8 sps:$4 sm:$0xff]   ;;  %v3405_v43 = vld [vmem:[%s4721_s1 + $0x74] ss:$8 sps:$4 sm:$0xff]  }
  0x1a   : > { %319 = vmatpush1.bf16.msra.mxu0 %v3389_v31  ;;  %474 = vmatpush1.bf16.msra.mxu1 %v3390_v33  ;;  %v3407_v44 = vld [vmem:[%s4721_s1] ss:$8 sps:$4 sm:$0xff]   ;;  %v3408_v45 = vld [vmem:[%s4721_s1 + $0x70] ss:$8 sps:$4 sm:$0xff]   ;;  %v3411_v46 = vld [vmem:[%s4721_s1 + $0x144] ss:$8 sps:$4 sm:$0xff]  }
  0x1b   : > { %1147 = vrot.lane.b32.xlu0 %v3845_v27, %s3730_s11  ;;  %320 = vmatprep.subr.bf16.mxu0 %v3391_v34  ;;  %v3417_v47 = vld [vmem:[%s4721_s1 + $0x1b4] ss:$8 sps:$4 sm:$0xff]   ;;  %v3409_v48 = vld [vmem:[%s4721_s1 + $0x140] ss:$8 sps:$4 sm:$0xff]   ;;  %v3415_v50 = vld [vmem:[%s4721_s1 + $0x1b0] ss:$8 sps:$4 sm:$0xff]  }
  0x1c   : > { %1295 = vrot.lane.b32.xlu1 %v3862_v32, %s3730_s11  ;;  %475 = vmatprep.subr.bf16.mxu1 %v3393_v35  ;;  %v3414_v49 = vld [vmem:[%s4721_s1 + $0x134] ss:$8 sps:$4 sm:$0xff]   ;;  %v3423_v51 = vld [vmem:[%s4721_s1 + $0x1a4] ss:$8 sps:$4 sm:$0xff]   ;;  %v3412_v52 = vld [vmem:[%s4721_s1 + $0x130] ss:$8 sps:$4 sm:$0xff]  }
  0x1d   : > { %v3420_v53 = vld [vmem:[%s4721_s1 + $0x124] ss:$8 sps:$4 sm:$0xff]   ;;  %v3421_v54 = vld [vmem:[%s4721_s1 + $0x1a0] ss:$8 sps:$4 sm:$0xff]   ;;  %v3429_v55 = vld [vmem:[%s4721_s1 + $0x194] ss:$8 sps:$4 sm:$0xff]  }
  0x1e   : > { %321 = vmatpush1.bf16.msra.mxu0 %v3395_v36  ;;  %476 = vmatpush1.bf16.msra.mxu1 %v3396_v37  ;;  %v3418_v56 = vld [vmem:[%s4721_s1 + $0x120] ss:$8 sps:$4 sm:$0xff]   ;;  %v3426_v57 = vld [vmem:[%s4721_s1 + $0x114] ss:$8 sps:$4 sm:$0xff]   ;;  %v3427_v58 = vld [vmem:[%s4721_s1 + $0x190] ss:$8 sps:$4 sm:$0xff]  }
  0x1f   : > { %1149 = vrot.lane.b32.xlu0 %v3829_v21, %s3730_s11  ;;  %322 = vmatprep.subr.bf16.mxu0 %v3397_v38  ;;  %v3435_v59 = vld [vmem:[%s4721_s1 + $0x184] ss:$8 sps:$4 sm:$0xff]   ;;  %v3424_v60 = vld [vmem:[%s4721_s1 + $0x110] ss:$8 sps:$4 sm:$0xff]   ;;  %v3433_v62 = vld [vmem:[%s4721_s1 + $0x180] ss:$8 sps:$4 sm:$0xff]  }
  0x20   : > { %1297 = vrot.lane.b32.xlu1 %v3847_v28, %s3730_s11  ;;  %477 = vmatprep.subr.bf16.mxu1 %v3399_v39  ;;  %v3432_v61 = vld [vmem:[%s4721_s1 + $0x104] ss:$8 sps:$4 sm:$0xff]   ;;  %v3441_v63 = vld [vmem:[%s4721_s1 + $0x174] ss:$8 sps:$4 sm:$0xff]   ;;  %v3430_v0 = vld [vmem:[%s4721_s1 + $0x100] ss:$8 sps:$4 sm:$0xff]   ;;  %s206_s11 = scalar_lea.vmem %s4723_s3, %s3329_s24 }
  0x21   : > { %v3438_v1 = vld [vmem:[%s4721_s1 + $0xf4] ss:$8 sps:$4 sm:$0xff]   ;;  %v3439_v2 = vld [vmem:[%s4721_s1 + $0x170] ss:$8 sps:$4 sm:$0xff]   ;;  %v3447_v3 = vld [vmem:[%s4721_s1 + $0x164] ss:$8 sps:$4 sm:$0xff]  }
  0x22   : > { %323 = vmatpush1.bf16.msra.mxu0 %v3401_v40  ;;  %478 = vmatpush1.bf16.msra.mxu1 %v3402_v41  ;;  %v3436_v4 = vld [vmem:[%s4721_s1 + $0xf0] ss:$8 sps:$4 sm:$0xff]   ;;  %v3444_v5 = vld [vmem:[%s4721_s1 + $0xe4] ss:$8 sps:$4 sm:$0xff]   ;;  %v3445_v6 = vld [vmem:[%s4721_s1 + $0x160] ss:$8 sps:$4 sm:$0xff]  }
  0x23   : > { %324 = vmatprep.subr.bf16.mxu0 %v3403_v42  ;;  %479 = vmatprep.subr.bf16.mxu1 %v3405_v43  ;;  %v3450_v7 = vld [vmem:[%s4721_s1 + $0x154] ss:$8 sps:$4 sm:$0xff]   ;;  %v3442_v9 = vld [vmem:[%s4721_s1 + $0xe0] ss:$8 sps:$4 sm:$0xff]   ;;  %v3453_v11 = vld [vmem:[%s4721_s1 + $0x224] ss:$8 sps:$4 sm:$0xff]  }
  0x24   : > { %v3456_v12 = vld [vmem:[%s4721_s1 + $0x294] ss:$8 sps:$4 sm:$0xff]   ;;  %v3457_v18 = vld [vmem:[%s4721_s1 + $0x210] ss:$8 sps:$4 sm:$0xff]   ;;  %v3462_v20 = vld [vmem:[%s4721_s1 + $0x204] ss:$8 sps:$4 sm:$0xff]  }
  0x25   : > { %v3459_v14 = vld [vmem:[%s4721_s1 + $0x214] ss:$8 sps:$4 sm:$0xff]   ;;  %v3454_v19 = vld [vmem:[%s4721_s1 + $0x290] ss:$8 sps:$4 sm:$0xff]   ;;  %v3465_v22 = vld [vmem:[%s4721_s1 + $0x284] ss:$8 sps:$4 sm:$0xff]  }
  0x26   : > { %325 = vmatpush1.bf16.msra.mxu0 %v3407_v44  ;;  %480 = vmatpush1.bf16.msra.mxu1 %v3408_v45  ;;  %v3460_v25 = vld [vmem:[%s4721_s1 + $0x200] ss:$8 sps:$4 sm:$0xff]   ;;  %v3468_v29 = vld [vmem:[%s4721_s1 + $0x1f4] ss:$8 sps:$4 sm:$0xff]   ;;  %v3466_v31 = vld [vmem:[%s4721_s1 + $0x1f0] ss:$8 sps:$4 sm:$0xff]  }
  0x27   : > { %615 = vmatprep.subr.bf16.mxu0 %v3411_v46  ;;  %763 = vmatprep.subr.bf16.mxu1 %v3417_v47  ;;  %v3463_v26 = vld [vmem:[%s4721_s1 + $0x280] ss:$8 sps:$4 sm:$0xff]   ;;  %v3471_v30 = vld [vmem:[%s4721_s1 + $0x274] ss:$8 sps:$4 sm:$0xff]   ;;  %v3469_v33 = vld [vmem:[%s4721_s1 + $0x270] ss:$8 sps:$4 sm:$0xff]  }
  0x28   : > { %v3474_v34 = vld [vmem:[%s4721_s1 + $0x1e4] ss:$8 sps:$4 sm:$0xff]   ;;  %v3472_v37 = vld [vmem:[%s4721_s1 + $0x1e0] ss:$8 sps:$4 sm:$0xff]   ;;  %v3480_v39 = vld [vmem:[%s4721_s1 + $0x1d4] ss:$8 sps:$4 sm:$0xff]  }
  0x29   : > { %2867 = vmatmul.mubr.msk.bf16.vlgmr.msra.gmra.mxu0 %vm303_vm3, %v3807_v10  ;;  %2899 = vmatmul.mubr.msk.bf16.vlgmr.msra.gmra.mxu1 %vm303_vm3, %v3823_v17  ;;  %v3448_v10 = vld [vmem:[%s4721_s1 + $0x150] ss:$8 sps:$4 sm:$0xff]   ;;  %v3477_v36 = vld [vmem:[%s4721_s1 + $0x264] ss:$8 sps:$4 sm:$0xff]   ;;  %v3475_v38 = vld [vmem:[%s4721_s1 + $0x260] ss:$8 sps:$4 sm:$0xff]  }
  0x2a   : > { %616 = vmatpush1.bf16.msra.mxu0 %v3409_v48  ;;  %764 = vmatpush1.bf16.msra.mxu1 %v3415_v50  ;;  %v3483_v40 = vld [vmem:[%s4721_s1 + $0x254] ss:$8 sps:$4 sm:$0xff]   ;;  %v3478_v41 = vld [vmem:[%s4721_s1 + $0x1d0] ss:$8 sps:$4 sm:$0xff]   ;;  %v3486_v43 = vld [vmem:[%s4721_s1 + $0x1c4] ss:$8 sps:$4 sm:$0xff]  }
  0x2b   : > { %617 = vmatprep.subr.bf16.mxu0 %v3414_v49  ;;  %765 = vmatprep.subr.bf16.mxu1 %v3423_v51  ;;  %v3481_v42 = vld [vmem:[%s4721_s1 + $0x250] ss:$8 sps:$4 sm:$0xff]   ;;  %v3484_v44 = vld [vmem:[%s4721_s1 + $0x1c0] ss:$8 sps:$4 sm:$0xff]   ;;  %v3489_v45 = vld [vmem:[%s4721_s1 + $0x244] ss:$8 sps:$4 sm:$0xff]  }
  0x2c   : > { %352 = vmatprep.mubr.bf16.mxu0 %v3729_v8  ;;  %507 = vmatprep.mubr.bf16.mxu1 %v3729_v8  ;;  %v3487_v46 = vld [vmem:[%s4721_s1 + $0x240] ss:$8 sps:$4 sm:$0xff]   ;;  %v3495_v47 = vld [vmem:[%s4721_s1 + $0x304] ss:$8 sps:$4 sm:$0xff]   ;;  %v3492_v48 = vld [vmem:[%s4721_s1 + $0x234] ss:$8 sps:$4 sm:$0xff]  }
  0x2d   : > { %v3493_v49 = vld [vmem:[%s4721_s1 + $0x300] ss:$8 sps:$4 sm:$0xff]   ;;  %v3490_v50 = vld [vmem:[%s4721_s1 + $0x230] ss:$8 sps:$4 sm:$0xff]   ;;  %v3498_v51 = vld [vmem:[%s4721_s1 + $0x2f4] ss:$8 sps:$4 sm:$0xff]  }
  0x2e   : > { %618 = vmatpush1.bf16.msra.mxu0 %v3412_v52  ;;  %766 = vmatpush1.bf16.msra.mxu1 %v3421_v54  ;;  %v3501_v52 = vld [vmem:[%s4721_s1 + $0x374] ss:$8 sps:$4 sm:$0xff]   ;;  %v3499_v54 = vld [vmem:[%s4721_s1 + $0x370] ss:$8 sps:$4 sm:$0xff]  }
  0x2f   : > { %619 = vmatprep.subr.bf16.mxu0 %v3420_v53  ;;  %767 = vmatprep.subr.bf16.mxu1 %v3429_v55  ;;  %v3496_v53 = vld [vmem:[%s4721_s1 + $0x2f0] ss:$8 sps:$4 sm:$0xff]   ;;  %v3504_v55 = vld [vmem:[%s4721_s1 + $0x2e4] ss:$8 sps:$4 sm:$0xff]  }
  0x31   : > { %2868 = vmatmul.mubr.msk.bf16.gmra.mxu0 %vm303_vm3, %v3814_v13  ;;  %2900 = vmatmul.mubr.msk.bf16.gmra.mxu1 %vm303_vm3, %v3816_v15  ;;  %v3451_v13 = vld [vmem:[%s4721_s1 + $0x220] ss:$8 sps:$4 sm:$0xff]  }
  0x32   : > { %620 = vmatpush1.bf16.msra.mxu0 %v3418_v56  ;;  %768 = vmatpush1.bf16.msra.mxu1 %v3427_v58  ;;  %v3507_v56 = vld [vmem:[%s4721_s1 + $0x364] ss:$8 sps:$4 sm:$0xff]   ;;  %v3505_v58 = vld [vmem:[%s4721_s1 + $0x360] ss:$8 sps:$4 sm:$0xff]  }
  0x33   : > { %621 = vmatprep.subr.bf16.mxu0 %v3426_v57  ;;  %769 = vmatprep.subr.bf16.mxu1 %v3435_v59  ;;  %v3502_v57 = vld [vmem:[%s4721_s1 + $0x2e0] ss:$8 sps:$4 sm:$0xff]   ;;  %v3510_v59 = vld [vmem:[%s4721_s1 + $0x2d4] ss:$8 sps:$4 sm:$0xff]  }
  0x34   : > { %645 = vmatprep.mubr.bf16.mxu0 %v3729_v8  ;;  %793 = vmatprep.mubr.bf16.mxu1 %v3729_v8 }
  0x36   : > { %622 = vmatpush1.bf16.msra.mxu0 %v3424_v60  ;;  %770 = vmatpush1.bf16.msra.mxu1 %v3433_v62  ;;  %v3513_v60 = vld [vmem:[%s4721_s1 + $0x354] ss:$8 sps:$4 sm:$0xff]   ;;  %v3511_v62 = vld [vmem:[%s4721_s1 + $0x350] ss:$8 sps:$4 sm:$0xff]  }
  0x37   : > { %623 = vmatprep.subr.bf16.mxu0 %v3432_v61  ;;  %771 = vmatprep.subr.bf16.mxu1 %v3441_v63  ;;  %v3508_v61 = vld [vmem:[%s4721_s1 + $0x2d0] ss:$8 sps:$4 sm:$0xff]   ;;  %v3516_v63 = vld [vmem:[%s4721_s1 + $0x2c4] ss:$8 sps:$4 sm:$0xff]  }
  0x3a   : > { %624 = vmatpush1.bf16.msra.mxu0 %v3430_v0  ;;  %772 = vmatpush1.bf16.msra.mxu1 %v3439_v2  ;;  %v3519_v0 = vld [vmem:[%s4721_s1 + $0x344] ss:$8 sps:$4 sm:$0xff]   ;;  %v3517_v2 = vld [vmem:[%s4721_s1 + $0x340] ss:$8 sps:$4 sm:$0xff]  }
  0x3b   : > { %625 = vmatprep.subr.bf16.mxu0 %v3438_v1  ;;  %773 = vmatprep.subr.bf16.mxu1 %v3447_v3  ;;  %v3514_v1 = vld [vmem:[%s4721_s1 + $0x2c0] ss:$8 sps:$4 sm:$0xff]   ;;  %v3522_v3 = vld [vmem:[%s4721_s1 + $0x2b4] ss:$8 sps:$4 sm:$0xff]  }
  0x3e   : > { %626 = vmatpush1.bf16.msra.mxu0 %v3436_v4  ;;  %774 = vmatpush1.bf16.msra.mxu1 %v3445_v6  ;;  %v3525_v4 = vld [vmem:[%s4721_s1 + $0x334] ss:$8 sps:$4 sm:$0xff]   ;;  %v3523_v6 = vld [vmem:[%s4721_s1 + $0x330] ss:$8 sps:$4 sm:$0xff]  }
  0x3f   : > { %627 = vmatprep.subr.bf16.mxu0 %v3444_v5  ;;  %775 = vmatprep.subr.bf16.mxu1 %v3450_v7  ;;  %v3520_v5 = vld [vmem:[%s4721_s1 + $0x2b0] ss:$8 sps:$4 sm:$0xff]   ;;  %v3528_v7 = vld [vmem:[%s4721_s1 + $0x2a4] ss:$8 sps:$4 sm:$0xff]  }
  0x42   : > { %628 = vmatpush1.bf16.msra.mxu0 %v3442_v9  ;;  %776 = vmatpush1.bf16.msra.mxu1 %v3448_v10  ;;  %v3531_v9 = vld [vmem:[%s4721_s1 + $0x324] ss:$8 sps:$4 sm:$0xff]   ;;  %v3526_v10 = vld [vmem:[%s4721_s1 + $0x2a0] ss:$8 sps:$4 sm:$0xff]  }
  0x43   : > { %922 = vmatprep.subr.bf16.mxu0 %v3453_v11  ;;  %1081 = vmatprep.subr.bf16.mxu1 %v3456_v12  ;;  %v3529_v11 = vld [vmem:[%s4721_s1 + $0x320] ss:$8 sps:$4 sm:$0xff]   ;;  %v3537_v12 = vld [vmem:[%s4721_s1 + $0x3e4] ss:$8 sps:$4 sm:$0xff]  }
  0x85   : > { %v4017_v16 = vpop.permute.xlu0 %533 }
  0x86   : > { %2929 = vmatmul.mubr.msk.bf16.vlgmr.msra.gmra.mxu0 %vm303_vm3, %v4017_v16  ;;  %v4036_v24 = vpop.permute.xlu1 %535 }
  0x87   : > { %923 = vmatpush1.bf16.msra.mxu0 %v3451_v13  ;;  %655 = vmatprep.mubr.bf16.mxu0 %v3729_v8  ;;  %v3534_v13 = vld [vmem:[%s4721_s1 + $0x314] ss:$8 sps:$4 sm:$0xff]  }
  0x88   : > { %924 = vmatprep.subr.bf16.mxu0 %v3459_v14 }
  0x89   : > { %v4034_v23 = vpop.permute.xlu0 %681 }
  0x8a   : > { %2959 = vmatmul.mubr.msk.bf16.vlgmr.msra.gmra.mxu1 %vm303_vm3, %v4034_v23  ;;  %v4065_v35 = vpop.permute.xlu1 %683 }
  0x8b   : > { %925 = vmatpush1.bf16.msra.mxu0 %v3457_v18  ;;  %1082 = vmatpush1.bf16.msra.mxu1 %v3454_v19  ;;  %v3535_v18 = vld [vmem:[%s4721_s1 + $0x3e0] ss:$8 sps:$4 sm:$0xff]   ;;  %v3532_v19 = vld [vmem:[%s4721_s1 + $0x310] ss:$8 sps:$4 sm:$0xff]  }
  0x8c   : > { %926 = vmatprep.subr.bf16.mxu0 %v3462_v20  ;;  %1083 = vmatprep.subr.bf16.mxu1 %v3465_v22  ;;  %v3540_v20 = vld [vmem:[%s4721_s1 + $0x3d4] ss:$8 sps:$4 sm:$0xff]  }
  0x8d   : > { %803 = vmatprep.mubr.bf16.mxu1 %v3729_v8  ;;  %v4205_v14 = vpop.permute.xlu0 %1147  ;;  %v3543_v22 = vld [vmem:[%s4721_s1 + $0x454] ss:$8 sps:$4 sm:$0xff]  }
  0x8e   : > { %2930 = vmatmul.mubr.msk.bf16.gmra.mxu0 %vm303_vm3, %v4036_v24 }
  0x8f   : > { %927 = vmatpush1.bf16.msra.mxu0 %v3460_v25  ;;  %952 = vmatprep.mubr.bf16.mxu0 %v3729_v8  ;;  %v3538_v25 = vld [vmem:[%s4721_s1 + $0x3d0] ss:$8 sps:$4 sm:$0xff]  }
  0x90   : > { %1084 = vmatpush1.bf16.msra.mxu1 %v3463_v26  ;;  %928 = vmatprep.subr.bf16.mxu0 %v3468_v29  ;;  %v4225_v26 = vpop.permute.xlu1 %1295  ;;  %v3541_v29 = vld [vmem:[%s4721_s1 + $0x450] ss:$8 sps:$4 sm:$0xff]  }
  0x91   : > { %1085 = vmatprep.subr.bf16.mxu1 %v3471_v30  ;;  %v3546_v30 = vld [vmem:[%s4721_s1 + $0x3c4] ss:$8 sps:$4 sm:$0xff]  }
  0x92   : > { %2960 = vmatmul.mubr.msk.bf16.gmra.mxu1 %vm303_vm3, %v4065_v35 }
  0x93   : > { %929 = vmatpush1.bf16.msra.mxu0 %v3466_v31  ;;  %1111 = vmatprep.mubr.bf16.mxu1 %v3729_v8  ;;  %v3549_v31 = vld [vmem:[%s4721_s1 + $0x444] ss:$8 sps:$4 sm:$0xff]  }
  0x94   : > { %1086 = vmatpush1.bf16.msra.mxu1 %v3469_v33  ;;  %930 = vmatprep.subr.bf16.mxu0 %v3474_v34  ;;  %v3544_v33 = vld [vmem:[%s4721_s1 + $0x3c0] ss:$8 sps:$4 sm:$0xff]   ;;  %v4241_v34 = vpop.permute.xlu0 %1149 }
  0x95   : > { %1087 = vmatprep.subr.bf16.mxu1 %v3477_v36  ;;  %v3547_v36 = vld [vmem:[%s4721_s1 + $0x440] ss:$8 sps:$4 sm:$0xff]  }
  0x97   : > { %931 = vmatpush1.bf16.msra.mxu0 %v3472_v37  ;;  %v3552_v37 = vld [vmem:[%s4721_s1 + $0x3b4] ss:$8 sps:$4 sm:$0xff]  }
  0x98   : > { %1088 = vmatpush1.bf16.msra.mxu1 %v3475_v38  ;;  %932 = vmatprep.subr.bf16.mxu0 %v3480_v39  ;;  %v3555_v38 = vld [vmem:[%s4721_s1 + $0x434] ss:$8 sps:$4 sm:$0xff]   ;;  %v3550_v39 = vld [vmem:[%s4721_s1 + $0x3b0] ss:$8 sps:$4 sm:$0xff]  }
  0x99   : > { %1089 = vmatprep.subr.bf16.mxu1 %v3483_v40  ;;  %v3553_v40 = vld [vmem:[%s4721_s1 + $0x430] ss:$8 sps:$4 sm:$0xff]  }
  0x9b   : > { %933 = vmatpush1.bf16.msra.mxu0 %v3478_v41  ;;  %v3561_v41 = vld [vmem:[%s4721_s1 + $0x3a4] ss:$8 sps:$4 sm:$0xff]  }
  0x9c   : > { %1090 = vmatpush1.bf16.msra.mxu1 %v3481_v42  ;;  %934 = vmatprep.subr.bf16.mxu0 %v3486_v43  ;;  %v4265_v42 = vpop.permute.xlu1 %1297  ;;  %v3558_v43 = vld [vmem:[%s4721_s1 + $0x424] ss:$8 sps:$4 sm:$0xff]  }
  0x9d   : > { %1091 = vmatprep.subr.bf16.mxu1 %v3489_v45  ;;  %v3556_v45 = vld [vmem:[%s4721_s1 + $0x420] ss:$8 sps:$4 sm:$0xff]  }
  0x9f   : > { %935 = vmatpush1.bf16.msra.mxu0 %v3484_v44  ;;  %v3559_v44 = vld [vmem:[%s4721_s1 + $0x3a0] ss:$8 sps:$4 sm:$0xff]  }
  0xa0   : > { %1092 = vmatpush1.bf16.msra.mxu1 %v3487_v46  ;;  %1229 = vmatprep.subr.bf16.mxu0 %v3495_v47  ;;  %v3564_v46 = vld [vmem:[%s4721_s1 + $0x394] ss:$8 sps:$4 sm:$0xff]  }
  0xa1   : > { %1093 = vmatprep.subr.bf16.mxu1 %v3492_v48  ;;  %v3567_v47 = vld [vmem:[%s4721_s1 + $0x414] ss:$8 sps:$4 sm:$0xff]   ;;  %v3562_v48 = vld [vmem:[%s4721_s1 + $0x390] ss:$8 sps:$4 sm:$0xff]  }
  0xa2   : > { %2991 = vmatmul.mubr.msk.bf16.vlgmr.msra.gmra.mxu0 %vm303_vm3, %v3845_v27 }
  0xa3   : > { %1230 = vmatpush1.bf16.msra.mxu0 %v3493_v49  ;;  %962 = vmatprep.mubr.bf16.mxu0 %v3729_v8  ;;  %v3565_v49 = vld [vmem:[%s4721_s1 + $0x410] ss:$8 sps:$4 sm:$0xff]  }
  0xa4   : > { %1094 = vmatpush1.bf16.msra.mxu1 %v3490_v50  ;;  %1231 = vmatprep.subr.bf16.mxu0 %v3498_v51  ;;  %v3570_v50 = vld [vmem:[%s4721_s1 + $0x384] ss:$8 sps:$4 sm:$0xff]  }
  0xa5   : > { %1377 = vmatprep.subr.bf16.mxu1 %v3501_v52  ;;  %v3573_v51 = vld [vmem:[%s4721_s1 + $0x404] ss:$8 sps:$4 sm:$0xff]   ;;  %v3568_v52 = vld [vmem:[%s4721_s1 + $0x380] ss:$8 sps:$4 sm:$0xff]  }
  0xa7   : > { %3023 = vmatmul.mubr.msk.bf16.vlgmr.msra.gmra.mxu1 %vm303_vm3, %v3862_v32  ;;  %1232 = vmatpush1.bf16.msra.mxu0 %v3496_v53  ;;  %v3571_v53 = vld [vmem:[%s4721_s1 + $0x400] ss:$8 sps:$4 sm:$0xff]  }
  0xa8   : > { %1378 = vmatpush1.bf16.msra.mxu1 %v3499_v54  ;;  %1233 = vmatprep.subr.bf16.mxu0 %v3504_v55  ;;  %v3579_v54 = vld [vmem:[%s4721_s1 + $0x4c4] ss:$8 sps:$4 sm:$0xff]   ;;  %v3576_v55 = vld [vmem:[%s4721_s1 + $0x3f4] ss:$8 sps:$4 sm:$0xff]  }
  0xa9   : > { %1379 = vmatprep.subr.bf16.mxu1 %v3507_v56  ;;  %1121 = vmatprep.mubr.bf16.mxu1 %v3729_v8  ;;  %v3577_v56 = vld [vmem:[%s4721_s1 + $0x4c0] ss:$8 sps:$4 sm:$0xff]  }
  0xaa   : > { %2992 = vmatmul.mubr.msk.bf16.gmra.mxu0 %vm303_vm3, %v3829_v21 }
  0xab   : > { %1234 = vmatpush1.bf16.msra.mxu0 %v3502_v57  ;;  %1259 = vmatprep.mubr.bf16.mxu0 %v3729_v8  ;;  %v3574_v57 = vld [vmem:[%s4721_s1 + $0x3f0] ss:$8 sps:$4 sm:$0xff]  }
  0xac   : > { %1380 = vmatpush1.bf16.msra.mxu1 %v3505_v58  ;;  %1235 = vmatprep.subr.bf16.mxu0 %v3510_v59  ;;  %v3582_v58 = vld [vmem:[%s4721_s1 + $0x4b4] ss:$8 sps:$4 sm:$0xff]  }
  0xad   : > { %1381 = vmatprep.subr.bf16.mxu1 %v3513_v60  ;;  %v3585_v59 = vld [vmem:[%s4721_s1 + $0x534] ss:$8 sps:$4 sm:$0xff]   ;;  %v3703_v60 = vld [vmem:[%s3800_s8] sm:$0xff]  }
  0xaf   : > { %1236 = vmatpush1.bf16.msra.mxu0 %v3508_v61  ;;  %3024 = vmatmul.mubr.msk.bf16.gmra.mxu1 %vm303_vm3, %v3847_v28  ;;  %v3580_v61 = vld [vmem:[%s4721_s1 + $0x4b0] ss:$8 sps:$4 sm:$0xff]  }
  0xb0   : > { %1382 = vmatpush1.bf16.msra.mxu1 %v3511_v62  ;;  %1237 = vmatprep.subr.bf16.mxu0 %v3516_v63  ;;  %v3583_v62 = vld [vmem:[%s4721_s1 + $0x530] ss:$8 sps:$4 sm:$0xff]   ;;  %v3588_v63 = vld [vmem:[%s4721_s1 + $0x4a4] ss:$8 sps:$4 sm:$0xff]  }
  0xb1   : > { %1383 = vmatprep.subr.bf16.mxu1 %v3519_v0  ;;  %1407 = vmatprep.mubr.bf16.mxu1 %v3729_v8  ;;  %v3591_v0 = vld [vmem:[%s4721_s1 + $0x524] ss:$8 sps:$4 sm:$0xff]  }
  0xb3   : > { %1238 = vmatpush1.bf16.msra.mxu0 %v3514_v1  ;;  %v3586_v1 = vld [vmem:[%s4721_s1 + $0x4a0] ss:$8 sps:$4 sm:$0xff]  }
  0xb4   : > { %1384 = vmatpush1.bf16.msra.mxu1 %v3517_v2  ;;  %1239 = vmatprep.subr.bf16.mxu0 %v3522_v3  ;;  %v3589_v2 = vld [vmem:[%s4721_s1 + $0x520] ss:$8 sps:$4 sm:$0xff]   ;;  %v3594_v3 = vld [vmem:[%s4721_s1 + $0x494] ss:$8 sps:$4 sm:$0xff]  }
  0xb5   : > { %1385 = vmatprep.subr.bf16.mxu1 %v3525_v4  ;;  %v3704_v4 = vld [vmem:[%s3800_s8 + $0x8] ss:$0 sps:$4 sm:$0x11]  }
  0xb7   : > { %1240 = vmatpush1.bf16.msra.mxu0 %v3520_v5  ;;  %v3592_v5 = vld [vmem:[%s4721_s1 + $0x490] ss:$8 sps:$4 sm:$0xff]  }
  0xb8   : > { %1386 = vmatpush1.bf16.msra.mxu1 %v3523_v6  ;;  %1241 = vmatprep.subr.bf16.mxu0 %v3528_v7  ;;  %v3595_v6 = vld [vmem:[%s4721_s1 + $0x510] ss:$8 sps:$4 sm:$0xff]   ;;  %v3600_v7 = vld [vmem:[%s4721_s1 + $0x484] ss:$8 sps:$4 sm:$0xff]  }
  0xb9   : > { %1387 = vmatprep.subr.bf16.mxu1 %v3531_v9  ;;  %v3603_v9 = vld [vmem:[%s4721_s1 + $0x504] ss:$8 sps:$4 sm:$0xff]  }
  0xbb   : > { %1242 = vmatpush1.bf16.msra.mxu0 %v3526_v10  ;;  %v3598_v10 = vld [vmem:[%s4721_s1 + $0x480] ss:$8 sps:$4 sm:$0xff]  }
  0xbc   : > { %1388 = vmatpush1.bf16.msra.mxu1 %v3529_v11  ;;  %1515 = vmatprep.subr.bf16.mxu0 %v3537_v12  ;;  %v3601_v11 = vld [vmem:[%s4721_s1 + $0x500] ss:$8 sps:$4 sm:$0xff]   ;;  %v3606_v12 = vld [vmem:[%s4721_s1 + $0x474] ss:$8 sps:$4 sm:$0xff]  }
  0xbd   : > { %1389 = vmatprep.subr.bf16.mxu1 %v3534_v13  ;;  %v3604_v13 = vld [vmem:[%s4721_s1 + $0x470] ss:$8 sps:$4 sm:$0xff]  }
  0xbe   : > { %3053 = vmatmul.mubr.msk.bf16.vlgmr.msra.gmra.mxu0 %vm303_vm3, %v4205_v14 }
  0xbf   : > { %1516 = vmatpush1.bf16.msra.mxu0 %v3535_v18  ;;  %1269 = vmatprep.mubr.bf16.mxu0 %v3729_v8  ;;  %v3607_v18 = vld [vmem:[%s4721_s1 + $0x4f0] ss:$8 sps:$4 sm:$0xff]  }
  0xc0   : > { %1390 = vmatpush1.bf16.msra.mxu1 %v3532_v19  ;;  %1517 = vmatprep.subr.bf16.mxu0 %v3540_v20  ;;  %v3612_v19 = vld [vmem:[%s4721_s1 + $0x464] ss:$8 sps:$4 sm:$0xff]  }
  0xc1   : > { %1676 = vmatprep.subr.bf16.mxu1 %v3543_v22  ;;  %v3615_v20 = vld [vmem:[%s4721_s1 + $0x4e4] ss:$8 sps:$4 sm:$0xff]   ;;  %v3610_v22 = vld [vmem:[%s4721_s1 + $0x460] ss:$8 sps:$4 sm:$0xff]  }
  0xc3   : > { %3083 = vmatmul.mubr.msk.bf16.vlgmr.msra.gmra.mxu1 %vm303_vm3, %v4225_v26  ;;  %1518 = vmatpush1.bf16.msra.mxu0 %v3538_v25 }
  0xc4   : > { %1677 = vmatpush1.bf16.msra.mxu1 %v3541_v29  ;;  %1519 = vmatprep.subr.bf16.mxu0 %v3546_v30  ;;  %v3613_v29 = vld [vmem:[%s4721_s1 + $0x4e0] ss:$8 sps:$4 sm:$0xff]   ;;  %v3621_v30 = vld [vmem:[%s4721_s1 + $0x5a4] ss:$8 sps:$4 sm:$0xff]  }
  0xc5   : > { %1678 = vmatprep.subr.bf16.mxu1 %v3549_v31  ;;  %1417 = vmatprep.mubr.bf16.mxu1 %v3729_v8 }
  0xc6   : > { %3054 = vmatmul.mubr.msk.bf16.gmra.mxu0 %vm303_vm3, %v4241_v34 }
  0xc7   : > { %1520 = vmatpush1.bf16.msra.mxu0 %v3544_v33  ;;  %1545 = vmatprep.mubr.bf16.mxu0 %v3729_v8  ;;  %v3618_v33 = vld [vmem:[%s4721_s1 + $0x4d4] ss:$8 sps:$4 sm:$0xff]  }
  0xc8   : > { %1679 = vmatpush1.bf16.msra.mxu1 %v3547_v36  ;;  %1521 = vmatprep.subr.bf16.mxu0 %v3552_v37 }
  0xc9   : > { %1680 = vmatprep.subr.bf16.mxu1 %v3555_v38 }
  0xcb   : > { %1522 = vmatpush1.bf16.msra.mxu0 %v3550_v39  ;;  %3084 = vmatmul.mubr.msk.bf16.gmra.mxu1 %vm303_vm3, %v4265_v42  ;;  %v3619_v39 = vld [vmem:[%s4721_s1 + $0x5a0] ss:$8 sps:$4 sm:$0xff]  }
  0xcc   : > { %1681 = vmatpush1.bf16.msra.mxu1 %v3553_v40  ;;  %1523 = vmatprep.subr.bf16.mxu0 %v3561_v41 }
  0xcd   : > { %1682 = vmatprep.subr.bf16.mxu1 %v3558_v43  ;;  %1706 = vmatprep.mubr.bf16.mxu1 %v3729_v8  ;;  %v3616_v43 = vld [vmem:[%s4721_s1 + $0x4d0] ss:$8 sps:$4 sm:$0xff]  }
  0xcf   : > { %1524 = vmatpush1.bf16.msra.mxu0 %v3559_v44  ;;  %v3624_v44 = vld [vmem:[%s4721_s1 + $0x594] ss:$8 sps:$4 sm:$0xff]  }
  0xd0   : > { %1683 = vmatpush1.bf16.msra.mxu1 %v3556_v45  ;;  %1525 = vmatprep.subr.bf16.mxu0 %v3564_v46  ;;  %v3627_v46 = vld [vmem:[%s4721_s1 + $0x614] ss:$8 sps:$4 sm:$0xff]  }
  0xd1   : > { %1684 = vmatprep.subr.bf16.mxu1 %v3567_v47 }
  0xd3   : > { %1526 = vmatpush1.bf16.msra.mxu0 %v3562_v48 }
  0xd4   : > { %1685 = vmatpush1.bf16.msra.mxu1 %v3565_v49  ;;  %1527 = vmatprep.subr.bf16.mxu0 %v3570_v50  ;;  %v3622_v50 = vld [vmem:[%s4721_s1 + $0x590] ss:$8 sps:$4 sm:$0xff]  }
  0xd5   : > { %1686 = vmatprep.subr.bf16.mxu1 %v3573_v51 }
  0xd7   : > { %1528 = vmatpush1.bf16.msra.mxu0 %v3568_v52 }
  0xd8   : > { %1687 = vmatpush1.bf16.msra.mxu1 %v3571_v53  ;;  %1836 = vmatprep.subr.bf16.mxu0 %v3579_v54  ;;  %v3625_v53 = vld [vmem:[%s4721_s1 + $0x610] ss:$8 sps:$4 sm:$0xff]  }
  0xd9   : > { %1688 = vmatprep.subr.bf16.mxu1 %v3576_v55  ;;  %v3633_v55 = vld [vmem:[%s4721_s1 + $0x604] ss:$8 sps:$4 sm:$0xff]  }
  0xda   : > { %3113 = vmatmul.mubr.msk.bf16.vlgmr.msra.gmra.mxu0 %vm303_vm3, %v3703_v60  ;;  %v3631_v60 = vld [vmem:[%s4721_s1 + $0x600] ss:$8 sps:$4 sm:$0xff]  }
  0xdb   : > { %1837 = vmatpush1.bf16.msra.mxu0 %v3577_v56  ;;  %1555 = vmatprep.mubr.bf16.mxu0 %v3729_v8 }
  0xdc   : > { %1689 = vmatpush1.bf16.msra.mxu1 %v3574_v57  ;;  %1838 = vmatprep.subr.bf16.mxu0 %v3582_v58  ;;  %v3628_v58 = vld [vmem:[%s4721_s1 + $0x580] ss:$8 sps:$4 sm:$0xff]  }
  0xdd   : > { %1996 = vmatprep.subr.bf16.mxu1 %v3585_v59 }
  0xdf   : > { %3143 = vmatmul.mubr.msk.bf16.vlgmr.msra.gmra.mxu1 %vm303_vm3, %v3823_v17  ;;  %1839 = vmatpush1.bf16.msra.mxu0 %v3580_v61  ;;  %v3597_v17 = vld [vmem:[%s4721_s1 + $0x514] ss:$8 sps:$4 sm:$0xff]  }
  0xe0   : > { %1997 = vmatpush1.bf16.msra.mxu1 %v3583_v62  ;;  %1840 = vmatprep.subr.bf16.mxu0 %v3588_v63  ;;  %v3636_v61 = vld [vmem:[%s4721_s1 + $0x574] ss:$8 sps:$4 sm:$0xff]  }
  0xe1   : > { %1998 = vmatprep.subr.bf16.mxu1 %v3591_v0  ;;  %1716 = vmatprep.mubr.bf16.mxu1 %v3729_v8 }
  0xe2   : > { %3114 = vmatmul.mubr.msk.bf16.gmra.mxu0 %vm303_vm3, %v3704_v4  ;;  %v3643_v4 = vld [vmem:[%s4721_s1 + $0x5e0] ss:$8 sps:$4 sm:$0xff]  }
  0xe3   : > { %1841 = vmatpush1.bf16.msra.mxu0 %v3586_v1  ;;  %1866 = vmatprep.mubr.bf16.mxu0 %v3729_v8  ;;  %v3634_v1 = vld [vmem:[%s4721_s1 + $0x570] ss:$8 sps:$4 sm:$0xff]  }
  0xe4   : > { %1999 = vmatpush1.bf16.msra.mxu1 %v3589_v2  ;;  %1842 = vmatprep.subr.bf16.mxu0 %v3594_v3  ;;  %v3637_v2 = vld [vmem:[%s4721_s1 + $0x5f0] ss:$8 sps:$4 sm:$0xff]   ;;  %v3642_v3 = vld [vmem:[%s4721_s1 + $0x564] ss:$8 sps:$4 sm:$0xff]  }
  0xe5   : > { %2000 = vmatprep.subr.bf16.mxu1 %v3597_v17  ;;  %v3640_v17 = vld [vmem:[%s4721_s1 + $0x560] ss:$8 sps:$4 sm:$0xff]  }
  0xe7   : > { %3144 = vmatmul.mubr.msk.bf16.gmra.mxu1 %vm303_vm3, %v3816_v15  ;;  %1843 = vmatpush1.bf16.msra.mxu0 %v3592_v5  ;;  %v3609_v15 = vld [vmem:[%s4721_s1 + $0x4f4] ss:$8 sps:$4 sm:$0xff]  }
  0xe8   : > { %2001 = vmatpush1.bf16.msra.mxu1 %v3595_v6  ;;  %1844 = vmatprep.subr.bf16.mxu0 %v3600_v7  ;;  %v3648_v5 = vld [vmem:[%s4721_s1 + $0x554] ss:$8 sps:$4 sm:$0xff]   ;;  %v3646_v6 = vld [vmem:[%s4721_s1 + $0x550] ss:$8 sps:$4 sm:$0xff]  }
  0xe9   : > { %2002 = vmatprep.subr.bf16.mxu1 %v3603_v9  ;;  %2026 = vmatprep.mubr.bf16.mxu1 %v3729_v8  ;;  %v344_v25 = vpop.f32.mrf.mxu0  ;;  %v499_v31 = vpop.f32.mrf.mxu1  ;;  %v3649_v7 = vld [vmem:[%s4721_s1 + $0x5d0] ss:$8 sps:$4 sm:$0xff]   ;;  %v3654_v9 = vld [vmem:[%s4721_s1 + $0x544] ss:$8 sps:$4 sm:$0xff]  }
  0xea   : > { %v4405_v36 = vadd.f32 %v499_v31, %v344_v25  ;;  %v3664_v25 = vld [vmem:[%s4721_s1 + $0x670] ss:$8 sps:$4 sm:$0xff]   ;;  %v3670_v31 = vld [vmem:[%s4721_s1 + $0x660] ss:$8 sps:$4 sm:$0xff]  }
  0xeb   : > { %1845 = vmatpush1.bf16.msra.mxu0 %v3598_v10  ;;  %v346_v37 = vpop.f32.mrf.mxu0  ;;  %v501_v38 = vpop.f32.mrf.mxu1  ;;  %v3657_v10 = vld [vmem:[%s4721_s1 + $0x5c4] ss:$8 sps:$4 sm:$0xff]  }
  0xec   : > { %2003 = vmatpush1.bf16.msra.mxu1 %v3601_v11  ;;  %1846 = vmatprep.subr.bf16.mxu0 %v3606_v12  ;;  %v4410_v40 = vadd.f32 %v501_v38, %v346_v37  ;;  %v3652_v11 = vld [vmem:[%s4721_s1 + $0x540] ss:$8 sps:$4 sm:$0xff]   ;;  %v3678_v37 = vld [vmem:[%s4721_s1 + $0x654] ss:$8 sps:$4 sm:$0xff]   ;;  %v3676_v38 = vld [vmem:[%s4721_s1 + $0x650] ss:$8 sps:$4 sm:$0xff]  }
  0xed   : > { %2004 = vmatprep.subr.bf16.mxu1 %v3609_v15  ;;  %v348_v41 = vpop.f32.mrf.mxu0  ;;  %v503_v45 = vpop.f32.mrf.mxu1  ;;  %v3655_v12 = vld [vmem:[%s4721_s1 + $0x5c0] ss:$8 sps:$4 sm:$0xff]   ;;  %v3663_v15 = vld [vmem:[%s4721_s1 + $0x684] ss:$8 sps:$4 sm:$0xff]  }
  0xee   : > { %v4421_v47 = vadd.f32 %v503_v45, %v348_v41  ;;  %v3684_v41 = vld [vmem:[%s4721_s1 + $0x644] ss:$8 sps:$4 sm:$0xff]   ;;  %v3690_v45 = vld [vmem:[%s4721_s1 + $0x634] ss:$8 sps:$4 sm:$0xff]  }
  0xef   : > { %1847 = vmatpush1.bf16.msra.mxu0 %v3604_v13  ;;  %v350_v48 = vpop.f32.mrf.mxu0  ;;  %v505_v49 = vpop.f32.mrf.mxu1  ;;  %v3660_v13 = vld [vmem:[%s4721_s1 + $0x5b4] ss:$8 sps:$4 sm:$0xff]  }
  0xf0   : > { %2005 = vmatpush1.bf16.msra.mxu1 %v3607_v18  ;;  %1848 = vmatprep.subr.bf16.mxu0 %v3612_v19  ;;  %v4429_v51 = vadd.f32 %v505_v49, %v350_v48  ;;  %v3661_v18 = vld [vmem:[%s4721_s1 + $0x680] ss:$8 sps:$4 sm:$0xff]   ;;  %v3658_v19 = vld [vmem:[%s4721_s1 + $0x5b0] ss:$8 sps:$4 sm:$0xff]   ;;  %v3696_v49 = vld [vmem:[%s4721_s1 + $0x624] ss:$8 sps:$4 sm:$0xff]  }
  0xf1   : > { %2006 = vmatprep.subr.bf16.mxu1 %v3615_v20  ;;  %v354_v52 = vpop.f32.mrf.mxu0  ;;  %v509_v54 = vpop.f32.mrf.mxu1  ;;  %v3666_v20 = vld [vmem:[%s4721_s1 + $0x674] ss:$8 sps:$4 sm:$0xff]   ;;  %v3691_v48 = vld [vmem:[%s4721_s1 + $0x6b0] ss:$8 sps:$4 sm:$0xff]  }
  0xf2   : > { %v3694_v52 = vld [vmem:[%s4721_s1 + $0x620] ss:$8 sps:$4 sm:$0xff]   ;;  %v3700_v54 = vld [vmem:[%s4721_s1 + $0x690] ss:$8 sps:$4 sm:$0xff]  }
  0xf3   : > { %1849 = vmatpush1.bf16.msra.mxu0 %v3610_v22  ;;  %v355_v56 = vpop.f32.mrf.mxu0  ;;  %v510_v57 = vpop.f32.mrf.mxu1  ;;  %v3669_v22 = vld [vmem:[%s4721_s1 + $0x6f4] ss:$8 sps:$4 sm:$0xff]  }
  0xf4   : > { %2007 = vmatpush1.bf16.msra.mxu1 %v3613_v29  ;;  %2156 = vmatprep.subr.bf16.mxu0 %v3621_v30  ;;  %v3667_v29 = vld [vmem:[%s4721_s1 + $0x6f0] ss:$8 sps:$4 sm:$0xff]   ;;  %v3672_v30 = vld [vmem:[%s4721_s1 + $0x664] ss:$8 sps:$4 sm:$0xff]  }
  0xf5   : > { %2008 = vmatprep.subr.bf16.mxu1 %v3618_v33  ;;  %v356_v59 = vpop.f32.mrf.mxu0  ;;  %v511_v62 = vpop.f32.mrf.mxu1  ;;  %v3673_v33 = vld [vmem:[%s4721_s1 + $0x6e0] ss:$8 sps:$4 sm:$0xff]  }
  0xf6   : > { %3173 = vmatmul.mubr.msk.bf16.vlgmr.msra.gmra.mxu0 %vm303_vm3, %v4017_v16  ;;  %v3630_v16 = vld [vmem:[%s4721_s1 + $0x584] ss:$8 sps:$4 sm:$0xff]  }
  0xf7   : > { %2157 = vmatpush1.bf16.msra.mxu0 %v3619_v39  ;;  %1876 = vmatprep.mubr.bf16.mxu0 %v3729_v8  ;;  %v357_v63 = vpop.f32.mrf.mxu0  ;;  %v512_v0 = vpop.f32.mrf.mxu1  ;;  %v3679_v39 = vld [vmem:[%s4721_s1 + $0x6d0] ss:$8 sps:$4 sm:$0xff]  }
  0xf8   : > { %2009 = vmatpush1.bf16.msra.mxu1 %v3616_v43  ;;  %2158 = vmatprep.subr.bf16.mxu0 %v3624_v44  ;;  %v3682_v43 = vld [vmem:[%s4721_s1 + $0x640] ss:$8 sps:$4 sm:$0xff]  }
  0xf9   : > { %2316 = vmatprep.subr.bf16.mxu1 %v3627_v46  ;;  %v3685_v44 = vld [vmem:[%s4721_s1 + $0x6c0] ss:$8 sps:$4 sm:$0xff]   ;;  %v3688_v46 = vld [vmem:[%s4721_s1 + $0x630] ss:$8 sps:$4 sm:$0xff]  }
  0xfb   : > { %3203 = vmatmul.mubr.msk.bf16.vlgmr.msra.gmra.mxu1 %vm303_vm3, %v4034_v23  ;;  %2159 = vmatpush1.bf16.msra.mxu0 %v3622_v50  ;;  %v3639_v23 = vld [vmem:[%s4721_s1 + $0x5f4] ss:$8 sps:$4 sm:$0xff]   ;;  %v3699_v50 = vld [vmem:[%s4721_s1 + $0x6a4] ss:$8 sps:$4 sm:$0xff]  }
  0xfc   : > { %2317 = vmatpush1.bf16.msra.mxu1 %v3625_v53  ;;  %2160 = vmatprep.subr.bf16.mxu0 %v3630_v16  ;;  %v3697_v53 = vld [vmem:[%s4721_s1 + $0x6a0] ss:$8 sps:$4 sm:$0xff]   ;;  %v3702_v16 = vld [vmem:[%s4721_s1 + $0x694] ss:$8 sps:$4 sm:$0xff]  }
  0xfd   : > { %2318 = vmatprep.subr.bf16.mxu1 %v3633_v55  ;;  %2036 = vmatprep.mubr.bf16.mxu1 %v3729_v8 }
  0xfe   : > { %3174 = vmatmul.mubr.msk.bf16.gmra.mxu0 %vm303_vm3, %v4036_v24  ;;  %v3645_v24 = vld [vmem:[%s4721_s1 + $0x5e4] ss:$8 sps:$4 sm:$0xff]  }
  0xff   : > { %2161 = vmatpush1.bf16.msra.mxu0 %v3628_v58  ;;  %2186 = vmatprep.mubr.bf16.mxu0 %v3729_v8 }
 0x100   : > { %2319 = vmatpush1.bf16.msra.mxu1 %v3631_v60  ;;  %2162 = vmatprep.subr.bf16.mxu0 %v3636_v61 }
 0x101   : > { %2320 = vmatprep.subr.bf16.mxu1 %v3639_v23 }
 0x103   : > { %3204 = vmatmul.mubr.msk.bf16.gmra.mxu1 %vm303_vm3, %v4065_v35  ;;  %2163 = vmatpush1.bf16.msra.mxu0 %v3634_v1  ;;  %v3651_v35 = vld [vmem:[%s4721_s1 + $0x5d4] ss:$8 sps:$4 sm:$0xff]  }
 0x104   : > { %2321 = vmatpush1.bf16.msra.mxu1 %v3637_v2  ;;  %2164 = vmatprep.subr.bf16.mxu0 %v3642_v3 }
 0x105   : > { %2322 = vmatprep.subr.bf16.mxu1 %v3645_v24  ;;  %2346 = vmatprep.mubr.bf16.mxu1 %v3729_v8 }
 0x107   : > { %2165 = vmatpush1.bf16.msra.mxu0 %v3640_v17 }
 0x108   : > { %2323 = vmatpush1.bf16.msra.mxu1 %v3643_v4  ;;  %2166 = vmatprep.subr.bf16.mxu0 %v3648_v5 }
 0x109   : > { %2324 = vmatprep.subr.bf16.mxu1 %v3651_v35 }
 0x10b   : > { %2167 = vmatpush1.bf16.msra.mxu0 %v3646_v6 }
 0x10c   : > { %2325 = vmatpush1.bf16.msra.mxu1 %v3649_v7  ;;  %2168 = vmatprep.subr.bf16.mxu0 %v3654_v9 }
 0x10d   : > { %2326 = vmatprep.subr.bf16.mxu1 %v3657_v10 }
 0x10f   : > { %2169 = vmatpush1.bf16.msra.mxu0 %v3652_v11 }
 0x110   : > { %2327 = vmatpush1.bf16.msra.mxu1 %v3655_v12  ;;  %2476 = vmatprep.subr.bf16.mxu0 %v3663_v15 }
 0x111   : > { %2328 = vmatprep.subr.bf16.mxu1 %v3660_v13 }
 0x112   : > { %3233 = vmatmul.mubr.msk.bf16.vlgmr.msra.gmra.mxu0 %vm303_vm3, %v3845_v27  ;;  %v3675_v27 = vld [vmem:[%s4721_s1 + $0x6e4] ss:$8 sps:$4 sm:$0xff]  }
 0x113   : > { %2477 = vmatpush1.bf16.msra.mxu0 %v3661_v18  ;;  %2196 = vmatprep.mubr.bf16.mxu0 %v3729_v8 }
 0x114   : > { %2329 = vmatpush1.bf16.msra.mxu1 %v3658_v19  ;;  %2478 = vmatprep.subr.bf16.mxu0 %v3666_v20 }
 0x115   : > { %2636 = vmatprep.subr.bf16.mxu1 %v3669_v22 }
 0x117   : > { %3263 = vmatmul.mubr.msk.bf16.vlgmr.msra.gmra.mxu1 %vm303_vm3, %v3862_v32  ;;  %2479 = vmatpush1.bf16.msra.mxu0 %v3664_v25  ;;  %v3681_v32 = vld [vmem:[%s4721_s1 + $0x6d4] ss:$8 sps:$4 sm:$0xff]  }
 0x118   : > { %2637 = vmatpush1.bf16.msra.mxu1 %v3667_v29  ;;  %2480 = vmatprep.subr.bf16.mxu0 %v3672_v30 }
 0x119   : > { %2638 = vmatprep.subr.bf16.mxu1 %v3675_v27  ;;  %2356 = vmatprep.mubr.bf16.mxu1 %v3729_v8 }
 0x11a   : > { %3234 = vmatmul.mubr.msk.bf16.gmra.mxu0 %vm303_vm3, %v3829_v21  ;;  %v3687_v21 = vld [vmem:[%s4721_s1 + $0x6c4] ss:$8 sps:$4 sm:$0xff]  }
 0x11b   : > { %2481 = vmatpush1.bf16.msra.mxu0 %v3670_v31  ;;  %2506 = vmatprep.mubr.bf16.mxu0 %v3729_v8 }
 0x11c   : > { %2639 = vmatpush1.bf16.msra.mxu1 %v3673_v33  ;;  %2482 = vmatprep.subr.bf16.mxu0 %v3678_v37 }
 0x11d   : > { %2640 = vmatprep.subr.bf16.mxu1 %v3681_v32 }
 0x11f   : > { %3264 = vmatmul.mubr.msk.bf16.gmra.mxu1 %vm303_vm3, %v3847_v28  ;;  %2483 = vmatpush1.bf16.msra.mxu0 %v3676_v38  ;;  %v3693_v28 = vld [vmem:[%s4721_s1 + $0x6b4] ss:$8 sps:$4 sm:$0xff]  }
 0x120   : > { %2641 = vmatpush1.bf16.msra.mxu1 %v3679_v39  ;;  %2484 = vmatprep.subr.bf16.mxu0 %v3684_v41 }
 0x121   : > { %2642 = vmatprep.subr.bf16.mxu1 %v3687_v21  ;;  %2666 = vmatprep.mubr.bf16.mxu1 %v3729_v8 }
 0x123   : > { %2485 = vmatpush1.bf16.msra.mxu0 %v3682_v43 }
 0x124   : > { %2643 = vmatpush1.bf16.msra.mxu1 %v3685_v44  ;;  %2486 = vmatprep.subr.bf16.mxu0 %v3690_v45 }
 0x125   : > { %2644 = vmatprep.subr.bf16.mxu1 %v3693_v28 }
 0x127   : > { %2487 = vmatpush1.bf16.msra.mxu0 %v3688_v46 }
 0x128   : > { %2645 = vmatpush1.bf16.msra.mxu1 %v3691_v48  ;;  %2488 = vmatprep.subr.bf16.mxu0 %v3696_v49 }
 0x129   : > { %2646 = vmatprep.subr.bf16.mxu1 %v3699_v50 }
 0x12b   : > { %2489 = vmatpush1.bf16.msra.mxu0 %v3694_v52 }
 0x12c   : > { %2647 = vmatpush1.bf16.msra.mxu1 %v3697_v53 }
 0x12d   : > { %2648 = vmatprep.subr.bf16.mxu1 %v3702_v16 }
 0x12e   : > { %3293 = vmatmul.mubr.msk.bf16.vlgmr.msra.gmra.mxu0 %vm303_vm3, %v4205_v14 }
 0x12f   : > { %2516 = vmatprep.mubr.bf16.mxu0 %v3729_v8 }
 0x130   : > { %2649 = vmatpush1.bf16.msra.mxu1 %v3700_v54 }
 0x133   : > { %3323 = vmatmul.mubr.msk.bf16.vlgmr.msra.gmra.mxu1 %vm303_vm3, %v4225_v26 }
 0x134   : > { %2676 = vmatprep.mubr.bf16.mxu1 %v3729_v8 }
 0x136   : > { %3294 = vmatmul.mubr.msk.bf16.gmra.mxu0 %vm303_vm3, %v4241_v34 }
 0x13b   : > { %3324 = vmatmul.mubr.msk.bf16.gmra.mxu1 %vm303_vm3, %v4265_v42 }
 0x146   : > { %v647_v55 = vpop.f32.mrf.mxu0 }
 0x147   : > { %v662_v56 = vadd.f32 %v647_v55, %v4405_v36 }
 0x148   : > { %v649_v57 = vpop.f32.mrf.mxu0 }
 0x149   : > { %v663_v14 = vadd.f32 %v649_v57, %v4410_v40 }
 0x14a   : > { %v651_v58 = vpop.f32.mrf.mxu0  ;;  %v795_v60 = vpop.f32.mrf.mxu1 }
 0x14b   : > { %v664_v59 = vadd.f32 %v651_v58, %v4421_v47  ;;  %v810_v61 = vadd.f32 %v795_v60, %v662_v56 }
 0x14c   : > { %v653_v26 = vpop.f32.mrf.mxu0  ;;  %v797_v62 = vpop.f32.mrf.mxu1 }
 0x14d   : > { %v665_v8 = vadd.f32 %v653_v26, %v4429_v51  ;;  %v811_v23 = vadd.f32 %v797_v62, %v663_v14 }
 0x14e   : > { %v657_v34 = vpop.f32.mrf.mxu0  ;;  %v799_v63 = vpop.f32.mrf.mxu1 }
 0x14f   : > { %v812_v0 = vadd.f32 %v799_v63, %v664_v59 }
 0x150   : > { %v658_v42 = vpop.f32.mrf.mxu0  ;;  %v801_v1 = vpop.f32.mrf.mxu1 }
 0x151   : > { %v813_v2 = vadd.f32 %v801_v1, %v665_v8 }
 0x152   : > { %v659_v36 = vpop.f32.mrf.mxu0  ;;  %v805_v3 = vpop.f32.mrf.mxu1 }
 0x154   : > { %v660_v24 = vpop.f32.mrf.mxu0  ;;  %v806_v40 = vpop.f32.mrf.mxu1 }
 0x156   : > { %v807_v17 = vpop.f32.mrf.mxu1 }
 0x158   : > { %v808_v4 = vpop.f32.mrf.mxu1 }
 0x162   : > { %v954_v47 = vpop.f32.mrf.mxu0 }
 0x163   : > { %v969_v5 = vadd.f32 %v954_v47, %v810_v61 }
 0x164   : > { %v956_v35 = vpop.f32.mrf.mxu0 }
 0x165   : > { %v970_v6 = vadd.f32 %v956_v35, %v811_v23 }
 0x166   : > { %v958_v7 = vpop.f32.mrf.mxu0 }
 0x167   : > { %v971_v51 = vadd.f32 %v958_v7, %v812_v0  ;;  %v1113_v9 = vpop.f32.mrf.mxu1 }
 0x168   : > { %v1128_v10 = vadd.f32 %v1113_v9, %v969_v5  ;;  %v960_v11 = vpop.f32.mrf.mxu0 }
 0x169   : > { %v972_v12 = vadd.f32 %v960_v11, %v813_v2  ;;  %v1115_v15 = vpop.f32.mrf.mxu1 }
 0x16a   : > { %v1129_v13 = vadd.f32 %v1115_v15, %v970_v6  ;;  %v964_v18 = vpop.f32.mrf.mxu0 }
 0x16b   : > { %v1117_v19 = vpop.f32.mrf.mxu1 }
 0x16c   : > { %v1130_v20 = vadd.f32 %v1117_v19, %v971_v51  ;;  %v965_v22 = vpop.f32.mrf.mxu0 }
 0x16d   : > { %v1119_v25 = vpop.f32.mrf.mxu1 }
 0x16e   : > { %v1131_v29 = vadd.f32 %v1119_v25, %v972_v12  ;;  %v966_v30 = vpop.f32.mrf.mxu0 }
 0x16f   : > { %v1123_v27 = vpop.f32.mrf.mxu1 }
 0x170   : > { %v967_v31 = vpop.f32.mrf.mxu0 }
 0x171   : > { %v1124_v33 = vpop.f32.mrf.mxu1 }
 0x173   : > { %v1125_v37 = vpop.f32.mrf.mxu1 }
 0x175   : > { %v1126_v32 = vpop.f32.mrf.mxu1 }
 0x17e   : > { %v1261_v38 = vpop.f32.mrf.mxu0 }
 0x17f   : > { %v1276_v39 = vadd.f32 %v1261_v38, %v1128_v10 }
 0x180   : > { %v1263_v41 = vpop.f32.mrf.mxu0 }
 0x181   : > { %v1277_v21 = vadd.f32 %v1263_v41, %v1129_v13 }
 0x182   : > { %v1265_v43 = vpop.f32.mrf.mxu0 }
 0x183   : > { %v1278_v44 = vadd.f32 %v1265_v43, %v1130_v20  ;;  %v1409_v45 = vpop.f32.mrf.mxu1 }
 0x184   : > { %v1424_v28 = vadd.f32 %v1409_v45, %v1276_v39  ;;  %v1267_v46 = vpop.f32.mrf.mxu0 }
 0x185   : > { %v1279_v48 = vadd.f32 %v1267_v46, %v1131_v29  ;;  %v1411_v49 = vpop.f32.mrf.mxu1 }
 0x186   : > { %v1425_v50 = vadd.f32 %v1411_v49, %v1277_v21  ;;  %v1271_v52 = vpop.f32.mrf.mxu0 }
 0x187   : > { %v1413_v53 = vpop.f32.mrf.mxu1 }
 0x188   : > { %v1426_v16 = vadd.f32 %v1413_v53, %v1278_v44  ;;  %v1272_v54 = vpop.f32.mrf.mxu0 }
 0x189   : > { %v1415_v55 = vpop.f32.mrf.mxu1 }
 0x18a   : > { %v1427_v56 = vadd.f32 %v1415_v55, %v1279_v48  ;;  %v1273_v57 = vpop.f32.mrf.mxu0 }
 0x18b   : > { %v1419_v14 = vpop.f32.mrf.mxu1 }
 0x18c   : > { %v1274_v58 = vpop.f32.mrf.mxu0 }
 0x18d   : > { %v1420_v59 = vpop.f32.mrf.mxu1 }
 0x18f   : > { %v1421_v60 = vpop.f32.mrf.mxu1 }
 0x191   : > { %v1422_v61 = vpop.f32.mrf.mxu1 }
 0x19a   : > { %v1547_v26 = vpop.f32.mrf.mxu0 }
 0x19b   : > { %v1571_v62 = vrot.slane %v1547_v26, 1 }
 0x19c   : > { %v1549_v8 = vpop.f32.mrf.mxu0 }
 0x19d   : > { %v1574_v42 = vrot.slane %v1549_v8, 1 }
 0x19e   : > { %v1551_v23 = vpop.f32.mrf.mxu0 }
 0x19f   : > { %v1572_v34 = vrot.slane %v1551_v23, 1  ;;  %v1708_v63 = vpop.f32.mrf.mxu1 }
 0x1a0   : > { %v1553_v0 = vpop.f32.mrf.mxu0  ;;  %v1731_v47 = vrot.slane %v1708_v63, 1 }
 0x1a1   : > { %v1573_v1 = vsel %vm385_vm0, %v1571_v62, %v1572_v34  ;;  %v1575_v2 = vrot.slane %v1553_v0, 1  ;;  %v1710_v36 = vpop.f32.mrf.mxu1 }
 0x1a2   : > { %v1585_v3 = vadd.f32 %v1573_v1, %v1424_v28  ;;  %v1557_v24 = vpop.f32.mrf.mxu0  ;;  %v1734_v10 = vrot.slane %v1710_v36, 1  ;;  %v2711_v36 = vlaneseq }
 0x1a3   : > { %v1576_v40 = vsel %vm385_vm0, %v1574_v42, %v1575_v2  ;;  %v1577_v17 = vrot.slane %v1557_v24, 1  ;;  %v1712_v4 = vpop.f32.mrf.mxu1 }
 0x1a4   : > { %v1586_v5 = vadd.f32 %v1576_v40, %v1425_v50  ;;  %v1732_v35 = vrot.slane %v1712_v4, 1  ;;  %v1559_v6 = vpop.f32.mrf.mxu0  ;;  %v2712_v40 = vshrl.u32 %v2711_v36, 7 }
 0x1a5   : > { %v1578_v7 = vsel %vm385_vm0, %v1572_v34, %v1577_v17  ;;  %v1579_v51 = vrot.slane %v1559_v6, 1  ;;  %v1714_v9 = vpop.f32.mrf.mxu1 }
 0x1a6   : > { %v1587_v11 = vadd.f32 %v1578_v7, %v1426_v16  ;;  %v1733_v12 = vsel %vm385_vm0, %v1731_v47, %v1732_v35  ;;  %v1735_v15 = vrot.slane %v1714_v9, 1  ;;  %v1561_v13 = vpop.f32.mrf.mxu0  ;;  %v2713_v6 = vsub.s32 0, %v2712_v40 }
 0x1a7   : > { %v4623_v18 = vadd.f32 %v1733_v12, %v1585_v3  ;;  %v1580_v19 = vsel %vm385_vm0, %v1575_v2, %v1579_v51  ;;  %v1718_v20 = vpop.f32.mrf.mxu1  ;;  %v2717_v12 = vsub.s32 1, %v2712_v40 }
 0x1a8   : > { %v1588_v22 = vadd.f32 %v1580_v19, %v1427_v56  ;;  %v1736_v25 = vsel %vm385_vm0, %v1734_v10, %v1735_v15  ;;  %v1737_v29 = vrot.slane %v1718_v20, 1  ;;  %v1562_v30 = vpop.f32.mrf.mxu0  ;;  %v2709_v10 = vld [vmem:[%s4722_s2] sm:$0x3] }
 0x1a9   : > { %v4627_v27 = vadd.f32 %v1736_v25, %v1586_v5  ;;  %v1720_v31 = vpop.f32.mrf.mxu1  ;;  %v4666_v30 = vrot.slane %v2709_v10, %v2713_v6 }
 0x1aa   : > { %v1738_v33 = vsel %vm385_vm0, %v1732_v35, %v1737_v29  ;;  %v1739_v37 = vrot.slane %v1720_v31, 1 }
 0x1ab   : > { %v4630_v32 = vadd.f32 %v1738_v33, %v1587_v11  ;;  %v1722_v38 = vpop.f32.mrf.mxu1 }
 0x1ac   : > { %v1740_v39 = vsel %vm385_vm0, %v1735_v15, %v1739_v37 }
 0x1ad   : > { %v4633_v41 = vadd.f32 %v1740_v39, %v1588_v22  ;;  %v1723_v21 = vpop.f32.mrf.mxu1 }
 0x1b6   : > { %v1868_v43 = vpop.f32.mrf.mxu0 }
 0x1b7   : > { %v1891_v7 = vrot.slane %v1868_v43, 1 }
 0x1b8   : > { %v1870_v44 = vpop.f32.mrf.mxu0 }
 0x1b9   : > { %v1894_v51 = vrot.slane %v1870_v44, 1 }
 0x1ba   : > { %v1872_v45 = vpop.f32.mrf.mxu0 }
 0x1bb   : > { %v2028_v28 = vpop.f32.mrf.mxu1  ;;  %v1892_v17 = vrot.slane %v1872_v45, 1  ;;  %v4673_v45 = vrot.slane %v2709_v10, %v2717_v12 }
 0x1bc   : > { %v1874_v46 = vpop.f32.mrf.mxu0  ;;  %v2051_v11 = vrot.slane %v2028_v28, 1 }
 0x1bd   : > { %v2030_v48 = vpop.f32.mrf.mxu1  ;;  %v1895_v4 = vrot.slane %v1874_v46, 1  ;;  %v1893_v15 = vsel %vm385_vm0, %v1891_v7, %v1892_v17 }
 0x1be   : > { %v1878_v49 = vpop.f32.mrf.mxu0  ;;  %v2054_v19 = vrot.slane %v2030_v48, 1  ;;  %v1905_v21 = vadd.f32 %v1893_v15, %v4623_v18 }
 0x1bf   : > { %v2032_v50 = vpop.f32.mrf.mxu1  ;;  %v1897_v47 = vrot.slane %v1878_v49, 1  ;;  %v1896_v13 = vsel %vm385_vm0, %v1894_v51, %v1895_v4 }
 0x1c0   : > { %v1880_v52 = vpop.f32.mrf.mxu0  ;;  %v2052_v5 = vrot.slane %v2032_v50, 1  ;;  %v1906_v43 = vadd.f32 %v1896_v13, %v4627_v27 }
 0x1c1   : > { %v4635_v53 = vpop.f32.mrf.mxu1  ;;  %v1899_v35 = vrot.slane %v1880_v52, 1  ;;  %v1898_v22 = vsel %vm385_vm0, %v1892_v17, %v1897_v47 }
 0x1c2   : > { %v1882_v16 = vpop.f32.mrf.mxu0  ;;  %v2055_v9 = vrot.slane %v4635_v53, 1  ;;  %v2053_v25 = vsel %vm385_vm0, %v2051_v11, %v2052_v5  ;;  %v1907_v28 = vadd.f32 %v1898_v22, %v4630_v32 }
 0x1c3   : > { %v2038_v54 = vpop.f32.mrf.mxu1  ;;  %v1900_v29 = vsel %vm385_vm0, %v1895_v4, %v1899_v35  ;;  %v2065_v52 = vadd.f32 %v2053_v25, %v1905_v21 }
 0x1c4   : > { %v1883_v55 = vpop.f32.mrf.mxu0  ;;  %v2057_v20 = vrot.slane %v2038_v54, 1  ;;  %v2056_v31 = vsel %vm385_vm0, %v2054_v19, %v2055_v9  ;;  %v1908_v53 = vadd.f32 %v1900_v29, %v4633_v41 }
 0x1c5   : > { %v2040_v56 = vpop.f32.mrf.mxu1  ;;  %v2066_v16 = vadd.f32 %v2056_v31, %v1906_v43 }
 0x1c6   : > { %v2059_v33 = vrot.slane %v2040_v56, 1  ;;  %v2058_v46 = vsel %vm385_vm0, %v2052_v5, %v2057_v20 }
 0x1c7   : > { %v2042_v57 = vpop.f32.mrf.mxu1 }
 0x1c8   : > { %v2060_v27 = vsel %vm385_vm0, %v2055_v9, %v2059_v33  ;;  %v2067_v57 = vadd.f32 %v2058_v46, %v1907_v28 }
 0x1c9   : > { %v2043_v14 = vpop.f32.mrf.mxu1 }
 0x1d2   : > { %v2188_v58 = vpop.f32.mrf.mxu0 }
 0x1d3   : > { %v2211_v37 = vrot.slane %v2188_v58, 1 }
 0x1d4   : > { %v4637_v59 = vpop.f32.mrf.mxu0 }
 0x1d5   : > { %v2214_v18 = vrot.slane %v4637_v59, 1 }
 0x1d6   : > { %v4639_v60 = vpop.f32.mrf.mxu0 }
 0x1d7   : > { %v4641_v61 = vpop.f32.mrf.mxu1  ;;  %v2212_v38 = vrot.slane %v4639_v60, 1 }
 0x1d8   : > { %v4643_v26 = vpop.f32.mrf.mxu0  ;;  %v2371_v55 = vrot.slane %v4641_v61, 1 }
 0x1d9   : > { %v4645_v8 = vpop.f32.mrf.mxu1  ;;  %v2215_v44 = vrot.slane %v4643_v26, 1  ;;  %v2213_v54 = vsel %vm385_vm0, %v2211_v37, %v2212_v38 }
 0x1da   : > { %v2198_v62 = vpop.f32.mrf.mxu0  ;;  %v2374_v58 = vrot.slane %v4645_v8, 1  ;;  %v2225_v61 = vadd.f32 %v2213_v54, %v2065_v52 }
 0x1db   : > { %v4647_v23 = vpop.f32.mrf.mxu1  ;;  %v2217_v48 = vrot.slane %v2198_v62, 1  ;;  %v2216_v14 = vsel %vm385_vm0, %v2214_v18, %v2215_v44 }
 0x1dc   : > { %v4649_v34 = vpop.f32.mrf.mxu0  ;;  %v2372_v49 = vrot.slane %v4647_v23, 1 }
 0x1dd   : > { %v4651_v63 = vpop.f32.mrf.mxu1  ;;  %v2218_v41 = vsel %vm385_vm0, %v2212_v38, %v2217_v48 }
 0x1de   : > { %v2202_v0 = vpop.f32.mrf.mxu0  ;;  %v2375_v32 = vrot.slane %v4651_v63, 1  ;;  %v2373_v59 = vsel %vm385_vm0, %v2371_v55, %v2372_v49  ;;  %v2219_v63 = vrot.slane %v4649_v34, 1  ;;  %v2227_v47 = vadd.f32 %v2218_v41, %v2067_v57 }
 0x1df   : > { %v4653_v42 = vpop.f32.mrf.mxu1  ;;  %v2385_v5 = vadd.f32 %v2373_v59, %v2225_v61 }
 0x1e0   : > { %v2203_v1 = vpop.f32.mrf.mxu0  ;;  %v2377_v62 = vrot.slane %v4653_v42, 1  ;;  %v2376_v40 = vsel %vm385_vm0, %v2374_v58, %v2375_v32  ;;  %v2220_v11 = vsel %vm385_vm0, %v2215_v44, %v2219_v63 }
 0x1e1   : > { %v4655_v2 = vpop.f32.mrf.mxu1  ;;  %v2068_v1 = vadd.f32 %v2060_v27, %v1908_v53 }
 0x1e2   : > { %v2379_v35 = vrot.slane %v4655_v2, 1  ;;  %v2378_v7 = vsel %vm385_vm0, %v2372_v49, %v2377_v62 }
 0x1e3   : > { %v2362_v3 = vpop.f32.mrf.mxu1  ;;  %v2387_v31 = vadd.f32 %v2378_v7, %v2227_v47  ;;  %v2228_v21 = vadd.f32 %v2220_v11, %v2068_v1 }
 0x1e4   : > { %v2380_v33 = vsel %vm385_vm0, %v2375_v32, %v2379_v35 }
 0x1e5   : > { %v2363_v24 = vpop.f32.mrf.mxu1  ;;  %v2388_v53 = vadd.f32 %v2380_v33, %v2228_v21 }
 0x1e6   : > { %v2226_v24 = vadd.f32 %v2216_v14, %v2066_v16 }
 0x1e8   : > { %v2386_v12 = vadd.f32 %v2376_v40, %v2226_v24 }
 0x1ee   : > { %v2508_v39 = vpop.f32.mrf.mxu0 }
 0x1ef   : > { %v2531_v23 = vrot.slane %v2508_v39, 1 }
 0x1f0   : > { %v2510_v50 = vpop.f32.mrf.mxu0 }
 0x1f1   : > { %v2534_v8 = vrot.slane %v2510_v50, 1 }
 0x1f2   : > { %v2512_v56 = vpop.f32.mrf.mxu0 }
 0x1f3   : > { %v2532_v60 = vrot.slane %v2512_v56, 1  ;;  %v2668_v26 = vpop.f32.mrf.mxu1 }
 0x1f4   : > { %v2514_v0 = vpop.f32.mrf.mxu0  ;;  %v2691_v51 = vrot.slane %v2668_v26, 1 }
 0x1f5   : > { %v2535_v36 = vrot.slane %v2514_v0, 1  ;;  %v2670_v3 = vpop.f32.mrf.mxu1  ;;  %v2533_v17 = vsel %vm385_vm0, %v2531_v23, %v2532_v60 }
 0x1f6   : > { %v2518_v4 = vpop.f32.mrf.mxu0  ;;  %v2545_v15 = vadd.f32 %v2533_v17, %v2385_v5  ;;  %v2694_v20 = vrot.slane %v2670_v3, 1 }
 0x1f7   : > { %v2537_v42 = vrot.slane %v2518_v4, 1  ;;  %v2672_v6 = vpop.f32.mrf.mxu1  ;;  %v2536_v34 = vsel %vm385_vm0, %v2534_v8, %v2535_v36 }
 0x1f8   : > { %v2692_v9 = vrot.slane %v2672_v6, 1  ;;  %v2520_v10 = vpop.f32.mrf.mxu0  ;;  %v2546_v37 = vadd.f32 %v2536_v34, %v2386_v12 }
 0x1f9   : > { %v2539_v13 = vrot.slane %v2520_v10, 1  ;;  %v2674_v19 = vpop.f32.mrf.mxu1  ;;  %v2538_v22 = vsel %vm385_vm0, %v2532_v60, %v2537_v42 }
 0x1fa   : > { %v2693_v2 = vsel %vm385_vm0, %v2691_v51, %v2692_v9  ;;  %v2695_v25 = vrot.slane %v2674_v19, 1  ;;  %v2522_v29 = vpop.f32.mrf.mxu0  ;;  %v2547_v46 = vadd.f32 %v2538_v22, %v2387_v31 }
 0x1fb   : > { %v2705_v38 = vadd.f32 %v2693_v2, %v2545_v15  ;;  %v2678_v39 = vpop.f32.mrf.mxu1  ;;  %v2540_v49 = vsel %vm385_vm0, %v2535_v36, %v2539_v13 }
 0x1fc   : > { %v2696_v43 = vsel %vm385_vm0, %v2694_v20, %v2695_v25  ;;  %v2697_v44 = vrot.slane %v2678_v39, 1  ;;  %v2523_v28 = vpop.f32.mrf.mxu0  ;;  %v2548_v56 = vadd.f32 %v2540_v49, %v2388_v53 }
 0x1fd   : > { %v2721_v48 = vadd.f32 %v4666_v30, %v2705_v38  ;;  %v2706_v50 = vadd.f32 %v2696_v43, %v2546_v37  ;;  %v2680_v52 = vpop.f32.mrf.mxu1 }
 0x1fe   : > { %v2698_v16 = vsel %vm385_vm0, %v2692_v9, %v2697_v44  ;;  %v2699_v18 = vrot.slane %v2680_v52, 1 }
 0x1ff   : > { %v2729_v27 = vmul.f32 0.2, %v2721_v48  ;;  %v2722_v54 = vadd.f32 %v4673_v45, %v2706_v50  ;;  %v2707_v55 = vadd.f32 %v2698_v16, %v2547_v46  ;;  %v2682_v32 = vpop.f32.mrf.mxu1  ;;  %vm2725_vm4 = vcmp.ge.f32.partialorder %v2721_v48, 0.0 }
 0x200   : > { %v2700_v57 = vsel %vm385_vm0, %v2695_v25, %v2699_v18 }
 0x201   : > { %vm2726_vm5 = vcmp.ge.f32.partialorder %v2722_v54, 0.0  ;;  %v2730_v14 = vmul.f32 0.2, %v2722_v54  ;;  %v2723_v58 = vadd.f32 %v4666_v30, %v2707_v55  ;;  %v2683_v60 = vpop.f32.mrf.mxu1  ;;  %v2708_v26 = vadd.f32 %v2700_v57, %v2548_v56 }
 0x202   : > { %v2733_v41 = vsel %vm2725_vm4, %v2721_v48, %v2729_v27 }
 0x203   : > { %v2734_v59 = vsel %vm2726_vm5, %v2722_v54, %v2730_v14  ;;  %v2731_v23 = vmul.f32 0.2, %v2723_v58  ;;  %v2724_v0 = vadd.f32 %v4673_v45, %v2708_v26  ;;  %vm2727_vm6 = vcmp.ge.f32.partialorder %v2723_v58, 0.0 }
 0x204   : > { %v3330_v62 = vpack.c.bf16 %v2734_v59, %v2733_v41 }
 0x205   : > { %vm2728_vm7 = vcmp.ge.f32.partialorder %v2724_v0, 0.0  ;;  %v2732_v1 = vmul.f32 0.2, %v2724_v0  ;;  %v2735_v61 = vsel %vm2727_vm6, %v2723_v58, %v2731_v23 }
 0x206   : > { %2749 = vst [vmem:[%s206_s11] sm:$0xff] %v3330_v62 }
 0x207   : > { %v2736_v63 = vsel %vm2728_vm7, %v2724_v0, %v2732_v1 }
 0x208   : > { %v3331_v36 = vpack.c.bf16 %v2736_v63, %v2735_v61 }
 0x20a   : > { %2750 = vst [vmem:[%s206_s11 + $0x8] sm:$0xff] %v3331_v36 }
 0x20b PF: > { %s13_s14 = sadd.s32 1, %s3727_s14   ;;  %s4724_s12 = smov %s3723_s13 }
 0x20c   : > { %p10_p5 = scmp.ge.s32.totalorder %s13_s14, 4   ;;  %s4725_s13 = smov %s4727_s15 }
 0x20e   :  { %12 = sbr.rel (!%p10_p5) target bundleno = 2 (0x2), region = 77 }

// kernel: tile.33
= control target key start
LH: loop header
LB: loop body
LE: loop exit
PB: predicated region body
PF: predicated region fallthrough
CT: control target
= control target key end

     0   :  { %s22_s0 = inlined_call_operand.vmem [shape: f32[32], index: 0, kind: input, shape index: {}]   ;;  %s23_s1 = inlined_call_operand.vmem [shape: f32[8,32], index: 1, kind: output, shape index: {}]  }
   0x1   :  { %v4_v0 = vld [vmem:[%s22_s0] ss:$0 sm:$0xff] }
   0x2   :  { %5 = vst [vmem:[%s23_s1] sm:$0xff] %v4_v0 }

// kernel: tile.34
= control target key start
LH: loop header
LB: loop body
LE: loop exit
PB: predicated region body
PF: predicated region fallthrough
CT: control target
= control target key end

     0   :  { %s7_s6 = smov 3  ;;  %s14_s9 = smov 3  ;;  %vm4_vm0 = vcmask 261120   ;;  %vm11_vm1 = vcmask 1048320   ;;  %vm18_vm2 = vcmask 785920   ;;  %vm25_vm3 = vcmask 523520   ;;  %s79_s0 = inlined_call_operand.vmem [shape: f32[8,32], index: 0, kind: input, shape index: {}]   ;;  %s80_s1 = inlined_call_operand.vmem [shape: f32[1,256], index: 1, kind: output, shape index: {}]  }
   0x1   :  { %v41_v0 = vld [vmem:[%s79_s0 + $0x3] ss:$4 sm:%s7_s6]   ;;  %s48_s10 = smov 96   ;;  %s21_s11 = smov 3  ;;  %v42_v1 = vld [vmem:[%s79_s0 + $0x2] ss:$4 sm:%s14_s9]  }
   0x2   :  { %9 = vrot.lane.b32.xlu0 %v41_v0, %s48_s10  ;;  %v43_v2 = vld [vmem:[%s79_s0 + $0x1] ss:$4 sm:%s21_s11]   ;;  %s2_s16 = smov 3  ;;  %s49_s17 = smov 32  }
   0x3   :  { %23 = vrot.lane.b32.xlu1 %v43_v2, %s49_s17  ;;  %v3_v3 = vld [vmem:[%s79_s0] ss:$4 sm:%s2_s16]   ;;  %s50_s0 = smov 64  }
   0x4   :  { %5 = vst.msk [vmem:[#allocation0] ss:$8 sm:$0x3] %vm4_vm0, %v3_v3  }
   0x6   :  { %16 = vrot.lane.b32.xlu0 %v42_v1, %s50_s0 }
  0x74   :  { %v10_v4 = vpop.permute.xlu0 %9  }
  0x75   :  { %12 = vst.msk [vmem:[#allocation0] ss:$8 sm:$0x3] %vm11_vm1, %v10_v4   ;;  %v24_v5 = vpop.permute.xlu1 %23  }
  0x78   :  { %v17_v6 = vpop.permute.xlu0 %16  }
  0x79   :  { %19 = vst.msk [vmem:[#allocation0] ss:$8 sm:$0x3] %vm18_vm2, %v17_v6  }
  0x7a   :  { %26 = vst.msk [vmem:[#allocation0] ss:$8 sm:$0x3] %vm25_vm3, %v24_v5  }
  0x81   :  { %v31_v7 = vld [vmem:[#allocation0] sm:$0x1]  ;;  %v36_v8 = vld [vmem:[#allocation0 + $0x8] sm:$0x1] }
  0x82   :  { %34 = vst [vmem:[%s80_s1] sm:$0x1] %v31_v7  ;;  %44 = vst [vmem:[%s80_s1 + $0x1] sm:$0x1] %v36_v8 }

// kernel: discriminator_forward.7
= control target key start
LH: loop header
LB: loop body
LE: loop exit
PB: predicated region body
PF: predicated region fallthrough
CT: control target
= control target key end

     0   :  { %s428_s12 = smov 0   ;;  %s430_s13 = smov 0   ;;  %s467_s0 = inlined_call_operand.vmem [shape: bf16[2,1,8,256], index: 0, kind: input, shape index: {}]   ;;  %s468_s1 = inlined_call_operand.vmem [shape: f32[1,256], index: 1, kind: input, shape index: {}]   ;;  %s469_s2 = inlined_call_operand.vmem [shape: f32[1,256], index: 2, kind: input, shape index: {}]   ;;  %s470_s3 = inlined_call_operand.vmem [shape: bf16[2,1,8,256], index: 3, kind: output, shape index: {}]  }
   0x1   :  { %s432_s14 = smov 0  }
   0x2 LB: > { %s25_s15 = sadd.s32 1, %s402_s13  ;;  %p349_p0 = scmp.ge.s32.totalorder %s406_s14, 1  ;;  %s406_s14 = sphi %s432_s14, %s13_s14   ;;  %s402_s13 = sphi %s430_s13, %s472_s13   ;;  %s398_s12 = sphi %s428_s12, %s471_s12  }
   0x3   : > { %p27_p1 = scmp.ge.s32.totalorder %s25_s15, 2  ;;  %p157_p2 = scmp.lt.s32.totalorder %s406_s14, 3 }
   0x5   : > { %s474_s15 = smov (%p27_p1, %s25_s15), 0  ;;  %p158_p3 = pnand %p349_p0, %p157_p2 }
   0x6   : > { %p189_p4 = scmp.lt.s32.totalorder (!%p158_p3), %s398_s12, 1 }
   0x7   : > { %161 = sbr.rel (%p158_p3) target bundleno = 30 (0x1e), region = 32 }
   0xc   : > { %v212_v0 = vlaneseq  ;;  %s476_s12 = smov (!%p189_p4, %s398_s12), 1  ;;  %v210_v2 = vld [vmem:[%s468_s1] sm:$0x3] }
   0xd   : > { %s357_s18 = sshll.u32 %s476_s12, 3  ;;  %v224_v5 = vld [vmem:[%s469_s2] sm:$0x3] }
   0xe   : > { %v213_v1 = vshrl.u32 %v212_v0, 7  ;;  %s197_s23 = scalar_lea.vmem %s467_s0, %s357_s18  ;;  %s206_s26 = scalar_lea.vmem %s470_s3, %s357_s18 }
   0xf   : > { %v207_v6 = vld [vmem:[%s197_s23] sm:$0xff] }
  0x10   : > { %v214_v3 = vsub.s32 0, %v213_v1  ;;  %v218_v4 = vsub.s32 1, %v213_v1  ;;  %v208_v9 = vunpack.c.l.bf16 %v207_v6  ;;  %v209_v10 = vunpack.c.h.bf16 %v207_v6 }
  0x12   : > { %v215_v7 = vrot.slane %v210_v2, %v214_v3  ;;  %v219_v8 = vrot.slane %v210_v2, %v218_v4  ;;  %v229_v11 = vrot.slane %v224_v5, %v214_v3  ;;  %v233_v12 = vrot.slane %v224_v5, %v218_v4 }
  0x14   : > { %v222_v13 = vmul.f32 %v215_v7, %v208_v9  ;;  %v223_v14 = vmul.f32 %v219_v8, %v209_v10 }
  0x16   : > { %v236_v15 = vadd.f32 %v229_v11, %v222_v13  ;;  %v237_v16 = vadd.f32 %v233_v12, %v223_v14 }
  0x18   : > { %vm238_vm0 = vcmp.ge.f32.partialorder %v236_v15, 0.0  ;;  %vm239_vm1 = vcmp.ge.f32.partialorder %v237_v16, 0.0  ;;  %v240_v17 = vmul.f32 0.2, %v236_v15  ;;  %v241_v18 = vmul.f32 0.2, %v237_v16 }
  0x1a   : > { %v242_v19 = vsel %vm238_vm0, %v236_v15, %v240_v17  ;;  %v243_v20 = vsel %vm239_vm1, %v237_v16, %v241_v18 }
  0x1b   : > { %v359_v21 = vpack.c.bf16 %v243_v20, %v242_v19 }
  0x1d   : > { %252 = vst [vmem:[%s206_s26] sm:$0xff] %v359_v21 }
  0x1e PF: > { %s13_s14 = sadd.s32 1, %s406_s14   ;;  %s471_s12 = smov %s402_s13 }
  0x1f   : > { %p10_p5 = scmp.ge.s32.totalorder %s13_s14, 4   ;;  %s472_s13 = smov %s474_s15 }
  0x21   :  { %12 = sbr.rel (!%p10_p5) target bundleno = 2 (0x2), region = 62 }

// kernel: discriminator_forward.6
= control target key start
LH: loop header
LB: loop body
LE: loop exit
PB: predicated region body
PF: predicated region fallthrough
CT: control target
= control target key end

     0   :  { %s3911_s12 = smov 0   ;;  %s3913_s13 = smov 0   ;;  %s4822_s0 = inlined_call_operand.vmem [shape: bf16[2,1,40,144], index: 0, kind: input, shape index: {}]   ;;  %s4823_s1 = inlined_call_operand.vmem [shape: bf16[16,128,256], index: 1, kind: input, shape index: {}]   ;;  %s4824_s2 = inlined_call_operand.vmem [shape: bf16[2,1,8,256], index: 2, kind: output, shape index: {0}]   ;;  %s4825_s3 = inlined_call_operand.vmem [shape: f32[2,1,2,256], index: 3, kind: output, shape index: {1}]  }
   0x1   :  { %s3915_s14 = smov 0  }
   0x2 LB: > { %s26_s15 = sadd.s32 1, %s3882_s13  ;;  %p2914_p0 = scmp.ge.s32.totalorder %s3886_s14, 1  ;;  %s3886_s14 = sphi %s3915_s14, %s14_s14   ;;  %s3882_s13 = sphi %s3913_s13, %s4827_s13   ;;  %s3878_s12 = sphi %s3911_s12, %s4826_s12  }
   0x3   : > { %p28_p1 = scmp.ge.s32.totalorder %s26_s15, 2  ;;  %p162_p2 = scmp.lt.s32.totalorder %s3886_s14, 3 }
   0x5   : > { %s4829_s15 = smov (%p28_p1, %s26_s15), 0  ;;  %p163_p3 = pnand %p2914_p0, %p162_p2 }
   0x6   : > { %p203_p4 = scmp.lt.s32.totalorder (!%p163_p3), %s3878_s12, 1  ;;  %s3889_s17 = smov (!%p163_p3), 112  }
   0x7   : > { %166 = sbr.rel (%p163_p3) target bundleno = 558 (0x22e), region = 28 }
   0xc   : > { %v3469_v0 = vld [vmem:[%s4823_s1 + $0x74] ss:$8 sps:$4 sm:$0xff]   ;;  %v3471_v1 = vld [vmem:[%s4823_s1 + $0x70] ss:$8 sps:$4 sm:$0xff]   ;;  %s4831_s12 = smov (!%p203_p4, %s3878_s12), 1  ;;  %v3888_v4 = vmov 0  }
   0xd   : > { %335 = vmatprep.subr.bf16.mxu0 %v3469_v0  ;;  %v3472_v2 = vld [vmem:[%s4823_s1 + $0xf4] ss:$8 sps:$4 sm:$0xff]   ;;  %v3474_v3 = vld [vmem:[%s4823_s1 + $0xf0] ss:$8 sps:$4 sm:$0xff]   ;;  %367 = vmatprep.mubr.bf16.mxu0 %v3888_v4  ;;  %v3475_v5 = vld [vmem:[%s4823_s1 + $0x64] ss:$8 sps:$4 sm:$0xff]  }
   0xe   : > { %336 = vmatpush1.bf16.msra.mxu0 %v3471_v1  ;;  %v3477_v6 = vld [vmem:[%s4823_s1 + $0x60] ss:$8 sps:$4 sm:$0xff]   ;;  %514 = vmatprep.mubr.bf16.mxu1 %v3888_v4  ;;  %s3435_s28 = smul.u32 40, %s4831_s12  ;;  %v3478_v7 = vld [vmem:[%s4823_s1 + $0xe4] ss:$8 sps:$4 sm:$0xff]   ;;  %vm556_vm0 = vcmask 916480  }
   0xf   : > { %482 = vmatprep.subr.bf16.mxu1 %v3472_v2  ;;  %337 = vmatprep.subr.bf16.mxu0 %v3475_v5  ;;  %v3480_v8 = vld [vmem:[%s4823_s1 + $0xe0] ss:$8 sps:$4 sm:$0xff]   ;;  %v3481_v9 = vld [vmem:[%s4823_s1 + $0x54] ss:$8 sps:$4 sm:$0xff]   ;;  %v3483_v10 = vld [vmem:[%s4823_s1 + $0x50] ss:$8 sps:$4 sm:$0xff]  }
  0x10   : > { %483 = vmatpush1.bf16.msra.mxu1 %v3474_v3  ;;  %s3961_s8 = scalar_lea.vmem %s4822_s0, %s3435_s28  ;;  %v3484_v15 = vld [vmem:[%s4823_s1 + $0xd4] ss:$8 sps:$4 sm:$0xff]   ;;  %v3486_v17 = vld [vmem:[%s4823_s1 + $0xd0] ss:$8 sps:$4 sm:$0xff]   ;;  %v3487_v18 = vld [vmem:[%s4823_s1 + $0x44] ss:$8 sps:$4 sm:$0xff]  }
  0x11   : > { %484 = vmatprep.subr.bf16.mxu1 %v3478_v7  ;;  %v3463_v11 = vld [vmem:[%s3961_s8] ss:$8 sps:$4 sm:$0x1f]   ;;  %v3465_v12 = vld [vmem:[%s3961_s8 + $0x4] ss:$8 sps:$4 sm:$0x1f]  }
  0x12   : > { %338 = vmatpush1.bf16.msra.mxu0 %v3477_v6  ;;  %552 = vrot.lane.b32.xlu0 %v3463_v11, %s3889_s17  ;;  %v3466_v13 = vld [vmem:[%s3961_s8 + $0x8] ss:$8 sps:$4 sm:$0x3e]   ;;  %v3468_v14 = vld [vmem:[%s3961_s8 + $0xc] ss:$8 sps:$4 sm:$0x3e]  }
  0x13   : > { %339 = vmatprep.subr.bf16.mxu0 %v3481_v9  ;;  %v709_v16 = vrot.slane %v3466_v13, 1  ;;  %v3489_v19 = vld [vmem:[%s4823_s1 + $0x40] ss:$8 sps:$4 sm:$0xff]   ;;  %v3490_v20 = vld [vmem:[%s4823_s1 + $0xc4] ss:$8 sps:$4 sm:$0xff]   ;;  %v710_v21 = vrot.slane %v3468_v14, 1 }
  0x14   : > { %485 = vmatpush1.bf16.msra.mxu1 %v3480_v8  ;;  %v3492_v22 = vld [vmem:[%s4823_s1 + $0xc0] ss:$8 sps:$4 sm:$0xff]   ;;  %v3493_v23 = vld [vmem:[%s3961_s8 + $0x14] ss:$8 sps:$4 sm:$0x7c]   ;;  %vm1598_vm1 = vcmask 1046528  }
  0x15   : > { %486 = vmatprep.subr.bf16.mxu1 %v3484_v15  ;;  %711 = vrot.lane.b32.xlu1 %v709_v16, %s3889_s17  ;;  %v3495_v24 = vld [vmem:[%s3961_s8 + $0x10] ss:$8 sps:$4 sm:$0x7c]   ;;  %v3496_v25 = vld [vmem:[%s4823_s1 + $0x34] ss:$8 sps:$4 sm:$0xff]   ;;  %v1166_v26 = vrot.slane %v3493_v23, 2 }
  0x16   : > { %340 = vmatpush1.bf16.msra.mxu0 %v3483_v10  ;;  %554 = vrot.lane.b32.xlu0 %v3465_v12, %s3889_s17  ;;  %v3498_v27 = vld [vmem:[%s4823_s1 + $0x30] ss:$8 sps:$4 sm:$0xff]   ;;  %v1165_v28 = vrot.slane %v3495_v24, 2  ;;  %v3499_v29 = vld [vmem:[%s4823_s1 + $0xb4] ss:$8 sps:$4 sm:$0xff]   ;;  %s3432_s19 = sshll.u32 %s4831_s12, 3 }
  0x17   : > { %341 = vmatprep.subr.bf16.mxu0 %v3487_v18  ;;  %v3501_v30 = vld [vmem:[%s4823_s1 + $0xb0] ss:$8 sps:$4 sm:$0xff]   ;;  %v3502_v31 = vld [vmem:[%s3961_s8 + $0x1c] ss:$8 sps:$4 sm:$0xf8]   ;;  %s220_s22 = scalar_lea.vmem %s4824_s2, %s3432_s19  ;;  %s3433_s23 = sshll.u32 %s4831_s12, 2 }
  0x18   : > { %487 = vmatpush1.bf16.msra.mxu1 %v3486_v17  ;;  %v3504_v32 = vld [vmem:[%s3961_s8 + $0x18] ss:$8 sps:$4 sm:$0xf8]   ;;  %v3505_v33 = vld [vmem:[%s4823_s1 + $0x24] ss:$8 sps:$4 sm:$0xff]   ;;  %v1324_v34 = vrot.slane %v3502_v31, 3 }
  0x19   : > { %488 = vmatprep.subr.bf16.mxu1 %v3490_v20  ;;  %713 = vrot.lane.b32.xlu1 %v710_v21, %s3889_s17  ;;  %v3507_v35 = vld [vmem:[%s4823_s1 + $0x20] ss:$8 sps:$4 sm:$0xff]   ;;  %v1323_v36 = vrot.slane %v3504_v32, 3  ;;  %v3508_v37 = vld [vmem:[%s4823_s1 + $0xa4] ss:$8 sps:$4 sm:$0xff]  }
  0x1a   : > { %342 = vmatpush1.bf16.msra.mxu0 %v3489_v19  ;;  %1167 = vrot.lane.b32.xlu0 %v1165_v28, %s3889_s17  ;;  %v3510_v38 = vld [vmem:[%s4823_s1 + $0xa0] ss:$8 sps:$4 sm:$0xff]   ;;  %v3511_v39 = vld [vmem:[%s4823_s1 + $0x14] ss:$8 sps:$4 sm:$0xff]   ;;  %v3513_v40 = vld [vmem:[%s4823_s1 + $0x10] ss:$8 sps:$4 sm:$0xff]  }
  0x1b   : > { %343 = vmatprep.subr.bf16.mxu0 %v3496_v25  ;;  %v3514_v41 = vld [vmem:[%s4823_s1 + $0x94] ss:$8 sps:$4 sm:$0xff]   ;;  %v3516_v42 = vld [vmem:[%s4823_s1 + $0x90] ss:$8 sps:$4 sm:$0xff]   ;;  %v3517_v43 = vld [vmem:[%s4823_s1 + $0x4] ss:$8 sps:$4 sm:$0xff]  }
  0x1c   : > { %489 = vmatpush1.bf16.msra.mxu1 %v3492_v22  ;;  %v3519_v44 = vld [vmem:[%s4823_s1] ss:$8 sps:$4 sm:$0xff]   ;;  %v3520_v45 = vld [vmem:[%s4823_s1 + $0x84] ss:$8 sps:$4 sm:$0xff]   ;;  %v3527_v49 = vld [vmem:[%s4823_s1 + $0x174] ss:$8 sps:$4 sm:$0xff]  }
  0x1d   : > { %490 = vmatprep.subr.bf16.mxu1 %v3499_v29  ;;  %1169 = vrot.lane.b32.xlu1 %v1166_v26, %s3889_s17  ;;  %v3523_v46 = vld [vmem:[%s3961_s8] ss:$8 sps:$4 sm:$0x1f]   ;;  %v4053_v48 = vld [vmem:[%s3961_s8 + $0x8] ss:$8 sps:$4 sm:$0x3e]  }
  0x1e   : > { %344 = vmatpush1.bf16.msra.mxu0 %v3498_v27  ;;  %1325 = vrot.lane.b32.xlu0 %v1323_v36, %s3889_s17  ;;  %v3522_v47 = vld [vmem:[%s4823_s1 + $0x80] ss:$8 sps:$4 sm:$0xff]   ;;  %v3525_v50 = vld [vmem:[%s4823_s1 + $0x170] ss:$8 sps:$4 sm:$0xff]   ;;  %v3530_v51 = vld [vmem:[%s4823_s1 + $0x1f4] ss:$8 sps:$4 sm:$0xff]  }
  0x1f   : > { %345 = vmatprep.subr.bf16.mxu0 %v3505_v33  ;;  %v3533_v52 = vld [vmem:[%s4823_s1 + $0x164] ss:$8 sps:$4 sm:$0xff]   ;;  %v400_v53 = vrot.slane %v4053_v48, 1  ;;  %v3528_v54 = vld [vmem:[%s4823_s1 + $0x1f0] ss:$8 sps:$4 sm:$0xff]  }
  0x20   : > { %491 = vmatpush1.bf16.msra.mxu1 %v3501_v30  ;;  %v3531_v55 = vld [vmem:[%s4823_s1 + $0x160] ss:$8 sps:$4 sm:$0xff]   ;;  %v3536_v56 = vld [vmem:[%s4823_s1 + $0x1e4] ss:$8 sps:$4 sm:$0xff]   ;;  %v3539_v57 = vld [vmem:[%s4823_s1 + $0x154] ss:$8 sps:$4 sm:$0xff]  }
  0x21   : > { %492 = vmatprep.subr.bf16.mxu1 %v3508_v37  ;;  %1327 = vrot.lane.b32.xlu1 %v1324_v34, %s3889_s17  ;;  %v3534_v58 = vld [vmem:[%s4823_s1 + $0x1e0] ss:$8 sps:$4 sm:$0xff]   ;;  %v3537_v59 = vld [vmem:[%s4823_s1 + $0x150] ss:$8 sps:$4 sm:$0xff]   ;;  %v3542_v60 = vld [vmem:[%s4823_s1 + $0x1d4] ss:$8 sps:$4 sm:$0xff]  }
  0x22   : > { %346 = vmatpush1.bf16.msra.mxu0 %v3507_v35  ;;  %v3545_v61 = vld [vmem:[%s4823_s1 + $0x144] ss:$8 sps:$4 sm:$0xff]   ;;  %v3540_v62 = vld [vmem:[%s4823_s1 + $0x1d0] ss:$8 sps:$4 sm:$0xff]   ;;  %v3543_v63 = vld [vmem:[%s4823_s1 + $0x140] ss:$8 sps:$4 sm:$0xff]  }
  0x23   : > { %347 = vmatprep.subr.bf16.mxu0 %v3511_v39  ;;  %v3548_v0 = vld [vmem:[%s4823_s1 + $0x1c4] ss:$8 sps:$4 sm:$0xff]   ;;  %v3551_v1 = vld [vmem:[%s4823_s1 + $0x134] ss:$8 sps:$4 sm:$0xff]   ;;  %v3546_v2 = vld [vmem:[%s4823_s1 + $0x1c0] ss:$8 sps:$4 sm:$0xff]  }
  0x24   : > { %493 = vmatpush1.bf16.msra.mxu1 %v3510_v38  ;;  %v3549_v3 = vld [vmem:[%s4823_s1 + $0x130] ss:$8 sps:$4 sm:$0xff]   ;;  %v3554_v5 = vld [vmem:[%s4823_s1 + $0x1b4] ss:$8 sps:$4 sm:$0xff]   ;;  %v3557_v6 = vld [vmem:[%s4823_s1 + $0x124] ss:$8 sps:$4 sm:$0xff]  }
  0x25   : > { %494 = vmatprep.subr.bf16.mxu1 %v3514_v41  ;;  %v3552_v7 = vld [vmem:[%s4823_s1 + $0x1b0] ss:$8 sps:$4 sm:$0xff]   ;;  %v3555_v8 = vld [vmem:[%s4823_s1 + $0x120] ss:$8 sps:$4 sm:$0xff]   ;;  %v3560_v9 = vld [vmem:[%s4823_s1 + $0x1a4] ss:$8 sps:$4 sm:$0xff]  }
  0x26   : > { %348 = vmatpush1.bf16.msra.mxu0 %v3513_v40  ;;  %v3563_v10 = vld [vmem:[%s4823_s1 + $0x114] ss:$8 sps:$4 sm:$0xff]   ;;  %v3558_v11 = vld [vmem:[%s4823_s1 + $0x1a0] ss:$8 sps:$4 sm:$0xff]   ;;  %v3561_v12 = vld [vmem:[%s4823_s1 + $0x110] ss:$8 sps:$4 sm:$0xff]  }
  0x27   : > { %349 = vmatprep.subr.bf16.mxu0 %v3517_v43  ;;  %v3566_v13 = vld [vmem:[%s4823_s1 + $0x194] ss:$8 sps:$4 sm:$0xff]   ;;  %v3569_v14 = vld [vmem:[%s4823_s1 + $0x104] ss:$8 sps:$4 sm:$0xff]   ;;  %v3564_v15 = vld [vmem:[%s4823_s1 + $0x190] ss:$8 sps:$4 sm:$0xff]  }
  0x28   : > { %495 = vmatpush1.bf16.msra.mxu1 %v3516_v42  ;;  %v3567_v16 = vld [vmem:[%s4823_s1 + $0x100] ss:$8 sps:$4 sm:$0xff]   ;;  %v3572_v17 = vld [vmem:[%s4823_s1 + $0x184] ss:$8 sps:$4 sm:$0xff]   ;;  %v3575_v18 = vld [vmem:[%s4823_s1 + $0x274] ss:$8 sps:$4 sm:$0xff]  }
  0x29   : > { %496 = vmatprep.subr.bf16.mxu1 %v3520_v45  ;;  %v3570_v19 = vld [vmem:[%s4823_s1 + $0x180] ss:$8 sps:$4 sm:$0xff]   ;;  %v3578_v20 = vld [vmem:[%s4823_s1 + $0x2f4] ss:$8 sps:$4 sm:$0xff]   ;;  %v3573_v22 = vld [vmem:[%s4823_s1 + $0x270] ss:$8 sps:$4 sm:$0xff]  }
  0x2a   : > { %350 = vmatpush1.bf16.msra.mxu0 %v3519_v44  ;;  %v3581_v25 = vld [vmem:[%s4823_s1 + $0x264] ss:$8 sps:$4 sm:$0xff]   ;;  %v3576_v27 = vld [vmem:[%s4823_s1 + $0x2f0] ss:$8 sps:$4 sm:$0xff]   ;;  %v3579_v28 = vld [vmem:[%s4823_s1 + $0x260] ss:$8 sps:$4 sm:$0xff]  }
  0x2b   : > { %639 = vmatprep.subr.bf16.mxu0 %v3527_v49  ;;  %v3584_v29 = vld [vmem:[%s4823_s1 + $0x2e4] ss:$8 sps:$4 sm:$0xff]   ;;  %v3587_v31 = vld [vmem:[%s4823_s1 + $0x254] ss:$8 sps:$4 sm:$0xff]   ;;  %v3582_v33 = vld [vmem:[%s4823_s1 + $0x2e0] ss:$8 sps:$4 sm:$0xff]  }
  0x2c   : > { %497 = vmatpush1.bf16.msra.mxu1 %v3522_v47  ;;  %v3585_v34 = vld [vmem:[%s4823_s1 + $0x250] ss:$8 sps:$4 sm:$0xff]   ;;  %v3590_v35 = vld [vmem:[%s4823_s1 + $0x2d4] ss:$8 sps:$4 sm:$0xff]   ;;  %v3593_v36 = vld [vmem:[%s4823_s1 + $0x244] ss:$8 sps:$4 sm:$0xff]  }
  0x2d   : > { %368 = vmatmul.mubr.bf16.vlgmr.msra.gmra.mxu0 %v3523_v46  ;;  %797 = vmatprep.subr.bf16.mxu1 %v3530_v51  ;;  %v3588_v37 = vld [vmem:[%s4823_s1 + $0x2d0] ss:$8 sps:$4 sm:$0xff]   ;;  %v3591_v38 = vld [vmem:[%s4823_s1 + $0x240] ss:$8 sps:$4 sm:$0xff]   ;;  %v3596_v39 = vld [vmem:[%s4823_s1 + $0x2c4] ss:$8 sps:$4 sm:$0xff]  }
  0x2e   : > { %640 = vmatpush1.bf16.msra.mxu0 %v3525_v50  ;;  %671 = vmatprep.mubr.bf16.mxu0 %v3888_v4  ;;  %v3599_v40 = vld [vmem:[%s4823_s1 + $0x234] ss:$8 sps:$4 sm:$0xff]   ;;  %v3594_v41 = vld [vmem:[%s4823_s1 + $0x2c0] ss:$8 sps:$4 sm:$0xff]   ;;  %v3597_v42 = vld [vmem:[%s4823_s1 + $0x230] ss:$8 sps:$4 sm:$0xff]  }
  0x2f   : > { %641 = vmatprep.subr.bf16.mxu0 %v3533_v52  ;;  %515 = vmatmul.mubr.bf16.vlgmr.msra.gmra.mxu1 %v400_v53  ;;  %v3602_v43 = vld [vmem:[%s4823_s1 + $0x2b4] ss:$8 sps:$4 sm:$0xff]   ;;  %v3605_v44 = vld [vmem:[%s4823_s1 + $0x224] ss:$8 sps:$4 sm:$0xff]   ;;  %v3600_v45 = vld [vmem:[%s4823_s1 + $0x2b0] ss:$8 sps:$4 sm:$0xff]  }
  0x30   : > { %798 = vmatpush1.bf16.msra.mxu1 %v3528_v54  ;;  %829 = vmatprep.mubr.bf16.mxu1 %v3888_v4  ;;  %v3603_v46 = vld [vmem:[%s4823_s1 + $0x220] ss:$8 sps:$4 sm:$0xff]   ;;  %v3608_v47 = vld [vmem:[%s4823_s1 + $0x2a4] ss:$8 sps:$4 sm:$0xff]   ;;  %v3611_v49 = vld [vmem:[%s4823_s1 + $0x214] ss:$8 sps:$4 sm:$0xff]  }
  0x31   : > { %799 = vmatprep.subr.bf16.mxu1 %v3536_v56  ;;  %v3606_v50 = vld [vmem:[%s4823_s1 + $0x2a0] ss:$8 sps:$4 sm:$0xff]   ;;  %v3609_v51 = vld [vmem:[%s4823_s1 + $0x210] ss:$8 sps:$4 sm:$0xff]   ;;  %v3614_v52 = vld [vmem:[%s4823_s1 + $0x294] ss:$8 sps:$4 sm:$0xff]  }
  0x32   : > { %642 = vmatpush1.bf16.msra.mxu0 %v3531_v55  ;;  %v3617_v54 = vld [vmem:[%s4823_s1 + $0x204] ss:$8 sps:$4 sm:$0xff]   ;;  %v3612_v55 = vld [vmem:[%s4823_s1 + $0x290] ss:$8 sps:$4 sm:$0xff]   ;;  %v3736_v48 = vld [vmem:[%s4823_s1 + $0x5d4] ss:$8 sps:$4 sm:$0xff]  }
  0x33   : > { %643 = vmatprep.subr.bf16.mxu0 %v3539_v57  ;;  %v4254_v56 = vld [vmem:[%s3961_s8 + $0x10] ss:$8 sps:$4 sm:$0x7c]   ;;  %v3615_v57 = vld [vmem:[%s4823_s1 + $0x200] ss:$8 sps:$4 sm:$0xff]  }
  0x34   : > { %800 = vmatpush1.bf16.msra.mxu1 %v3534_v58  ;;  %v3620_v58 = vld [vmem:[%s4823_s1 + $0x284] ss:$8 sps:$4 sm:$0xff]  }
  0x35   : > { %801 = vmatprep.subr.bf16.mxu1 %v3542_v60  ;;  %v3618_v60 = vld [vmem:[%s4823_s1 + $0x280] ss:$8 sps:$4 sm:$0xff]  }
  0x36   : > { %644 = vmatpush1.bf16.msra.mxu0 %v3537_v59  ;;  %v3624_v59 = vld [vmem:[%s4823_s1 + $0x374] ss:$8 sps:$4 sm:$0xff]  }
  0x37   : > { %645 = vmatprep.subr.bf16.mxu0 %v3545_v61  ;;  %v864_v61 = vrot.slane %v4254_v56, 2  ;;  %v3829_v56 = vld [vmem:[%s4823_s1 + $0x754] ss:$8 sps:$4 sm:$0xff]  }
  0x38   : > { %802 = vmatpush1.bf16.msra.mxu1 %v3540_v62  ;;  %v4270_v62 = vld [vmem:[%s3961_s8 + $0x18] ss:$8 sps:$4 sm:$0xf8]  }
  0x39   : > { %803 = vmatprep.subr.bf16.mxu1 %v3548_v0  ;;  %v3628_v0 = vld [vmem:[%s4823_s1 + $0x3f4] ss:$8 sps:$4 sm:$0xff]  }
  0x3a   : > { %646 = vmatpush1.bf16.msra.mxu0 %v3543_v63  ;;  %v3622_v63 = vld [vmem:[%s4823_s1 + $0x370] ss:$8 sps:$4 sm:$0xff]  }
  0x3b   : > { %647 = vmatprep.subr.bf16.mxu0 %v3551_v1  ;;  %v3631_v1 = vld [vmem:[%s4823_s1 + $0x364] ss:$8 sps:$4 sm:$0xff]  }
  0x3c   : > { %804 = vmatpush1.bf16.msra.mxu1 %v3546_v2  ;;  %v3626_v2 = vld [vmem:[%s4823_s1 + $0x3f0] ss:$8 sps:$4 sm:$0xff]  }
  0x3d   : > { %805 = vmatprep.subr.bf16.mxu1 %v3554_v5  ;;  %v3629_v5 = vld [vmem:[%s4823_s1 + $0x360] ss:$8 sps:$4 sm:$0xff]  }
  0x3e   : > { %648 = vmatpush1.bf16.msra.mxu0 %v3549_v3  ;;  %v1013_v3 = vrot.slane %v4270_v62, 3  ;;  %v3835_v62 = vld [vmem:[%s4823_s1 + $0x744] ss:$8 sps:$4 sm:$0xff]  }
  0x3f   : > { %649 = vmatprep.subr.bf16.mxu0 %v3557_v6  ;;  %v3634_v6 = vld [vmem:[%s4823_s1 + $0x3e4] ss:$8 sps:$4 sm:$0xff]  }
  0x40   : > { %806 = vmatpush1.bf16.msra.mxu1 %v3552_v7  ;;  %v3637_v7 = vld [vmem:[%s4823_s1 + $0x354] ss:$8 sps:$4 sm:$0xff]  }
  0x41   : > { %807 = vmatprep.subr.bf16.mxu1 %v3560_v9  ;;  %v3635_v9 = vld [vmem:[%s4823_s1 + $0x350] ss:$8 sps:$4 sm:$0xff]  }
  0x42   : > { %650 = vmatpush1.bf16.msra.mxu0 %v3555_v8  ;;  %v3632_v8 = vld [vmem:[%s4823_s1 + $0x3e0] ss:$8 sps:$4 sm:$0xff]  }
  0x43   : > { %651 = vmatprep.subr.bf16.mxu0 %v3563_v10  ;;  %v3640_v10 = vld [vmem:[%s4823_s1 + $0x3d4] ss:$8 sps:$4 sm:$0xff]  }
  0x44   : > { %808 = vmatpush1.bf16.msra.mxu1 %v3558_v11  ;;  %v3643_v11 = vld [vmem:[%s4823_s1 + $0x344] ss:$8 sps:$4 sm:$0xff]  }
  0x45   : > { %809 = vmatprep.subr.bf16.mxu1 %v3566_v13  ;;  %v3641_v13 = vld [vmem:[%s4823_s1 + $0x340] ss:$8 sps:$4 sm:$0xff]  }
  0x46   : > { %652 = vmatpush1.bf16.msra.mxu0 %v3561_v12  ;;  %v3638_v12 = vld [vmem:[%s4823_s1 + $0x3d0] ss:$8 sps:$4 sm:$0xff]  }
  0x47   : > { %653 = vmatprep.subr.bf16.mxu0 %v3569_v14  ;;  %v3646_v14 = vld [vmem:[%s4823_s1 + $0x3c4] ss:$8 sps:$4 sm:$0xff]  }
  0x48   : > { %810 = vmatpush1.bf16.msra.mxu1 %v3564_v15  ;;  %v3649_v15 = vld [vmem:[%s4823_s1 + $0x334] ss:$8 sps:$4 sm:$0xff]  }
  0x49   : > { %811 = vmatprep.subr.bf16.mxu1 %v3572_v17  ;;  %v3647_v17 = vld [vmem:[%s4823_s1 + $0x330] ss:$8 sps:$4 sm:$0xff]  }
  0x4a   : > { %654 = vmatpush1.bf16.msra.mxu0 %v3567_v16  ;;  %v3644_v16 = vld [vmem:[%s4823_s1 + $0x3c0] ss:$8 sps:$4 sm:$0xff]  }
  0x4b   : > { %946 = vmatprep.subr.bf16.mxu0 %v3575_v18  ;;  %v3652_v18 = vld [vmem:[%s4823_s1 + $0x3b4] ss:$8 sps:$4 sm:$0xff]  }
  0x4c   : > { %812 = vmatpush1.bf16.msra.mxu1 %v3570_v19  ;;  %v3655_v19 = vld [vmem:[%s4823_s1 + $0x324] ss:$8 sps:$4 sm:$0xff]  }
  0x4d   : > { %1095 = vmatprep.subr.bf16.mxu1 %v3578_v20  ;;  %v3650_v20 = vld [vmem:[%s4823_s1 + $0x3b0] ss:$8 sps:$4 sm:$0xff]  }
  0x84   : > { %v553_v21 = vpop.permute.xlu0 %552 }
  0x87   : > { %v712_v23 = vpop.permute.xlu1 %711 }
  0x88   : > { %v555_v24 = vpop.permute.xlu0 %554 }
  0x89   : > { %v4169_v26 = vsel %vm556_vm0, %v553_v21, %v555_v24  ;;  %v3653_v21 = vld [vmem:[%s4823_s1 + $0x320] ss:$8 sps:$4 sm:$0xff]  }
  0x8a   : > { %672 = vmatmul.mubr.bf16.vlgmr.msra.gmra.mxu0 %v4169_v26  ;;  %v3656_v24 = vld [vmem:[%s4823_s1 + $0x3a0] ss:$8 sps:$4 sm:$0xff]  }
  0x8b   : > { %947 = vmatpush1.bf16.msra.mxu0 %v3573_v22  ;;  %978 = vmatprep.mubr.bf16.mxu0 %v3888_v4  ;;  %v714_v30 = vpop.permute.xlu1 %713  ;;  %v3658_v22 = vld [vmem:[%s4823_s1 + $0x3a4] ss:$8 sps:$4 sm:$0xff]  }
  0x8c   : > { %948 = vmatprep.subr.bf16.mxu0 %v3581_v25  ;;  %v4186_v32 = vsel %vm556_vm0, %v712_v23, %v714_v30  ;;  %v3661_v23 = vld [vmem:[%s4823_s1 + $0x314] ss:$8 sps:$4 sm:$0xff]   ;;  %v3659_v25 = vld [vmem:[%s4823_s1 + $0x310] ss:$8 sps:$4 sm:$0xff]   ;;  %v1168_v30 = vpop.permute.xlu0 %1167 }
  0x8d   : > { %830 = vmatmul.mubr.bf16.vlgmr.msra.gmra.mxu1 %v4186_v32 }
  0x8e   : > { %1096 = vmatpush1.bf16.msra.mxu1 %v3576_v27  ;;  %1127 = vmatprep.mubr.bf16.mxu1 %v3888_v4  ;;  %v3664_v27 = vld [vmem:[%s4823_s1 + $0x394] ss:$8 sps:$4 sm:$0xff]  }
  0x8f   : > { %949 = vmatpush1.bf16.msra.mxu0 %v3579_v28  ;;  %1097 = vmatprep.subr.bf16.mxu1 %v3584_v29  ;;  %v3667_v28 = vld [vmem:[%s4823_s1 + $0x304] ss:$8 sps:$4 sm:$0xff]   ;;  %v1170_v29 = vpop.permute.xlu1 %1169 }
  0x90   : > { %950 = vmatprep.subr.bf16.mxu0 %v3587_v31  ;;  %v3662_v31 = vld [vmem:[%s4823_s1 + $0x390] ss:$8 sps:$4 sm:$0xff]  }
  0x92   : > { %1098 = vmatpush1.bf16.msra.mxu1 %v3582_v33  ;;  %v3665_v33 = vld [vmem:[%s4823_s1 + $0x300] ss:$8 sps:$4 sm:$0xff]  }
  0x93   : > { %951 = vmatpush1.bf16.msra.mxu0 %v3585_v34  ;;  %1099 = vmatprep.subr.bf16.mxu1 %v3590_v35  ;;  %v3670_v34 = vld [vmem:[%s4823_s1 + $0x384] ss:$8 sps:$4 sm:$0xff]   ;;  %v3673_v35 = vld [vmem:[%s4823_s1 + $0x474] ss:$8 sps:$4 sm:$0xff]  }
  0x94   : > { %952 = vmatprep.subr.bf16.mxu0 %v3593_v36  ;;  %v4373_v36 = vsel %vm556_vm0, %v1168_v30, %v1170_v29  ;;  %v3731_v29 = vld [vmem:[%s4823_s1 + $0x550] ss:$8 sps:$4 sm:$0xff]  }
  0x96   : > { %1100 = vmatpush1.bf16.msra.mxu1 %v3588_v37  ;;  %v3668_v37 = vld [vmem:[%s4823_s1 + $0x380] ss:$8 sps:$4 sm:$0xff]  }
  0x97   : > { %953 = vmatpush1.bf16.msra.mxu0 %v3591_v38  ;;  %1101 = vmatprep.subr.bf16.mxu1 %v3596_v39  ;;  %v3671_v38 = vld [vmem:[%s4823_s1 + $0x470] ss:$8 sps:$4 sm:$0xff]   ;;  %v1328_v39 = vpop.permute.xlu1 %1327 }
  0x98   : > { %954 = vmatprep.subr.bf16.mxu0 %v3599_v40  ;;  %v1326_v40 = vpop.permute.xlu0 %1325 }
  0x9a   : > { %1102 = vmatpush1.bf16.msra.mxu1 %v3594_v41  ;;  %v3676_v41 = vld [vmem:[%s4823_s1 + $0x4f4] ss:$8 sps:$4 sm:$0xff]  }
  0x9b   : > { %955 = vmatpush1.bf16.msra.mxu0 %v3597_v42  ;;  %1103 = vmatprep.subr.bf16.mxu1 %v3602_v43  ;;  %v3679_v42 = vld [vmem:[%s4823_s1 + $0x464] ss:$8 sps:$4 sm:$0xff]   ;;  %v4389_v43 = vsel %vm556_vm0, %v1326_v40, %v1328_v39  ;;  %v3737_v39 = vld [vmem:[%s4823_s1 + $0x540] ss:$8 sps:$4 sm:$0xff]  }
  0x9c   : > { %956 = vmatprep.subr.bf16.mxu0 %v3605_v44  ;;  %v3674_v44 = vld [vmem:[%s4823_s1 + $0x4f0] ss:$8 sps:$4 sm:$0xff]   ;;  %v3742_v40 = vld [vmem:[%s4823_s1 + $0x5c4] ss:$8 sps:$4 sm:$0xff]  }
  0x9e   : > { %1104 = vmatpush1.bf16.msra.mxu1 %v3600_v45  ;;  %v3677_v45 = vld [vmem:[%s4823_s1 + $0x460] ss:$8 sps:$4 sm:$0xff]  }
  0x9f   : > { %957 = vmatpush1.bf16.msra.mxu0 %v3603_v46  ;;  %1105 = vmatprep.subr.bf16.mxu1 %v3608_v47  ;;  %v3682_v46 = vld [vmem:[%s4823_s1 + $0x4e4] ss:$8 sps:$4 sm:$0xff]   ;;  %v3685_v47 = vld [vmem:[%s4823_s1 + $0x454] ss:$8 sps:$4 sm:$0xff]  }
  0xa0   : > { %958 = vmatprep.subr.bf16.mxu0 %v3611_v49  ;;  %v3680_v49 = vld [vmem:[%s4823_s1 + $0x4e0] ss:$8 sps:$4 sm:$0xff]  }
  0xa2   : > { %1106 = vmatpush1.bf16.msra.mxu1 %v3606_v50  ;;  %v3683_v50 = vld [vmem:[%s4823_s1 + $0x450] ss:$8 sps:$4 sm:$0xff]  }
  0xa3   : > { %959 = vmatpush1.bf16.msra.mxu0 %v3609_v51  ;;  %1107 = vmatprep.subr.bf16.mxu1 %v3614_v52  ;;  %v3688_v51 = vld [vmem:[%s4823_s1 + $0x4d4] ss:$8 sps:$4 sm:$0xff]   ;;  %v3691_v52 = vld [vmem:[%s4823_s1 + $0x444] ss:$8 sps:$4 sm:$0xff]  }
  0xa4   : > { %960 = vmatprep.subr.bf16.mxu0 %v3617_v54  ;;  %v3686_v54 = vld [vmem:[%s4823_s1 + $0x4d0] ss:$8 sps:$4 sm:$0xff]  }
  0xa6   : > { %1108 = vmatpush1.bf16.msra.mxu1 %v3612_v55  ;;  %v3689_v55 = vld [vmem:[%s4823_s1 + $0x440] ss:$8 sps:$4 sm:$0xff]  }
  0xa7   : > { %961 = vmatpush1.bf16.msra.mxu0 %v3615_v57  ;;  %1109 = vmatprep.subr.bf16.mxu1 %v3620_v58  ;;  %v3694_v57 = vld [vmem:[%s4823_s1 + $0x4c4] ss:$8 sps:$4 sm:$0xff]   ;;  %v3697_v58 = vld [vmem:[%s4823_s1 + $0x434] ss:$8 sps:$4 sm:$0xff]  }
  0xa8   : > { %1253 = vmatprep.subr.bf16.mxu0 %v3624_v59  ;;  %v3692_v59 = vld [vmem:[%s4823_s1 + $0x4c0] ss:$8 sps:$4 sm:$0xff]  }
  0xaa   : > { %979 = vmatmul.mubr.bf16.vlgmr.msra.gmra.mxu0 %v864_v61  ;;  %1110 = vmatpush1.bf16.msra.mxu1 %v3618_v60  ;;  %v3695_v60 = vld [vmem:[%s4823_s1 + $0x430] ss:$8 sps:$4 sm:$0xff]  }
  0xab   : > { %1254 = vmatpush1.bf16.msra.mxu0 %v3622_v63  ;;  %1411 = vmatprep.subr.bf16.mxu1 %v3628_v0  ;;  %v3700_v63 = vld [vmem:[%s4823_s1 + $0x4b4] ss:$8 sps:$4 sm:$0xff]   ;;  %v3703_v0 = vld [vmem:[%s4823_s1 + $0x424] ss:$8 sps:$4 sm:$0xff]  }
  0xac   : > { %1255 = vmatprep.subr.bf16.mxu0 %v3631_v1  ;;  %1285 = vmatprep.mubr.bf16.mxu0 %v3888_v4  ;;  %v3698_v1 = vld [vmem:[%s4823_s1 + $0x4b0] ss:$8 sps:$4 sm:$0xff]  }
  0xad   : > { %1128 = vmatmul.mubr.bf16.vlgmr.msra.gmra.mxu1 %v1013_v3 }
  0xae   : > { %1412 = vmatpush1.bf16.msra.mxu1 %v3626_v2  ;;  %1443 = vmatprep.mubr.bf16.mxu1 %v3888_v4  ;;  %v3701_v2 = vld [vmem:[%s4823_s1 + $0x420] ss:$8 sps:$4 sm:$0xff]  }
  0xaf   : > { %1256 = vmatpush1.bf16.msra.mxu0 %v3629_v5  ;;  %1413 = vmatprep.subr.bf16.mxu1 %v3634_v6  ;;  %v3706_v5 = vld [vmem:[%s4823_s1 + $0x4a4] ss:$8 sps:$4 sm:$0xff]   ;;  %v3709_v6 = vld [vmem:[%s4823_s1 + $0x414] ss:$8 sps:$4 sm:$0xff]  }
  0xb0   : > { %1257 = vmatprep.subr.bf16.mxu0 %v3637_v7  ;;  %v3704_v7 = vld [vmem:[%s4823_s1 + $0x4a0] ss:$8 sps:$4 sm:$0xff]  }
  0xb2   : > { %1414 = vmatpush1.bf16.msra.mxu1 %v3632_v8  ;;  %v3707_v8 = vld [vmem:[%s4823_s1 + $0x410] ss:$8 sps:$4 sm:$0xff]  }
  0xb3   : > { %1258 = vmatpush1.bf16.msra.mxu0 %v3635_v9  ;;  %1415 = vmatprep.subr.bf16.mxu1 %v3640_v10  ;;  %v3712_v9 = vld [vmem:[%s4823_s1 + $0x494] ss:$8 sps:$4 sm:$0xff]   ;;  %v3715_v10 = vld [vmem:[%s4823_s1 + $0x404] ss:$8 sps:$4 sm:$0xff]  }
  0xb4   : > { %1259 = vmatprep.subr.bf16.mxu0 %v3643_v11  ;;  %v3710_v11 = vld [vmem:[%s4823_s1 + $0x490] ss:$8 sps:$4 sm:$0xff]  }
  0xb6   : > { %1416 = vmatpush1.bf16.msra.mxu1 %v3638_v12  ;;  %v3713_v12 = vld [vmem:[%s4823_s1 + $0x400] ss:$8 sps:$4 sm:$0xff]  }
  0xb7   : > { %1260 = vmatpush1.bf16.msra.mxu0 %v3641_v13  ;;  %1417 = vmatprep.subr.bf16.mxu1 %v3646_v14  ;;  %v3718_v13 = vld [vmem:[%s4823_s1 + $0x484] ss:$8 sps:$4 sm:$0xff]   ;;  %v3721_v14 = vld [vmem:[%s4823_s1 + $0x574] ss:$8 sps:$4 sm:$0xff]  }
  0xb8   : > { %1261 = vmatprep.subr.bf16.mxu0 %v3649_v15  ;;  %v3716_v15 = vld [vmem:[%s4823_s1 + $0x480] ss:$8 sps:$4 sm:$0xff]  }
  0xba   : > { %1418 = vmatpush1.bf16.msra.mxu1 %v3644_v16  ;;  %v3719_v16 = vld [vmem:[%s4823_s1 + $0x570] ss:$8 sps:$4 sm:$0xff]  }
  0xbb   : > { %1262 = vmatpush1.bf16.msra.mxu0 %v3647_v17  ;;  %1419 = vmatprep.subr.bf16.mxu1 %v3652_v18  ;;  %v3724_v17 = vld [vmem:[%s4823_s1 + $0x5f4] ss:$8 sps:$4 sm:$0xff]   ;;  %v3727_v18 = vld [vmem:[%s4823_s1 + $0x564] ss:$8 sps:$4 sm:$0xff]  }
  0xbc   : > { %1263 = vmatprep.subr.bf16.mxu0 %v3655_v19  ;;  %v3863_v19 = vld [vmem:[%s3961_s8] ss:$8 sps:$4 sm:$0x1f]   ;;  %s229_s8 = scalar_lea.vmem %s4825_s3, %s3433_s23 }
  0xbe   : > { %1420 = vmatpush1.bf16.msra.mxu1 %v3650_v20  ;;  %v3722_v20 = vld [vmem:[%s4823_s1 + $0x5f0] ss:$8 sps:$4 sm:$0xff]  }
  0xbf   : > { %1264 = vmatpush1.bf16.msra.mxu0 %v3653_v21  ;;  %1421 = vmatprep.subr.bf16.mxu1 %v3658_v22  ;;  %v3725_v21 = vld [vmem:[%s4823_s1 + $0x560] ss:$8 sps:$4 sm:$0xff]  }
  0xc0   : > { %1265 = vmatprep.subr.bf16.mxu0 %v3661_v23  ;;  %v3730_v23 = vld [vmem:[%s4823_s1 + $0x5e4] ss:$8 sps:$4 sm:$0xff]  }
  0xc2   : > { %1422 = vmatpush1.bf16.msra.mxu1 %v3656_v24  ;;  %v3733_v24 = vld [vmem:[%s4823_s1 + $0x554] ss:$8 sps:$4 sm:$0xff]  }
  0xc3   : > { %1266 = vmatpush1.bf16.msra.mxu0 %v3659_v25  ;;  %1423 = vmatprep.subr.bf16.mxu1 %v3664_v27 }
  0xc4   : > { %1267 = vmatprep.subr.bf16.mxu0 %v3667_v28  ;;  %v3728_v28 = vld [vmem:[%s4823_s1 + $0x5e0] ss:$8 sps:$4 sm:$0xff]  }
  0xc6   : > { %1424 = vmatpush1.bf16.msra.mxu1 %v3662_v31 }
  0xc7   : > { %1268 = vmatpush1.bf16.msra.mxu0 %v3665_v33  ;;  %1425 = vmatprep.subr.bf16.mxu1 %v3670_v34 }
  0xc8   : > { %1551 = vmatprep.subr.bf16.mxu0 %v3673_v35 }
  0xca   : > { %1286 = vmatmul.mubr.bf16.vlgmr.msra.gmra.mxu0 %v4373_v36  ;;  %1426 = vmatpush1.bf16.msra.mxu1 %v3668_v37 }
  0xcb   : > { %1552 = vmatpush1.bf16.msra.mxu0 %v3671_v38  ;;  %1706 = vmatprep.subr.bf16.mxu1 %v3676_v41  ;;  %v3734_v38 = vld [vmem:[%s4823_s1 + $0x5d0] ss:$8 sps:$4 sm:$0xff]   ;;  %v3745_v41 = vld [vmem:[%s4823_s1 + $0x534] ss:$8 sps:$4 sm:$0xff]  }
  0xcc   : > { %1553 = vmatprep.subr.bf16.mxu0 %v3679_v42  ;;  %1583 = vmatprep.mubr.bf16.mxu0 %v3888_v4 }
  0xcd   : > { %1444 = vmatmul.mubr.bf16.vlgmr.msra.gmra.mxu1 %v4389_v43 }
  0xce   : > { %1707 = vmatpush1.bf16.msra.mxu1 %v3674_v44  ;;  %1738 = vmatprep.mubr.bf16.mxu1 %v3888_v4  ;;  %v3740_v44 = vld [vmem:[%s4823_s1 + $0x5c0] ss:$8 sps:$4 sm:$0xff]  }
  0xcf   : > { %1554 = vmatpush1.bf16.msra.mxu0 %v3677_v45  ;;  %1708 = vmatprep.subr.bf16.mxu1 %v3682_v46  ;;  %v3743_v45 = vld [vmem:[%s4823_s1 + $0x530] ss:$8 sps:$4 sm:$0xff]   ;;  %v3748_v46 = vld [vmem:[%s4823_s1 + $0x5b4] ss:$8 sps:$4 sm:$0xff]  }
  0xd0   : > { %1555 = vmatprep.subr.bf16.mxu0 %v3685_v47  ;;  %v3751_v47 = vld [vmem:[%s4823_s1 + $0x524] ss:$8 sps:$4 sm:$0xff]  }
  0xd2   : > { %1709 = vmatpush1.bf16.msra.mxu1 %v3680_v49  ;;  %v3746_v49 = vld [vmem:[%s4823_s1 + $0x5b0] ss:$8 sps:$4 sm:$0xff]  }
  0xd3   : > { %1556 = vmatpush1.bf16.msra.mxu0 %v3683_v50  ;;  %1710 = vmatprep.subr.bf16.mxu1 %v3688_v51  ;;  %v3749_v50 = vld [vmem:[%s4823_s1 + $0x520] ss:$8 sps:$4 sm:$0xff]   ;;  %v3754_v51 = vld [vmem:[%s4823_s1 + $0x5a4] ss:$8 sps:$4 sm:$0xff]  }
  0xd4   : > { %1557 = vmatprep.subr.bf16.mxu0 %v3691_v52  ;;  %v3757_v52 = vld [vmem:[%s4823_s1 + $0x514] ss:$8 sps:$4 sm:$0xff]  }
  0xd6   : > { %1711 = vmatpush1.bf16.msra.mxu1 %v3686_v54  ;;  %v3752_v54 = vld [vmem:[%s4823_s1 + $0x5a0] ss:$8 sps:$4 sm:$0xff]  }
  0xd7   : > { %1558 = vmatpush1.bf16.msra.mxu0 %v3689_v55  ;;  %1712 = vmatprep.subr.bf16.mxu1 %v3694_v57  ;;  %v3755_v55 = vld [vmem:[%s4823_s1 + $0x510] ss:$8 sps:$4 sm:$0xff]   ;;  %v3760_v57 = vld [vmem:[%s4823_s1 + $0x594] ss:$8 sps:$4 sm:$0xff]  }
  0xd8   : > { %1559 = vmatprep.subr.bf16.mxu0 %v3697_v58  ;;  %v3763_v58 = vld [vmem:[%s4823_s1 + $0x504] ss:$8 sps:$4 sm:$0xff]  }
  0xda   : > { %1713 = vmatpush1.bf16.msra.mxu1 %v3692_v59  ;;  %v3758_v59 = vld [vmem:[%s4823_s1 + $0x590] ss:$8 sps:$4 sm:$0xff]  }
  0xdb   : > { %1560 = vmatpush1.bf16.msra.mxu0 %v3695_v60  ;;  %1714 = vmatprep.subr.bf16.mxu1 %v3700_v63  ;;  %v3761_v60 = vld [vmem:[%s4823_s1 + $0x500] ss:$8 sps:$4 sm:$0xff]   ;;  %v3766_v63 = vld [vmem:[%s4823_s1 + $0x584] ss:$8 sps:$4 sm:$0xff]  }
  0xdc   : > { %1561 = vmatprep.subr.bf16.mxu0 %v3703_v0  ;;  %v3769_v0 = vld [vmem:[%s4823_s1 + $0x674] ss:$8 sps:$4 sm:$0xff]  }
  0xde   : > { %1715 = vmatpush1.bf16.msra.mxu1 %v3698_v1  ;;  %v3764_v1 = vld [vmem:[%s4823_s1 + $0x580] ss:$8 sps:$4 sm:$0xff]  }
  0xdf   : > { %1562 = vmatpush1.bf16.msra.mxu0 %v3701_v2  ;;  %1716 = vmatprep.subr.bf16.mxu1 %v3706_v5  ;;  %v3767_v2 = vld [vmem:[%s4823_s1 + $0x670] ss:$8 sps:$4 sm:$0xff]   ;;  %v3772_v5 = vld [vmem:[%s4823_s1 + $0x6f4] ss:$8 sps:$4 sm:$0xff]  }
  0xe0   : > { %1563 = vmatprep.subr.bf16.mxu0 %v3709_v6  ;;  %v3775_v6 = vld [vmem:[%s4823_s1 + $0x664] ss:$8 sps:$4 sm:$0xff]  }
  0xe2   : > { %1717 = vmatpush1.bf16.msra.mxu1 %v3704_v7  ;;  %v3770_v7 = vld [vmem:[%s4823_s1 + $0x6f0] ss:$8 sps:$4 sm:$0xff]  }
  0xe3   : > { %1564 = vmatpush1.bf16.msra.mxu0 %v3707_v8  ;;  %1718 = vmatprep.subr.bf16.mxu1 %v3712_v9  ;;  %v3773_v8 = vld [vmem:[%s4823_s1 + $0x660] ss:$8 sps:$4 sm:$0xff]   ;;  %v3778_v9 = vld [vmem:[%s4823_s1 + $0x6e4] ss:$8 sps:$4 sm:$0xff]  }
  0xe4   : > { %1565 = vmatprep.subr.bf16.mxu0 %v3715_v10  ;;  %v3776_v10 = vld [vmem:[%s4823_s1 + $0x6e0] ss:$8 sps:$4 sm:$0xff]  }
  0xe6   : > { %1719 = vmatpush1.bf16.msra.mxu1 %v3710_v11  ;;  %v3779_v11 = vld [vmem:[%s4823_s1 + $0x650] ss:$8 sps:$4 sm:$0xff]  }
  0xe7   : > { %1566 = vmatpush1.bf16.msra.mxu0 %v3713_v12  ;;  %1720 = vmatprep.subr.bf16.mxu1 %v3718_v13  ;;  %v3784_v12 = vld [vmem:[%s4823_s1 + $0x6d4] ss:$8 sps:$4 sm:$0xff]   ;;  %v3782_v13 = vld [vmem:[%s4823_s1 + $0x6d0] ss:$8 sps:$4 sm:$0xff]  }
  0xe8   : > { %1860 = vmatprep.subr.bf16.mxu0 %v3721_v14  ;;  %v3785_v14 = vld [vmem:[%s4823_s1 + $0x640] ss:$8 sps:$4 sm:$0xff]  }
  0xea   : > { %1584 = vmatmul.mubr.bf16.vlgmr.msra.gmra.mxu0 %v3863_v19  ;;  %1721 = vmatpush1.bf16.msra.mxu1 %v3716_v15  ;;  %v3790_v15 = vld [vmem:[%s4823_s1 + $0x6c4] ss:$8 sps:$4 sm:$0xff]   ;;  %v3796_v19 = vld [vmem:[%s4823_s1 + $0x6b4] ss:$8 sps:$4 sm:$0xff]  }
  0xeb   : > { %1861 = vmatpush1.bf16.msra.mxu0 %v3719_v16  ;;  %2014 = vmatprep.subr.bf16.mxu1 %v3724_v17  ;;  %v3793_v16 = vld [vmem:[%s4823_s1 + $0x634] ss:$8 sps:$4 sm:$0xff]   ;;  %v3788_v17 = vld [vmem:[%s4823_s1 + $0x6c0] ss:$8 sps:$4 sm:$0xff]  }
  0xec   : > { %1862 = vmatprep.subr.bf16.mxu0 %v3727_v18  ;;  %1892 = vmatprep.mubr.bf16.mxu0 %v3888_v4  ;;  %v3791_v18 = vld [vmem:[%s4823_s1 + $0x630] ss:$8 sps:$4 sm:$0xff]  }
  0xed   : > { %v369_v22 = vpop.f32.mrf.mxu0  ;;  %1739 = vmatmul.mubr.bf16.vlgmr.msra.gmra.mxu1 %v400_v53  ;;  %v3739_v53 = vld [vmem:[%s4823_s1 + $0x544] ss:$8 sps:$4 sm:$0xff]  }
  0xee   : > { %2015 = vmatpush1.bf16.msra.mxu1 %v3722_v20  ;;  %2046 = vmatprep.mubr.bf16.mxu1 %v3888_v4  ;;  %v3799_v20 = vld [vmem:[%s4823_s1 + $0x624] ss:$8 sps:$4 sm:$0xff]  }
  0xef   : > { %v371_v25 = vpop.f32.mrf.mxu0  ;;  %v516_v27 = vpop.f32.mrf.mxu1  ;;  %1863 = vmatpush1.bf16.msra.mxu0 %v3725_v21  ;;  %2016 = vmatprep.subr.bf16.mxu1 %v3730_v23  ;;  %v3794_v21 = vld [vmem:[%s4823_s1 + $0x6b0] ss:$8 sps:$4 sm:$0xff]   ;;  %v3802_v23 = vld [vmem:[%s4823_s1 + $0x6a4] ss:$8 sps:$4 sm:$0xff]  }
  0xf0   : > { %v4512_v30 = vadd.f32 %v516_v27, %v369_v22  ;;  %1864 = vmatprep.subr.bf16.mxu0 %v3733_v24  ;;  %v3797_v22 = vld [vmem:[%s4823_s1 + $0x620] ss:$8 sps:$4 sm:$0xff]   ;;  %v3805_v24 = vld [vmem:[%s4823_s1 + $0x614] ss:$8 sps:$4 sm:$0xff]   ;;  %v3803_v27 = vld [vmem:[%s4823_s1 + $0x610] ss:$8 sps:$4 sm:$0xff]  }
  0xf1   : > { %v373_v31 = vpop.f32.mrf.mxu0  ;;  %v518_v33 = vpop.f32.mrf.mxu1 }
  0xf2   : > { %v4521_v34 = vadd.f32 %v518_v33, %v371_v25  ;;  %2017 = vmatpush1.bf16.msra.mxu1 %v3728_v28  ;;  %v3800_v25 = vld [vmem:[%s4823_s1 + $0x6a0] ss:$8 sps:$4 sm:$0xff]   ;;  %v3808_v28 = vld [vmem:[%s4823_s1 + $0x694] ss:$8 sps:$4 sm:$0xff]   ;;  %v3806_v31 = vld [vmem:[%s4823_s1 + $0x690] ss:$8 sps:$4 sm:$0xff]  }
  0xf3   : > { %v374_v35 = vpop.f32.mrf.mxu0  ;;  %v520_v37 = vpop.f32.mrf.mxu1  ;;  %1865 = vmatpush1.bf16.msra.mxu0 %v3731_v29  ;;  %2018 = vmatprep.subr.bf16.mxu1 %v3736_v48  ;;  %v3811_v29 = vld [vmem:[%s4823_s1 + $0x604] ss:$8 sps:$4 sm:$0xff]   ;;  %v3809_v48 = vld [vmem:[%s4823_s1 + $0x600] ss:$8 sps:$4 sm:$0xff]   ;;  %v3817_v33 = vld [vmem:[%s4823_s1 + $0x774] ss:$8 sps:$4 sm:$0xff]  }
  0xf4   : > { %1866 = vmatprep.subr.bf16.mxu0 %v3739_v53  ;;  %v3814_v53 = vld [vmem:[%s4823_s1 + $0x684] ss:$8 sps:$4 sm:$0xff]   ;;  %v3812_v35 = vld [vmem:[%s4823_s1 + $0x680] ss:$8 sps:$4 sm:$0xff]   ;;  %v3815_v37 = vld [vmem:[%s4823_s1 + $0x770] ss:$8 sps:$4 sm:$0xff]  }
  0xf5   : > { %v521_v42 = vpop.f32.mrf.mxu1 }
  0xf6   : > { %2019 = vmatpush1.bf16.msra.mxu1 %v3734_v38  ;;  %v3820_v38 = vld [vmem:[%s4823_s1 + $0x7f4] ss:$8 sps:$4 sm:$0xff]   ;;  %v3826_v42 = vld [vmem:[%s4823_s1 + $0x7e4] ss:$8 sps:$4 sm:$0xff]  }
  0xf7   : > { %1867 = vmatpush1.bf16.msra.mxu0 %v3737_v39  ;;  %2020 = vmatprep.subr.bf16.mxu1 %v3742_v40  ;;  %v3823_v39 = vld [vmem:[%s4823_s1 + $0x764] ss:$8 sps:$4 sm:$0xff]   ;;  %v3818_v40 = vld [vmem:[%s4823_s1 + $0x7f0] ss:$8 sps:$4 sm:$0xff]  }
  0xf8   : > { %1868 = vmatprep.subr.bf16.mxu0 %v3745_v41  ;;  %v3821_v41 = vld [vmem:[%s4823_s1 + $0x760] ss:$8 sps:$4 sm:$0xff]  }
  0xfa   : > { %2021 = vmatpush1.bf16.msra.mxu1 %v3740_v44  ;;  %v3827_v44 = vld [vmem:[%s4823_s1 + $0x750] ss:$8 sps:$4 sm:$0xff]  }
  0xfb   : > { %1869 = vmatpush1.bf16.msra.mxu0 %v3743_v45  ;;  %2022 = vmatprep.subr.bf16.mxu1 %v3748_v46  ;;  %v3832_v45 = vld [vmem:[%s4823_s1 + $0x7d4] ss:$8 sps:$4 sm:$0xff]   ;;  %v3833_v46 = vld [vmem:[%s4823_s1 + $0x740] ss:$8 sps:$4 sm:$0xff]  }
  0xfc   : > { %1870 = vmatprep.subr.bf16.mxu0 %v3751_v47  ;;  %v3838_v47 = vld [vmem:[%s4823_s1 + $0x7c4] ss:$8 sps:$4 sm:$0xff]  }
  0xfe   : > { %2023 = vmatpush1.bf16.msra.mxu1 %v3746_v49  ;;  %v3836_v49 = vld [vmem:[%s4823_s1 + $0x7c0] ss:$8 sps:$4 sm:$0xff]  }
  0xff   : > { %1871 = vmatpush1.bf16.msra.mxu0 %v3749_v50  ;;  %2024 = vmatprep.subr.bf16.mxu1 %v3754_v51  ;;  %v3839_v50 = vld [vmem:[%s4823_s1 + $0x730] ss:$8 sps:$4 sm:$0xff]   ;;  %v3844_v51 = vld [vmem:[%s4823_s1 + $0x7b4] ss:$8 sps:$4 sm:$0xff]  }
 0x100   : > { %1872 = vmatprep.subr.bf16.mxu0 %v3757_v52  ;;  %v3847_v52 = vld [vmem:[%s4823_s1 + $0x724] ss:$8 sps:$4 sm:$0xff]  }
 0x102   : > { %2025 = vmatpush1.bf16.msra.mxu1 %v3752_v54  ;;  %v3842_v54 = vld [vmem:[%s4823_s1 + $0x7b0] ss:$8 sps:$4 sm:$0xff]  }
 0x103   : > { %1873 = vmatpush1.bf16.msra.mxu0 %v3755_v55  ;;  %2026 = vmatprep.subr.bf16.mxu1 %v3760_v57  ;;  %v3845_v55 = vld [vmem:[%s4823_s1 + $0x720] ss:$8 sps:$4 sm:$0xff]   ;;  %v3850_v57 = vld [vmem:[%s4823_s1 + $0x7a4] ss:$8 sps:$4 sm:$0xff]  }
 0x104   : > { %1874 = vmatprep.subr.bf16.mxu0 %v3763_v58  ;;  %v3853_v58 = vld [vmem:[%s4823_s1 + $0x714] ss:$8 sps:$4 sm:$0xff]  }
 0x106   : > { %2027 = vmatpush1.bf16.msra.mxu1 %v3758_v59  ;;  %v3848_v59 = vld [vmem:[%s4823_s1 + $0x7a0] ss:$8 sps:$4 sm:$0xff]  }
 0x107   : > { %1875 = vmatpush1.bf16.msra.mxu0 %v3761_v60  ;;  %2028 = vmatprep.subr.bf16.mxu1 %v3766_v63  ;;  %v3851_v60 = vld [vmem:[%s4823_s1 + $0x710] ss:$8 sps:$4 sm:$0xff]   ;;  %v3856_v63 = vld [vmem:[%s4823_s1 + $0x794] ss:$8 sps:$4 sm:$0xff]  }
 0x108   : > { %2168 = vmatprep.subr.bf16.mxu0 %v3769_v0  ;;  %v3859_v0 = vld [vmem:[%s4823_s1 + $0x704] ss:$8 sps:$4 sm:$0xff]  }
 0x10a   : > { %1893 = vmatmul.mubr.bf16.vlgmr.msra.gmra.mxu0 %v4169_v26  ;;  %2029 = vmatpush1.bf16.msra.mxu1 %v3764_v1  ;;  %v3781_v26 = vld [vmem:[%s4823_s1 + $0x654] ss:$8 sps:$4 sm:$0xff]   ;;  %v3854_v1 = vld [vmem:[%s4823_s1 + $0x790] ss:$8 sps:$4 sm:$0xff]  }
 0x10b   : > { %2169 = vmatpush1.bf16.msra.mxu0 %v3767_v2  ;;  %2322 = vmatprep.subr.bf16.mxu1 %v3772_v5  ;;  %v3857_v2 = vld [vmem:[%s4823_s1 + $0x700] ss:$8 sps:$4 sm:$0xff]   ;;  %v3862_v5 = vld [vmem:[%s4823_s1 + $0x784] ss:$8 sps:$4 sm:$0xff]  }
 0x10c   : > { %2170 = vmatprep.subr.bf16.mxu0 %v3775_v6  ;;  %2200 = vmatprep.mubr.bf16.mxu0 %v3888_v4  ;;  %v3860_v6 = vld [vmem:[%s4823_s1 + $0x780] ss:$8 sps:$4 sm:$0xff]  }
 0x10d   : > { %2047 = vmatmul.mubr.bf16.vlgmr.msra.gmra.mxu1 %v4186_v32  ;;  %v3787_v32 = vld [vmem:[%s4823_s1 + $0x644] ss:$8 sps:$4 sm:$0xff]  }
 0x10e   : > { %2323 = vmatpush1.bf16.msra.mxu1 %v3770_v7  ;;  %2354 = vmatprep.mubr.bf16.mxu1 %v3888_v4 }
 0x10f   : > { %2171 = vmatpush1.bf16.msra.mxu0 %v3773_v8  ;;  %2324 = vmatprep.subr.bf16.mxu1 %v3778_v9 }
 0x110   : > { %2172 = vmatprep.subr.bf16.mxu0 %v3781_v26 }
 0x112   : > { %2325 = vmatpush1.bf16.msra.mxu1 %v3776_v10 }
 0x113   : > { %2173 = vmatpush1.bf16.msra.mxu0 %v3779_v11  ;;  %2326 = vmatprep.subr.bf16.mxu1 %v3784_v12 }
 0x114   : > { %2174 = vmatprep.subr.bf16.mxu0 %v3787_v32 }
 0x116   : > { %2327 = vmatpush1.bf16.msra.mxu1 %v3782_v13 }
 0x117   : > { %2175 = vmatpush1.bf16.msra.mxu0 %v3785_v14  ;;  %2328 = vmatprep.subr.bf16.mxu1 %v3790_v15 }
 0x118   : > { %2176 = vmatprep.subr.bf16.mxu0 %v3793_v16 }
 0x11a   : > { %2329 = vmatpush1.bf16.msra.mxu1 %v3788_v17 }
 0x11b   : > { %2177 = vmatpush1.bf16.msra.mxu0 %v3791_v18  ;;  %2330 = vmatprep.subr.bf16.mxu1 %v3796_v19 }
 0x11c   : > { %2178 = vmatprep.subr.bf16.mxu0 %v3799_v20 }
 0x11e   : > { %2331 = vmatpush1.bf16.msra.mxu1 %v3794_v21 }
 0x11f   : > { %2179 = vmatpush1.bf16.msra.mxu0 %v3797_v22  ;;  %2332 = vmatprep.subr.bf16.mxu1 %v3802_v23 }
 0x120   : > { %2180 = vmatprep.subr.bf16.mxu0 %v3805_v24 }
 0x122   : > { %2333 = vmatpush1.bf16.msra.mxu1 %v3800_v25 }
 0x123   : > { %2181 = vmatpush1.bf16.msra.mxu0 %v3803_v27  ;;  %2334 = vmatprep.subr.bf16.mxu1 %v3808_v28 }
 0x124   : > { %2182 = vmatprep.subr.bf16.mxu0 %v3811_v29 }
 0x126   : > { %2335 = vmatpush1.bf16.msra.mxu1 %v3806_v31 }
 0x127   : > { %2183 = vmatpush1.bf16.msra.mxu0 %v3809_v48  ;;  %2336 = vmatprep.subr.bf16.mxu1 %v3814_v53 }
 0x128   : > { %2476 = vmatprep.subr.bf16.mxu0 %v3817_v33 }
 0x12a   : > { %2201 = vmatmul.mubr.bf16.vlgmr.msra.gmra.mxu0 %v864_v61  ;;  %2337 = vmatpush1.bf16.msra.mxu1 %v3812_v35  ;;  %v3824_v61 = vld [vmem:[%s4823_s1 + $0x7e0] ss:$8 sps:$4 sm:$0xff]  }
 0x12b   : > { %2477 = vmatpush1.bf16.msra.mxu0 %v3815_v37  ;;  %2630 = vmatprep.subr.bf16.mxu1 %v3820_v38 }
 0x12c   : > { %2478 = vmatprep.subr.bf16.mxu0 %v3823_v39  ;;  %2508 = vmatprep.mubr.bf16.mxu0 %v3888_v4 }
 0x12d   : > { %2355 = vmatmul.mubr.bf16.vlgmr.msra.gmra.mxu1 %v1013_v3  ;;  %v3830_v3 = vld [vmem:[%s4823_s1 + $0x7d0] ss:$8 sps:$4 sm:$0xff]  }
 0x12e   : > { %2631 = vmatpush1.bf16.msra.mxu1 %v3818_v40  ;;  %2662 = vmatprep.mubr.bf16.mxu1 %v3888_v4  ;;  %v3841_v4 = vld [vmem:[%s4823_s1 + $0x734] ss:$8 sps:$4 sm:$0xff]  }
 0x12f   : > { %2479 = vmatpush1.bf16.msra.mxu0 %v3821_v41  ;;  %2632 = vmatprep.subr.bf16.mxu1 %v3826_v42 }
 0x130   : > { %2480 = vmatprep.subr.bf16.mxu0 %v3829_v56 }
 0x132   : > { %2633 = vmatpush1.bf16.msra.mxu1 %v3824_v61 }
 0x133   : > { %2481 = vmatpush1.bf16.msra.mxu0 %v3827_v44  ;;  %2634 = vmatprep.subr.bf16.mxu1 %v3832_v45 }
 0x134   : > { %2482 = vmatprep.subr.bf16.mxu0 %v3835_v62 }
 0x136   : > { %2635 = vmatpush1.bf16.msra.mxu1 %v3830_v3 }
 0x137   : > { %2483 = vmatpush1.bf16.msra.mxu0 %v3833_v46  ;;  %2636 = vmatprep.subr.bf16.mxu1 %v3838_v47 }
 0x138   : > { %2484 = vmatprep.subr.bf16.mxu0 %v3841_v4 }
 0x13a   : > { %2637 = vmatpush1.bf16.msra.mxu1 %v3836_v49 }
 0x13b   : > { %2485 = vmatpush1.bf16.msra.mxu0 %v3839_v50  ;;  %2638 = vmatprep.subr.bf16.mxu1 %v3844_v51 }
 0x13c   : > { %2486 = vmatprep.subr.bf16.mxu0 %v3847_v52 }
 0x13e   : > { %2639 = vmatpush1.bf16.msra.mxu1 %v3842_v54 }
 0x13f   : > { %2487 = vmatpush1.bf16.msra.mxu0 %v3845_v55  ;;  %2640 = vmatprep.subr.bf16.mxu1 %v3850_v57 }
 0x140   : > { %2488 = vmatprep.subr.bf16.mxu0 %v3853_v58 }
 0x142   : > { %2641 = vmatpush1.bf16.msra.mxu1 %v3848_v59 }
 0x143   : > { %2489 = vmatpush1.bf16.msra.mxu0 %v3851_v60  ;;  %2642 = vmatprep.subr.bf16.mxu1 %v3856_v63 }
 0x144   : > { %2490 = vmatprep.subr.bf16.mxu0 %v3859_v0 }
 0x146   : > { %2643 = vmatpush1.bf16.msra.mxu1 %v3854_v1 }
 0x147   : > { %2491 = vmatpush1.bf16.msra.mxu0 %v3857_v2  ;;  %2644 = vmatprep.subr.bf16.mxu1 %v3862_v5 }
 0x14a   : > { %2509 = vmatmul.mubr.bf16.vlgmr.msra.gmra.mxu0 %v4373_v36  ;;  %v673_v7 = vpop.f32.mrf.mxu0  ;;  %2645 = vmatpush1.bf16.msra.mxu1 %v3860_v6 }
 0x14b   : > { %v680_v8 = vadd.f32 %v673_v7, %v4512_v30 }
 0x14c   : > { %v675_v9 = vpop.f32.mrf.mxu0 }
 0x14d   : > { %v681_v26 = vadd.f32 %v675_v9, %v4521_v34  ;;  %2663 = vmatmul.mubr.bf16.vlgmr.msra.gmra.mxu1 %v4389_v43  ;;  %v831_v10 = vpop.f32.mrf.mxu1 }
 0x14e   : > { %v677_v11 = vpop.f32.mrf.mxu0  ;;  %v838_v12 = vadd.f32 %v831_v10, %v680_v8 }
 0x14f   : > { %v833_v32 = vpop.f32.mrf.mxu1 }
 0x150   : > { %v678_v13 = vpop.f32.mrf.mxu0  ;;  %v839_v14 = vadd.f32 %v833_v32, %v681_v26 }
 0x151   : > { %v835_v15 = vpop.f32.mrf.mxu1 }
 0x153   : > { %v836_v16 = vpop.f32.mrf.mxu1 }
 0x16a   : > { %v980_v17 = vpop.f32.mrf.mxu0 }
 0x16b   : > { %v987_v18 = vadd.f32 %v980_v17, %v838_v12 }
 0x16c   : > { %v982_v36 = vpop.f32.mrf.mxu0 }
 0x16d   : > { %v988_v19 = vadd.f32 %v982_v36, %v839_v14  ;;  %v1129_v20 = vpop.f32.mrf.mxu1 }
 0x16e   : > { %v984_v21 = vpop.f32.mrf.mxu0  ;;  %v1136_v30 = vadd.f32 %v1129_v20, %v987_v18 }
 0x16f   : > { %v1131_v22 = vpop.f32.mrf.mxu1 }
 0x170   : > { %v985_v23 = vpop.f32.mrf.mxu0  ;;  %v1137_v34 = vadd.f32 %v1131_v22, %v988_v19 }
 0x171   : > { %v1133_v24 = vpop.f32.mrf.mxu1 }
 0x173   : > { %v1134_v43 = vpop.f32.mrf.mxu1 }
 0x18a   : > { %v1287_v25 = vpop.f32.mrf.mxu0 }
 0x18b   : > { %v1294_v27 = vadd.f32 %v1287_v25, %v1136_v30 }
 0x18c   : > { %v1289_v28 = vpop.f32.mrf.mxu0 }
 0x18d   : > { %v1295_v29 = vadd.f32 %v1289_v28, %v1137_v34  ;;  %v1445_v31 = vpop.f32.mrf.mxu1 }
 0x18e   : > { %v1291_v48 = vpop.f32.mrf.mxu0  ;;  %v1452_v53 = vadd.f32 %v1445_v31, %v1294_v27 }
 0x18f   : > { %v1447_v33 = vpop.f32.mrf.mxu1 }
 0x190   : > { %v1292_v35 = vpop.f32.mrf.mxu0  ;;  %v1453_v37 = vadd.f32 %v1447_v33, %v1295_v29 }
 0x191   : > { %v1449_v38 = vpop.f32.mrf.mxu1 }
 0x193   : > { %v1450_v39 = vpop.f32.mrf.mxu1 }
 0x1aa   : > { %v1585_v40 = vpop.f32.mrf.mxu0 }
 0x1ab   : > { %v1599_v57 = vrot.slane %v1585_v40, 1 }
 0x1ac   : > { %v1587_v41 = vpop.f32.mrf.mxu0 }
 0x1ad   : > { %v1740_v42 = vpop.f32.mrf.mxu1  ;;  %v1602_v63 = vrot.slane %v1587_v41, 1 }
 0x1ae   : > { %v1589_v56 = vpop.f32.mrf.mxu0  ;;  %v1753_v2 = vrot.slane %v1740_v42, 1 }
 0x1af   : > { %v1742_v61 = vpop.f32.mrf.mxu1  ;;  %v1600_v54 = vrot.slane %v1589_v56, 1 }
 0x1b0   : > { %v1591_v44 = vpop.f32.mrf.mxu0  ;;  %v1756_v10 = vrot.slane %v1742_v61, 1 }
 0x1b1   : > { %v1744_v45 = vpop.f32.mrf.mxu1  ;;  %v1603_v58 = vrot.slane %v1591_v44, 1  ;;  %v1601_v0 = vsel %vm1598_vm1, %v1599_v57, %v1600_v54 }
 0x1b2   : > { %v1754_v1 = vrot.slane %v1744_v45, 1  ;;  %v1607_v8 = vadd.f32 %v1601_v0, %v1452_v53 }
 0x1b3   : > { %v1746_v3 = vpop.f32.mrf.mxu1  ;;  %v1604_v5 = vsel %vm1598_vm1, %v1602_v63, %v1603_v58 }
 0x1b4   : > { %v1757_v6 = vrot.slane %v1746_v3, 1  ;;  %v1755_v11 = vsel %vm1598_vm1, %v1753_v2, %v1754_v1  ;;  %v1608_v13 = vadd.f32 %v1604_v5, %v1453_v37 }
 0x1b5   : > { %v1761_v18 = vadd.f32 %v1755_v11, %v1607_v8 }
 0x1b6   : > { %v1758_v14 = vsel %vm1598_vm1, %v1756_v10, %v1757_v6 }
 0x1b7   : > { %v1762_v23 = vadd.f32 %v1758_v14, %v1608_v13 }
 0x1ca   : > { %v1894_v62 = vpop.f32.mrf.mxu0 }
 0x1cb   : > { %v1907_v12 = vrot.slane %v1894_v62, 1 }
 0x1cc   : > { %v1896_v46 = vpop.f32.mrf.mxu0 }
 0x1cd   : > { %v2048_v47 = vpop.f32.mrf.mxu1  ;;  %v1910_v15 = vrot.slane %v1896_v46, 1 }
 0x1ce   : > { %v1898_v4 = vpop.f32.mrf.mxu0  ;;  %v2061_v20 = vrot.slane %v2048_v47, 1 }
 0x1cf   : > { %v2050_v49 = vpop.f32.mrf.mxu1  ;;  %v1908_v7 = vrot.slane %v1898_v4, 1 }
 0x1d0   : > { %v1900_v50 = vpop.f32.mrf.mxu0  ;;  %v2064_v24 = vrot.slane %v2050_v49, 1 }
 0x1d1   : > { %v2052_v51 = vpop.f32.mrf.mxu1  ;;  %v1911_v32 = vrot.slane %v1900_v50, 1  ;;  %v1909_v16 = vsel %vm1598_vm1, %v1907_v12, %v1908_v7 }
 0x1d2   : > { %v2062_v17 = vrot.slane %v2052_v51, 1  ;;  %v1915_v34 = vadd.f32 %v1909_v16, %v1761_v18 }
 0x1d3   : > { %v2054_v55 = vpop.f32.mrf.mxu1  ;;  %v1912_v21 = vsel %vm1598_vm1, %v1910_v15, %v1911_v32  ;;  %v3890_v15 = vmov 1966171168  }
 0x1d4   : > { %v2065_v30 = vrot.slane %v2054_v55, 1  ;;  %v2063_v43 = vsel %vm1598_vm1, %v2061_v20, %v2062_v17  ;;  %v1916_v28 = vadd.f32 %v1912_v21, %v1762_v23  ;;  %v2703_v16 = vunpack.c.l.s4 %v3890_v15 }
 0x1d5   : > { %v2069_v35 = vadd.f32 %v2063_v43, %v1915_v34  ;;  %v2705_v17 = vlaneseq }
 0x1d6   : > { %v2066_v31 = vsel %vm1598_vm1, %v2064_v24, %v2065_v30  ;;  %v2704_v24 = vunpack.c.0.s8 %v2703_v16 }
 0x1d7   : > { %v2070_v41 = vadd.f32 %v2066_v31, %v1916_v28  ;;  %v2706_v43 = vshrl.u32 %v2705_v17, 7  ;;  %vm2719_vm2 = vcmp.lt.s32.totalorder %v2705_v17, 256 }
 0x1ea   : > { %v2202_v52 = vpop.f32.mrf.mxu0 }
 0x1eb   : > { %v2215_v25 = vrot.slane %v2202_v52, 1 }
 0x1ec   : > { %v2204_v59 = vpop.f32.mrf.mxu0 }
 0x1ed   : > { %v2356_v60 = vpop.f32.mrf.mxu1  ;;  %v2218_v48 = vrot.slane %v2204_v59, 1 }
 0x1ee   : > { %v2206_v9 = vpop.f32.mrf.mxu0  ;;  %v2369_v38 = vrot.slane %v2356_v60, 1 }
 0x1ef   : > { %v2358_v26 = vpop.f32.mrf.mxu1  ;;  %v2216_v22 = vrot.slane %v2206_v9, 1 }
 0x1f0   : > { %v2208_v36 = vpop.f32.mrf.mxu0  ;;  %v2372_v61 = vrot.slane %v2358_v26, 1 }
 0x1f1   : > { %v2360_v19 = vpop.f32.mrf.mxu1  ;;  %v2219_v27 = vrot.slane %v2208_v36, 1  ;;  %v2217_v53 = vsel %vm1598_vm1, %v2215_v25, %v2216_v22 }
 0x1f2   : > { %v2370_v33 = vrot.slane %v2360_v19, 1  ;;  %v2223_v42 = vadd.f32 %v2217_v53, %v2069_v35 }
 0x1f3   : > { %v2362_v29 = vpop.f32.mrf.mxu1  ;;  %v2220_v39 = vsel %vm1598_vm1, %v2218_v48, %v2219_v27 }
 0x1f4   : > { %v2373_v40 = vrot.slane %v2362_v29, 1  ;;  %v2371_v44 = vsel %vm1598_vm1, %v2369_v38, %v2370_v33  ;;  %v2224_v45 = vadd.f32 %v2220_v39, %v2070_v41 }
 0x1f5   : > { %v2377_v49 = vadd.f32 %v2371_v44, %v2223_v42 }
 0x1f6   : > { %v2374_v46 = vsel %vm1598_vm1, %v2372_v61, %v2373_v40 }
 0x1f7   : > { %v2378_v57 = vadd.f32 %v2374_v46, %v2224_v45 }
 0x20a   : > { %v2510_v37 = vpop.f32.mrf.mxu0 }
 0x20b   : > { %v2523_v47 = vrot.slane %v2510_v37, 1  ;;  %v2707_v37 = vsub.s32 %v2704_v24, %v2706_v43 }
 0x20c   : > { %v2512_v56 = vpop.f32.mrf.mxu0 }
 0x20d   : > { %v2664_v62 = vpop.f32.mrf.mxu1  ;;  %v2526_v52 = vrot.slane %v2512_v56, 1 }
 0x20e   : > { %v2514_v3 = vpop.f32.mrf.mxu0  ;;  %v2677_v60 = vrot.slane %v2664_v62, 1 }
 0x20f   : > { %v2524_v4 = vrot.slane %v2514_v3, 1  ;;  %v2666_v50 = vpop.f32.mrf.mxu1 }
 0x210   : > { %v2516_v51 = vpop.f32.mrf.mxu0  ;;  %v2680_v5 = vrot.slane %v2666_v50, 1 }
 0x211   : > { %v2525_v54 = vsel %vm1598_vm1, %v2523_v47, %v2524_v4  ;;  %v2527_v55 = vrot.slane %v2516_v51, 1  ;;  %v2668_v59 = vpop.f32.mrf.mxu1 }
 0x212   : > { %v2531_v58 = vadd.f32 %v2525_v54, %v2377_v49  ;;  %v2678_v0 = vrot.slane %v2668_v59, 1 }
 0x213   : > { %v2528_v63 = vsel %vm1598_vm1, %v2526_v52, %v2527_v55  ;;  %v2670_v2 = vpop.f32.mrf.mxu1 }
 0x214   : > { %v2532_v1 = vadd.f32 %v2528_v63, %v2378_v57  ;;  %v2679_v6 = vsel %vm1598_vm1, %v2677_v60, %v2678_v0  ;;  %v2681_v7 = vrot.slane %v2670_v2, 1 }
 0x215   : > { %v2685_v8 = vadd.f32 %v2679_v6, %v2531_v58 }
 0x216   : > { %v2682_v9 = vsel %vm1598_vm1, %v2680_v5, %v2681_v7 }
 0x217   : > { %v2687_v26 = vrot.slane %v2685_v8, 4  ;;  %v2722_v10 = vmul.f32 %v2685_v8, %v2685_v8  ;;  %v2686_v11 = vadd.f32 %v2682_v9, %v2532_v1 }
 0x219   : > { %v2688_v12 = vadd.f32 %v2687_v26, %v2685_v8  ;;  %v2724_v32 = vrot.slane %v2722_v10, 4  ;;  %v2693_v13 = vrot.slane %v2686_v11, 4  ;;  %v2723_v14 = vmul.f32 %v2686_v11, %v2686_v11 }
 0x21a   : > { %v3434_v18 = vpack.c.bf16 %v2686_v11, %v2685_v8 }
 0x21b   : > { %v2689_v36 = vrot.slane %v2688_v12, 2  ;;  %v2725_v19 = vadd.f32 %v2724_v32, %v2722_v10  ;;  %v2694_v20 = vadd.f32 %v2693_v13, %v2686_v11  ;;  %v2730_v21 = vrot.slane %v2723_v14, 4 }
 0x21c   : > { %2764 = vst [vmem:[%s220_s22] sm:$0xff] %v3434_v18 }
 0x21d   : > { %v2690_v30 = vadd.f32 %v2689_v36, %v2688_v12  ;;  %v2726_v22 = vrot.slane %v2725_v19, 2  ;;  %v2695_v23 = vrot.slane %v2694_v20, 2  ;;  %v2731_v34 = vadd.f32 %v2730_v21, %v2723_v14 }
 0x21f   : > { %v2691_v25 = vrot.slane %v2690_v30, 1  ;;  %v2727_v27 = vadd.f32 %v2726_v22, %v2725_v19  ;;  %v2696_v28 = vadd.f32 %v2695_v23, %v2694_v20  ;;  %v2732_v29 = vrot.slane %v2731_v34, 2 }
 0x221   : > { %v2728_v31 = vrot.slane %v2727_v27, 1  ;;  %v2697_v48 = vrot.slane %v2696_v28, 1  ;;  %v2733_v53 = vadd.f32 %v2732_v29, %v2731_v34  ;;  %v2692_v33 = vadd.f32 %v2691_v25, %v2690_v30 }
 0x223   : > { %v2698_v35 = vadd.f32 %v2697_v48, %v2696_v28  ;;  %v2734_v38 = vrot.slane %v2733_v53, 1  ;;  %v2729_v39 = vadd.f32 %v2728_v31, %v2727_v27 }
 0x225   : > { %v2701_v40 = vcombine.low %v2692_v33, %v2698_v35  ;;  %v2735_v41 = vadd.f32 %v2734_v38, %v2733_v53 }
 0x227   : > { %v2708_v42 = vrot.slane %v2701_v40, %v2707_v37  ;;  %v2738_v56 = vcombine.low %v2729_v39, %v2735_v41 }
 0x229   : > { %v2715_v61 = vrot.slane %v2708_v42, %v2707_v37  ;;  %v2745_v44 = vrot.slane %v2738_v56, %v2707_v37 }
 0x22b   : > { %2721 = vst.msk [vmem:[%s229_s8] ss:$2 sm:$0x3] %vm2719_vm2, %v2715_v61  ;;  %v2752_v45 = vrot.slane %v2745_v44, %v2707_v37 }
 0x22d   : > { %3428 = vst.msk [vmem:[%s229_s8 + $0x1] ss:$2 sm:$0x3] %vm2719_vm2, %v2752_v45 }
 0x22e PF: > { %s14_s14 = sadd.s32 1, %s3886_s14   ;;  %s4826_s12 = smov %s3882_s13 }
 0x22f   : > { %p11_p5 = scmp.ge.s32.totalorder %s14_s14, 4   ;;  %s4827_s13 = smov %s4829_s15 }
 0x231   :  { %13 = sbr.rel (!%p11_p5) target bundleno = 2 (0x2), region = 86 }

// kernel: tile.43
= control target key start
LH: loop header
LB: loop body
LE: loop exit
PB: predicated region body
PF: predicated region fallthrough
CT: control target
= control target key end

     0   :  { %s22_s0 = inlined_call_operand.vmem [shape: f32[64], index: 0, kind: input, shape index: {}]   ;;  %s23_s1 = inlined_call_operand.vmem [shape: f32[4,64], index: 1, kind: output, shape index: {}]  }
   0x1   :  { %v4_v0 = vld [vmem:[%s22_s0] ss:$0 sm:$0xff] }
   0x2   :  { %5 = vst [vmem:[%s23_s1] sm:$0xf] %v4_v0 }

// kernel: tile.44
= control target key start
LH: loop header
LB: loop body
LE: loop exit
PB: predicated region body
PF: predicated region fallthrough
CT: control target
= control target key end

     0   :  { %s7_s8 = smov 3  ;;  %vm9_vm0 = vcmask 523264   ;;  %s34_s9 = smov 64   ;;  %vm16_vm1 = vcmask 1048064   ;;  %s54_s0 = inlined_call_operand.vmem [shape: f32[4,64], index: 0, kind: input, shape index: {}]   ;;  %s55_s1 = inlined_call_operand.vmem [shape: f32[1,256], index: 1, kind: output, shape index: {}]  }
   0x1   :  { %v5_v0 = vld [vmem:[%s54_s0] sm:$0xf]  ;;  %s12_s0 = smov 3 }
   0x2   :  { %6 = vst [vmem:[#allocation1] sm:$0xf] %v5_v0 }
   0x9   :  { %v13_v1 = vld [vmem:[#allocation1 + $0x1] ss:$2 sm:%s12_s0]   ;;  %v8_v2 = vld [vmem:[#allocation1] ss:$2 sm:%s7_s8]  }
   0xa   :  { %14 = vrot.lane.b32.xlu0 %v13_v1, %s34_s9  ;;  %10 = vst.msk [vmem:[#allocation0] ss:$8 sm:$0x3] %vm9_vm0, %v8_v2  }
  0x7c   :  { %v15_v3 = vpop.permute.xlu0 %14  }
  0x7d   :  { %17 = vst.msk [vmem:[#allocation0] ss:$8 sm:$0x3] %vm16_vm1, %v15_v3  }
  0x84   :  { %v22_v4 = vld [vmem:[#allocation0] sm:$0x1]  ;;  %v27_v5 = vld [vmem:[#allocation0 + $0x8] sm:$0x1] }
  0x85   :  { %25 = vst [vmem:[%s55_s1] sm:$0x1] %v22_v4  ;;  %32 = vst [vmem:[%s55_s1 + $0x1] sm:$0x1] %v27_v5 }

// kernel: discriminator_forward.9
= control target key start
LH: loop header
LB: loop body
LE: loop exit
PB: predicated region body
PF: predicated region fallthrough
CT: control target
= control target key end

     0   :  { %s430_s12 = smov 0   ;;  %s432_s13 = smov 0   ;;  %s469_s0 = inlined_call_operand.vmem [shape: bf16[2,1,4,256], index: 0, kind: input, shape index: {}]   ;;  %s470_s1 = inlined_call_operand.vmem [shape: f32[1,256], index: 1, kind: input, shape index: {}]   ;;  %s471_s2 = inlined_call_operand.vmem [shape: f32[1,256], index: 2, kind: input, shape index: {}]   ;;  %s472_s3 = inlined_call_operand.vmem [shape: bf16[2,1,4,256], index: 3, kind: output, shape index: {}]  }
   0x1   :  { %s434_s14 = smov 0  }
   0x2 LB: > { %s25_s15 = sadd.s32 1, %s404_s13  ;;  %p351_p0 = scmp.ge.s32.totalorder %s408_s14, 1  ;;  %s408_s14 = sphi %s434_s14, %s13_s14   ;;  %s404_s13 = sphi %s432_s13, %s474_s13   ;;  %s400_s12 = sphi %s430_s12, %s473_s12  }
   0x3   : > { %p27_p1 = scmp.ge.s32.totalorder %s25_s15, 2  ;;  %p157_p2 = scmp.lt.s32.totalorder %s408_s14, 3 }
   0x5   : > { %s476_s15 = smov (%p27_p1, %s25_s15), 0  ;;  %p158_p3 = pnand %p351_p0, %p157_p2 }
   0x6   : > { %p189_p4 = scmp.lt.s32.totalorder (!%p158_p3), %s400_s12, 1 }
   0x7   : > { %161 = sbr.rel (%p158_p3) target bundleno = 34 (0x22), region = 32 }
   0xc   : > { %v211_v0 = vlaneseq  ;;  %s478_s12 = smov (!%p189_p4, %s400_s12), 1  ;;  %v209_v2 = vld [vmem:[%s470_s1] sm:$0x3] }
   0xd   : > { %v222_v3 = vld [vmem:[%s471_s2] sm:$0x3]  ;;  %s360_s20 = sshll.u32 %s478_s12, 2 }
   0xe   : > { %v212_v1 = vshrl.u32 %v211_v0, 7  ;;  %s197_s23 = scalar_lea.vmem %s469_s0, %s360_s20  ;;  %s206_s26 = scalar_lea.vmem %s472_s3, %s360_s20 }
   0xf   : > { %v207_v6 = vld [vmem:[%s197_s23] sm:$0xf] }
  0x10   : > { %v213_v4 = vsub.s32 0, %v212_v1  ;;  %v217_v5 = vsub.s32 1, %v212_v1  ;;  %v208_v11 = vunpack.c.l.bf16 %v207_v6 }
  0x12   : > { %v214_v7 = vrot.slane %v209_v2, %v213_v4  ;;  %v218_v8 = vrot.slane %v209_v2, %v217_v5  ;;  %v227_v9 = vrot.slane %v222_v3, %v213_v4  ;;  %v231_v10 = vrot.slane %v222_v3, %v217_v5 }
  0x14   : > { %v219_v12 = vcombine.low %v214_v7, %v218_v8  ;;  %v232_v13 = vcombine.low %v227_v9, %v231_v10 }
  0x16   : > { %v221_v14 = vmul.f32 %v219_v12, %v208_v11 }
  0x18   : > { %v234_v15 = vadd.f32 %v232_v13, %v221_v14 }
  0x1a   : > { %vm235_vm0 = vcmp.ge.f32.partialorder %v234_v15, 0.0  ;;  %v236_v16 = vmul.f32 0.2, %v234_v15 }
  0x1c   : > { %v237_v17 = vsel %vm235_vm0, %v234_v15, %v236_v16 }
  0x1d   : > { %v239_v18 = vcombine.high %v237_v17, %v237_v17 }
  0x1f   : > { %v356_v19 = vpack.c.bf16 %v239_v18, %v237_v17 }
  0x21   : > { %357 = vst.sshfl [vmem:[%s206_s26] sm:$0x33 pattern:$0x76325410] %v356_v19 }
  0x22 PF: > { %s13_s14 = sadd.s32 1, %s408_s14   ;;  %s473_s12 = smov %s404_s13 }
  0x23   : > { %p10_p5 = scmp.ge.s32.totalorder %s13_s14, 4   ;;  %s474_s13 = smov %s476_s15 }
  0x25   :  { %12 = sbr.rel (!%p10_p5) target bundleno = 2 (0x2), region = 62 }

// kernel: discriminator_forward.8
= control target key start
LH: loop header
LB: loop body
LE: loop exit
PB: predicated region body
PF: predicated region fallthrough
CT: control target
= control target key end

     0   :  { %s3834_s12 = smov 0   ;;  %s3836_s13 = smov 0   ;;  %s4734_s0 = inlined_call_operand.vmem [shape: bf16[2,1,24,160], index: 0, kind: input, shape index: {}]   ;;  %s4735_s1 = inlined_call_operand.vmem [shape: bf16[16,128,256], index: 1, kind: input, shape index: {}]   ;;  %s4736_s2 = inlined_call_operand.vmem [shape: bf16[2,1,4,256], index: 2, kind: output, shape index: {0}]   ;;  %s4737_s3 = inlined_call_operand.vmem [shape: f32[2,1,2,256], index: 3, kind: output, shape index: {1}]  }
   0x1   :  { %s3838_s14 = smov 0  }
   0x2 LB: > { %s26_s15 = sadd.s32 1, %s3805_s13  ;;  %p2841_p0 = scmp.ge.s32.totalorder %s3809_s14, 1  ;;  %s3809_s14 = sphi %s3838_s14, %s14_s14   ;;  %s3805_s13 = sphi %s3836_s13, %s4739_s13   ;;  %s3801_s12 = sphi %s3834_s12, %s4738_s12  }
   0x3   : > { %p28_p1 = scmp.ge.s32.totalorder %s26_s15, 2  ;;  %p162_p2 = scmp.lt.s32.totalorder %s3809_s14, 3 }
   0x5   : > { %s4741_s15 = smov (%p28_p1, %s26_s15), 0  ;;  %p163_p3 = pnand %p2841_p0, %p162_p2 }
   0x6   : > { %p203_p4 = scmp.lt.s32.totalorder (!%p163_p3), %s3801_s12, 1  ;;  %s3812_s21 = smov (!%p163_p3), 96  }
   0x7   : > { %166 = sbr.rel (%p163_p3) target bundleno = 555 (0x22b), region = 28 }
   0xc   : > { %v3394_v0 = vld [vmem:[%s4735_s1 + $0x74] ss:$8 sps:$4 sm:$0xff]   ;;  %v3396_v1 = vld [vmem:[%s4735_s1 + $0x70] ss:$8 sps:$4 sm:$0xff]   ;;  %s4743_s12 = smov (!%p203_p4, %s3801_s12), 1  ;;  %v3811_v4 = vmov 0  }
   0xd   : > { %328 = vmatprep.subr.bf16.mxu0 %v3394_v0  ;;  %v3397_v2 = vld [vmem:[%s4735_s1 + $0xf4] ss:$8 sps:$4 sm:$0xff]   ;;  %v3399_v3 = vld [vmem:[%s4735_s1 + $0xf0] ss:$8 sps:$4 sm:$0xff]   ;;  %360 = vmatprep.mubr.bf16.mxu0 %v3811_v4  ;;  %v3400_v5 = vld [vmem:[%s4735_s1 + $0x64] ss:$8 sps:$4 sm:$0xff]  }
   0xe   : > { %329 = vmatpush1.bf16.msra.mxu0 %v3396_v1  ;;  %v3402_v6 = vld [vmem:[%s4735_s1 + $0x60] ss:$8 sps:$4 sm:$0xff]   ;;  %507 = vmatprep.mubr.bf16.mxu1 %v3811_v4  ;;  %s3361_s28 = smul.u32 24, %s4743_s12  ;;  %v3403_v7 = vld [vmem:[%s4735_s1 + $0xe4] ss:$8 sps:$4 sm:$0xff]   ;;  %vm545_vm0 = vcmask 785408  }
   0xf   : > { %475 = vmatprep.subr.bf16.mxu1 %v3397_v2  ;;  %330 = vmatprep.subr.bf16.mxu0 %v3400_v5  ;;  %v3405_v8 = vld [vmem:[%s4735_s1 + $0xe0] ss:$8 sps:$4 sm:$0xff]   ;;  %v3406_v9 = vld [vmem:[%s4735_s1 + $0x54] ss:$8 sps:$4 sm:$0xff]   ;;  %v3408_v10 = vld [vmem:[%s4735_s1 + $0x50] ss:$8 sps:$4 sm:$0xff]  }
  0x10   : > { %476 = vmatpush1.bf16.msra.mxu1 %v3399_v3  ;;  %s3884_s8 = scalar_lea.vmem %s4734_s0, %s3361_s28  ;;  %v3409_v15 = vld [vmem:[%s4735_s1 + $0xd4] ss:$8 sps:$4 sm:$0xff]   ;;  %v3411_v16 = vld [vmem:[%s4735_s1 + $0xd0] ss:$8 sps:$4 sm:$0xff]   ;;  %v3412_v19 = vld [vmem:[%s4735_s1 + $0x44] ss:$8 sps:$4 sm:$0xff]  }
  0x11   : > { %477 = vmatprep.subr.bf16.mxu1 %v3403_v7  ;;  %v518_v11 = vld [vmem:[%s3884_s8] sm:$0x77]  ;;  %v3391_v13 = vld [vmem:[%s3884_s8] ss:$8 sps:$4 sm:$0x38]   ;;  %vm2604_vm1 = vcmask 1043456  }
  0x12   : > { %331 = vmatpush1.bf16.msra.mxu0 %v3402_v6  ;;  %v2912_v12 = vcombine.low %v518_v11, %v518_v11  ;;  %v3393_v14 = vld [vmem:[%s3884_s8 + $0x4] ss:$8 sps:$4 sm:$0x38]   ;;  %v2913_v17 = vcombine.high %v518_v11, %v518_v11  ;;  %v698_v18 = vrot.slane %v3391_v13, 3  ;;  %v3414_v21 = vld [vmem:[%s4735_s1 + $0x40] ss:$8 sps:$4 sm:$0xff]  }
  0x13   : > { %332 = vmatprep.subr.bf16.mxu0 %v3406_v9  ;;  %v699_v20 = vrot.slane %v3393_v14, 3  ;;  %v3415_v22 = vld [vmem:[%s4735_s1 + $0xc4] ss:$8 sps:$4 sm:$0xff]   ;;  %v3417_v23 = vld [vmem:[%s4735_s1 + $0xc0] ss:$8 sps:$4 sm:$0xff]   ;;  %s3359_s18 = sshll.u32 %s4743_s12, 2 }
  0x14   : > { %478 = vmatpush1.bf16.msra.mxu1 %v3405_v8  ;;  %541 = vrot.lane.b32.xlu0 %v2912_v12, %s3812_s21  ;;  %v3418_v24 = vld [vmem:[%s3884_s8 + $0xc] ss:$8 sps:$4 sm:$0x1c]   ;;  %v3420_v25 = vld [vmem:[%s3884_s8 + $0x8] ss:$8 sps:$4 sm:$0x1c]   ;;  %s220_s22 = scalar_lea.vmem %s4736_s2, %s3359_s18  ;;  %s229_s25 = scalar_lea.vmem %s4737_s3, %s3359_s18 }
  0x15   : > { %479 = vmatprep.subr.bf16.mxu1 %v3409_v15  ;;  %700 = vrot.lane.b32.xlu1 %v698_v18, %s3812_s21  ;;  %v3421_v26 = vld [vmem:[%s4735_s1 + $0x34] ss:$8 sps:$4 sm:$0xff]   ;;  %v1152_v27 = vrot.slane %v3418_v24, 2  ;;  %v3423_v28 = vld [vmem:[%s4735_s1 + $0x30] ss:$8 sps:$4 sm:$0xff]   ;;  %v1151_v29 = vrot.slane %v3420_v25, 2 }
  0x16   : > { %333 = vmatpush1.bf16.msra.mxu0 %v3408_v10  ;;  %v3424_v30 = vld [vmem:[%s4735_s1 + $0xb4] ss:$8 sps:$4 sm:$0xff]   ;;  %v3426_v31 = vld [vmem:[%s4735_s1 + $0xb0] ss:$8 sps:$4 sm:$0xff]   ;;  %v3429_v33 = vld [vmem:[%s4735_s1 + $0x24] ss:$8 sps:$4 sm:$0xff]  }
  0x17   : > { %334 = vmatprep.subr.bf16.mxu0 %v3412_v19  ;;  %v1282_v32 = vld [vmem:[%s3884_s8 + $0x10] sm:$0xee]  ;;  %v3431_v36 = vld [vmem:[%s4735_s1 + $0x20] ss:$8 sps:$4 sm:$0xff]   ;;  %v3432_v37 = vld [vmem:[%s4735_s1 + $0xa4] ss:$8 sps:$4 sm:$0xff]  }
  0x18   : > { %480 = vmatpush1.bf16.msra.mxu1 %v3411_v16  ;;  %543 = vrot.lane.b32.xlu0 %v2913_v17, %s3812_s21  ;;  %v3081_v34 = vcombine.high %v1282_v32, %v1282_v32  ;;  %v3080_v35 = vcombine.low %v1282_v32, %v1282_v32  ;;  %v3435_v40 = vld [vmem:[%s4735_s1 + $0x14] ss:$8 sps:$4 sm:$0xff]   ;;  %v3434_v41 = vld [vmem:[%s4735_s1 + $0xa0] ss:$8 sps:$4 sm:$0xff]   ;;  %v3437_v43 = vld [vmem:[%s4735_s1 + $0x10] ss:$8 sps:$4 sm:$0xff]  }
  0x19   : > { %481 = vmatprep.subr.bf16.mxu1 %v3415_v22  ;;  %702 = vrot.lane.b32.xlu1 %v699_v20, %s3812_s21  ;;  %v3438_v42 = vld [vmem:[%s4735_s1 + $0x94] ss:$8 sps:$4 sm:$0xff]   ;;  %v3441_v44 = vld [vmem:[%s4735_s1 + $0x4] ss:$8 sps:$4 sm:$0xff]   ;;  %v3440_v45 = vld [vmem:[%s4735_s1 + $0x90] ss:$8 sps:$4 sm:$0xff]  }
  0x1a   : > { %335 = vmatpush1.bf16.msra.mxu0 %v3414_v21  ;;  %v1306_v38 = vrot.slane %v3081_v34, 1  ;;  %v1305_v39 = vrot.slane %v3080_v35, 1  ;;  %v3444_v46 = vld [vmem:[%s4735_s1 + $0x84] ss:$8 sps:$4 sm:$0xff]   ;;  %v3443_v47 = vld [vmem:[%s4735_s1] ss:$8 sps:$4 sm:$0xff]  }
  0x1b   : > { %336 = vmatprep.subr.bf16.mxu0 %v3421_v26  ;;  %v3970_v48 = vld [vmem:[%s3884_s8] ss:$8 sps:$4 sm:$0x38]   ;;  %v3450_v49 = vld [vmem:[%s4735_s1 + $0x174] ss:$8 sps:$4 sm:$0xff]  }
  0x1c   : > { %482 = vmatpush1.bf16.msra.mxu1 %v3417_v23  ;;  %1153 = vrot.lane.b32.xlu0 %v1151_v29, %s3812_s21  ;;  %v3446_v50 = vld [vmem:[%s4735_s1 + $0x80] ss:$8 sps:$4 sm:$0xff]   ;;  %v3453_v51 = vld [vmem:[%s4735_s1 + $0x1f4] ss:$8 sps:$4 sm:$0xff]   ;;  %v3448_v53 = vld [vmem:[%s4735_s1 + $0x170] ss:$8 sps:$4 sm:$0xff]  }
  0x1d   : > { %483 = vmatprep.subr.bf16.mxu1 %v3424_v30  ;;  %1155 = vrot.lane.b32.xlu1 %v1152_v27, %s3812_s21  ;;  %v231_v52 = vld [vmem:[%s3884_s8] sm:$0x7]  ;;  %v393_v54 = vrot.slane %v3970_v48, 3  ;;  %v3456_v55 = vld [vmem:[%s4735_s1 + $0x164] ss:$8 sps:$4 sm:$0xff]  }
  0x1e   : > { %337 = vmatpush1.bf16.msra.mxu0 %v3423_v28  ;;  %v3451_v56 = vld [vmem:[%s4735_s1 + $0x1f0] ss:$8 sps:$4 sm:$0xff]   ;;  %v3459_v57 = vld [vmem:[%s4735_s1 + $0x1e4] ss:$8 sps:$4 sm:$0xff]   ;;  %v3454_v58 = vld [vmem:[%s4735_s1 + $0x160] ss:$8 sps:$4 sm:$0xff]  }
  0x1f   : > { %338 = vmatprep.subr.bf16.mxu0 %v3429_v33  ;;  %v3462_v59 = vld [vmem:[%s4735_s1 + $0x154] ss:$8 sps:$4 sm:$0xff]   ;;  %v3457_v60 = vld [vmem:[%s4735_s1 + $0x1e0] ss:$8 sps:$4 sm:$0xff]   ;;  %v3460_v62 = vld [vmem:[%s4735_s1 + $0x150] ss:$8 sps:$4 sm:$0xff]  }
  0x20   : > { %484 = vmatpush1.bf16.msra.mxu1 %v3426_v31  ;;  %1307 = vrot.lane.b32.xlu0 %v1305_v39, %s3812_s21  ;;  %v3465_v61 = vld [vmem:[%s4735_s1 + $0x1d4] ss:$8 sps:$4 sm:$0xff]   ;;  %v3468_v63 = vld [vmem:[%s4735_s1 + $0x144] ss:$8 sps:$4 sm:$0xff]   ;;  %v3463_v0 = vld [vmem:[%s4735_s1 + $0x1d0] ss:$8 sps:$4 sm:$0xff]  }
  0x21   : > { %485 = vmatprep.subr.bf16.mxu1 %v3432_v37  ;;  %1309 = vrot.lane.b32.xlu1 %v1306_v38, %s3812_s21  ;;  %v3471_v1 = vld [vmem:[%s4735_s1 + $0x1c4] ss:$8 sps:$4 sm:$0xff]   ;;  %v3466_v2 = vld [vmem:[%s4735_s1 + $0x140] ss:$8 sps:$4 sm:$0xff]   ;;  %v3474_v3 = vld [vmem:[%s4735_s1 + $0x134] ss:$8 sps:$4 sm:$0xff]  }
  0x22   : > { %339 = vmatpush1.bf16.msra.mxu0 %v3431_v36  ;;  %v3469_v5 = vld [vmem:[%s4735_s1 + $0x1c0] ss:$8 sps:$4 sm:$0xff]   ;;  %v3477_v6 = vld [vmem:[%s4735_s1 + $0x1b4] ss:$8 sps:$4 sm:$0xff]   ;;  %v3472_v7 = vld [vmem:[%s4735_s1 + $0x130] ss:$8 sps:$4 sm:$0xff]  }
  0x23   : > { %340 = vmatprep.subr.bf16.mxu0 %v3435_v40  ;;  %v3480_v8 = vld [vmem:[%s4735_s1 + $0x124] ss:$8 sps:$4 sm:$0xff]   ;;  %v3475_v9 = vld [vmem:[%s4735_s1 + $0x1b0] ss:$8 sps:$4 sm:$0xff]   ;;  %v3478_v11 = vld [vmem:[%s4735_s1 + $0x120] ss:$8 sps:$4 sm:$0xff]  }
  0x24   : > { %486 = vmatpush1.bf16.msra.mxu1 %v3434_v41  ;;  %v3483_v10 = vld [vmem:[%s4735_s1 + $0x1a4] ss:$8 sps:$4 sm:$0xff]   ;;  %v3486_v12 = vld [vmem:[%s4735_s1 + $0x114] ss:$8 sps:$4 sm:$0xff]   ;;  %v3481_v13 = vld [vmem:[%s4735_s1 + $0x1a0] ss:$8 sps:$4 sm:$0xff]  }
  0x25   : > { %487 = vmatprep.subr.bf16.mxu1 %v3438_v42  ;;  %v3489_v14 = vld [vmem:[%s4735_s1 + $0x194] ss:$8 sps:$4 sm:$0xff]   ;;  %v3484_v15 = vld [vmem:[%s4735_s1 + $0x110] ss:$8 sps:$4 sm:$0xff]   ;;  %v3492_v16 = vld [vmem:[%s4735_s1 + $0x104] ss:$8 sps:$4 sm:$0xff]  }
  0x26   : > { %341 = vmatpush1.bf16.msra.mxu0 %v3437_v43  ;;  %v3487_v17 = vld [vmem:[%s4735_s1 + $0x190] ss:$8 sps:$4 sm:$0xff]   ;;  %v3495_v18 = vld [vmem:[%s4735_s1 + $0x184] ss:$8 sps:$4 sm:$0xff]   ;;  %v3490_v19 = vld [vmem:[%s4735_s1 + $0x100] ss:$8 sps:$4 sm:$0xff]  }
  0x27   : > { %342 = vmatprep.subr.bf16.mxu0 %v3441_v44  ;;  %v3498_v20 = vld [vmem:[%s4735_s1 + $0x274] ss:$8 sps:$4 sm:$0xff]   ;;  %v3493_v21 = vld [vmem:[%s4735_s1 + $0x180] ss:$8 sps:$4 sm:$0xff]   ;;  %v3496_v25 = vld [vmem:[%s4735_s1 + $0x270] ss:$8 sps:$4 sm:$0xff]  }
  0x28   : > { %488 = vmatpush1.bf16.msra.mxu1 %v3440_v45  ;;  %v3501_v22 = vld [vmem:[%s4735_s1 + $0x2f4] ss:$8 sps:$4 sm:$0xff]   ;;  %v3504_v27 = vld [vmem:[%s4735_s1 + $0x264] ss:$8 sps:$4 sm:$0xff]   ;;  %v3499_v29 = vld [vmem:[%s4735_s1 + $0x2f0] ss:$8 sps:$4 sm:$0xff]  }
  0x29   : > { %489 = vmatprep.subr.bf16.mxu1 %v3444_v46  ;;  %v3507_v31 = vld [vmem:[%s4735_s1 + $0x2e4] ss:$8 sps:$4 sm:$0xff]   ;;  %v3502_v33 = vld [vmem:[%s4735_s1 + $0x260] ss:$8 sps:$4 sm:$0xff]   ;;  %v3510_v34 = vld [vmem:[%s4735_s1 + $0x254] ss:$8 sps:$4 sm:$0xff]  }
  0x2a   : > { %343 = vmatpush1.bf16.msra.mxu0 %v3443_v47  ;;  %v3505_v35 = vld [vmem:[%s4735_s1 + $0x2e0] ss:$8 sps:$4 sm:$0xff]   ;;  %v3513_v36 = vld [vmem:[%s4735_s1 + $0x2d4] ss:$8 sps:$4 sm:$0xff]   ;;  %v3508_v37 = vld [vmem:[%s4735_s1 + $0x250] ss:$8 sps:$4 sm:$0xff]  }
  0x2b   : > { %628 = vmatprep.subr.bf16.mxu0 %v3450_v49  ;;  %v3516_v38 = vld [vmem:[%s4735_s1 + $0x244] ss:$8 sps:$4 sm:$0xff]   ;;  %v3511_v39 = vld [vmem:[%s4735_s1 + $0x2d0] ss:$8 sps:$4 sm:$0xff]   ;;  %v3514_v41 = vld [vmem:[%s4735_s1 + $0x240] ss:$8 sps:$4 sm:$0xff]  }
  0x2c   : > { %490 = vmatpush1.bf16.msra.mxu1 %v3446_v50  ;;  %v3519_v40 = vld [vmem:[%s4735_s1 + $0x2c4] ss:$8 sps:$4 sm:$0xff]   ;;  %v3522_v42 = vld [vmem:[%s4735_s1 + $0x234] ss:$8 sps:$4 sm:$0xff]   ;;  %v3517_v43 = vld [vmem:[%s4735_s1 + $0x2c0] ss:$8 sps:$4 sm:$0xff]  }
  0x2d   : > { %361 = vmatmul.mubr.bf16.vlgmr.msra.gmra.mxu0 %v231_v52  ;;  %786 = vmatprep.subr.bf16.mxu1 %v3453_v51  ;;  %v3525_v44 = vld [vmem:[%s4735_s1 + $0x2b4] ss:$8 sps:$4 sm:$0xff]   ;;  %v3520_v45 = vld [vmem:[%s4735_s1 + $0x230] ss:$8 sps:$4 sm:$0xff]   ;;  %v3528_v46 = vld [vmem:[%s4735_s1 + $0x224] ss:$8 sps:$4 sm:$0xff]  }
  0x2e   : > { %629 = vmatpush1.bf16.msra.mxu0 %v3448_v53  ;;  %660 = vmatprep.mubr.bf16.mxu0 %v3811_v4  ;;  %v3523_v47 = vld [vmem:[%s4735_s1 + $0x2b0] ss:$8 sps:$4 sm:$0xff]   ;;  %v3531_v49 = vld [vmem:[%s4735_s1 + $0x2a4] ss:$8 sps:$4 sm:$0xff]   ;;  %v3526_v50 = vld [vmem:[%s4735_s1 + $0x220] ss:$8 sps:$4 sm:$0xff]  }
  0x2f   : > { %508 = vmatmul.mubr.bf16.vlgmr.msra.gmra.mxu1 %v393_v54  ;;  %630 = vmatprep.subr.bf16.mxu0 %v3456_v55  ;;  %v3534_v51 = vld [vmem:[%s4735_s1 + $0x214] ss:$8 sps:$4 sm:$0xff]   ;;  %v3529_v52 = vld [vmem:[%s4735_s1 + $0x2a0] ss:$8 sps:$4 sm:$0xff]   ;;  %v3532_v53 = vld [vmem:[%s4735_s1 + $0x210] ss:$8 sps:$4 sm:$0xff]  }
  0x30   : > { %787 = vmatpush1.bf16.msra.mxu1 %v3451_v56  ;;  %818 = vmatprep.mubr.bf16.mxu1 %v3811_v4  ;;  %v3537_v55 = vld [vmem:[%s4735_s1 + $0x294] ss:$8 sps:$4 sm:$0xff]   ;;  %v3535_v56 = vld [vmem:[%s4735_s1 + $0x290] ss:$8 sps:$4 sm:$0xff]  }
  0x31   : > { %788 = vmatprep.subr.bf16.mxu1 %v3459_v57  ;;  %v3540_v57 = vld [vmem:[%s4735_s1 + $0x204] ss:$8 sps:$4 sm:$0xff]   ;;  %v3659_v48 = vld [vmem:[%s4735_s1 + $0x5d4] ss:$8 sps:$4 sm:$0xff]  }
  0x32   : > { %631 = vmatpush1.bf16.msra.mxu0 %v3454_v58  ;;  %v3538_v58 = vld [vmem:[%s4735_s1 + $0x200] ss:$8 sps:$4 sm:$0xff]  }
  0x33   : > { %632 = vmatprep.subr.bf16.mxu0 %v3462_v59  ;;  %v3543_v59 = vld [vmem:[%s4735_s1 + $0x284] ss:$8 sps:$4 sm:$0xff]  }
  0x34   : > { %789 = vmatpush1.bf16.msra.mxu1 %v3457_v60  ;;  %v4181_v60 = vld [vmem:[%s3884_s8 + $0x8] ss:$8 sps:$4 sm:$0x1c]  }
  0x35   : > { %790 = vmatprep.subr.bf16.mxu1 %v3465_v61  ;;  %v3547_v61 = vld [vmem:[%s4735_s1 + $0x374] ss:$8 sps:$4 sm:$0xff]  }
  0x36   : > { %633 = vmatpush1.bf16.msra.mxu0 %v3460_v62  ;;  %v4187_v62 = vld [vmem:[%s3884_s8 + $0x10] ss:$0 sps:$4 sm:$0xee]  }
  0x37   : > { %634 = vmatprep.subr.bf16.mxu0 %v3468_v63  ;;  %v3541_v63 = vld [vmem:[%s4735_s1 + $0x280] ss:$8 sps:$4 sm:$0xff]  }
  0x38   : > { %791 = vmatpush1.bf16.msra.mxu1 %v3463_v0  ;;  %v3545_v0 = vld [vmem:[%s4735_s1 + $0x370] ss:$8 sps:$4 sm:$0xff]  }
  0x39   : > { %792 = vmatprep.subr.bf16.mxu1 %v3471_v1  ;;  %v853_v1 = vrot.slane %v4181_v60, 2  ;;  %v3752_v60 = vld [vmem:[%s4735_s1 + $0x754] ss:$8 sps:$4 sm:$0xff]  }
  0x3a   : > { %635 = vmatpush1.bf16.msra.mxu0 %v3466_v2  ;;  %v3551_v2 = vld [vmem:[%s4735_s1 + $0x3f4] ss:$8 sps:$4 sm:$0xff]  }
  0x3b   : > { %636 = vmatprep.subr.bf16.mxu0 %v3474_v3  ;;  %v3554_v3 = vld [vmem:[%s4735_s1 + $0x364] ss:$8 sps:$4 sm:$0xff]  }
  0x3c   : > { %793 = vmatpush1.bf16.msra.mxu1 %v3469_v5  ;;  %v999_v5 = vrot.slane %v4187_v62, 1  ;;  %v3750_v62 = vld [vmem:[%s4735_s1 + $0x750] ss:$8 sps:$4 sm:$0xff]  }
  0x3d   : > { %794 = vmatprep.subr.bf16.mxu1 %v3477_v6  ;;  %v3549_v6 = vld [vmem:[%s4735_s1 + $0x3f0] ss:$8 sps:$4 sm:$0xff]  }
  0x3e   : > { %637 = vmatpush1.bf16.msra.mxu0 %v3472_v7  ;;  %v3552_v7 = vld [vmem:[%s4735_s1 + $0x360] ss:$8 sps:$4 sm:$0xff]  }
  0x3f   : > { %638 = vmatprep.subr.bf16.mxu0 %v3480_v8  ;;  %v3557_v8 = vld [vmem:[%s4735_s1 + $0x3e4] ss:$8 sps:$4 sm:$0xff]  }
  0x40   : > { %795 = vmatpush1.bf16.msra.mxu1 %v3475_v9  ;;  %v3560_v9 = vld [vmem:[%s4735_s1 + $0x354] ss:$8 sps:$4 sm:$0xff]  }
  0x41   : > { %796 = vmatprep.subr.bf16.mxu1 %v3483_v10  ;;  %v3555_v10 = vld [vmem:[%s4735_s1 + $0x3e0] ss:$8 sps:$4 sm:$0xff]  }
  0x42   : > { %639 = vmatpush1.bf16.msra.mxu0 %v3478_v11  ;;  %v3558_v11 = vld [vmem:[%s4735_s1 + $0x350] ss:$8 sps:$4 sm:$0xff]  }
  0x43   : > { %640 = vmatprep.subr.bf16.mxu0 %v3486_v12  ;;  %v3563_v12 = vld [vmem:[%s4735_s1 + $0x3d4] ss:$8 sps:$4 sm:$0xff]  }
  0x44   : > { %797 = vmatpush1.bf16.msra.mxu1 %v3481_v13  ;;  %v3566_v13 = vld [vmem:[%s4735_s1 + $0x344] ss:$8 sps:$4 sm:$0xff]  }
  0x45   : > { %798 = vmatprep.subr.bf16.mxu1 %v3489_v14  ;;  %v3561_v14 = vld [vmem:[%s4735_s1 + $0x3d0] ss:$8 sps:$4 sm:$0xff]  }
  0x46   : > { %641 = vmatpush1.bf16.msra.mxu0 %v3484_v15  ;;  %v3569_v15 = vld [vmem:[%s4735_s1 + $0x3c4] ss:$8 sps:$4 sm:$0xff]  }
  0x47   : > { %642 = vmatprep.subr.bf16.mxu0 %v3492_v16  ;;  %v3564_v16 = vld [vmem:[%s4735_s1 + $0x340] ss:$8 sps:$4 sm:$0xff]  }
  0x48   : > { %799 = vmatpush1.bf16.msra.mxu1 %v3487_v17  ;;  %v3572_v17 = vld [vmem:[%s4735_s1 + $0x334] ss:$8 sps:$4 sm:$0xff]  }
  0x49   : > { %800 = vmatprep.subr.bf16.mxu1 %v3495_v18  ;;  %v3567_v18 = vld [vmem:[%s4735_s1 + $0x3c0] ss:$8 sps:$4 sm:$0xff]  }
  0x4a   : > { %643 = vmatpush1.bf16.msra.mxu0 %v3490_v19  ;;  %v3575_v19 = vld [vmem:[%s4735_s1 + $0x3b4] ss:$8 sps:$4 sm:$0xff]  }
  0x4b   : > { %935 = vmatprep.subr.bf16.mxu0 %v3498_v20  ;;  %v3570_v20 = vld [vmem:[%s4735_s1 + $0x330] ss:$8 sps:$4 sm:$0xff]  }
  0x4c   : > { %801 = vmatpush1.bf16.msra.mxu1 %v3493_v21  ;;  %v3578_v21 = vld [vmem:[%s4735_s1 + $0x324] ss:$8 sps:$4 sm:$0xff]  }
  0x4d   : > { %1081 = vmatprep.subr.bf16.mxu1 %v3501_v22  ;;  %v3573_v22 = vld [vmem:[%s4735_s1 + $0x3b0] ss:$8 sps:$4 sm:$0xff]  }
  0x86   : > { %v542_v23 = vpop.permute.xlu0 %541 }
  0x87   : > { %v701_v24 = vpop.permute.xlu1 %700 }
  0x8a   : > { %v544_v26 = vpop.permute.xlu0 %543 }
  0x8b   : > { %v4090_v28 = vsel %vm545_vm0, %v542_v23, %v544_v26  ;;  %v703_v30 = vpop.permute.xlu1 %702  ;;  %v3581_v23 = vld [vmem:[%s4735_s1 + $0x3a4] ss:$8 sps:$4 sm:$0xff]   ;;  %v3579_v26 = vld [vmem:[%s4735_s1 + $0x3a0] ss:$8 sps:$4 sm:$0xff]  }
  0x8c   : > { %661 = vmatmul.mubr.bf16.vlgmr.msra.gmra.mxu0 %v4090_v28  ;;  %v4100_v32 = vsel %vm545_vm0, %v701_v24, %v703_v30  ;;  %v3576_v24 = vld [vmem:[%s4735_s1 + $0x320] ss:$8 sps:$4 sm:$0xff]  }
  0x8d   : > { %936 = vmatpush1.bf16.msra.mxu0 %v3496_v25  ;;  %967 = vmatprep.mubr.bf16.mxu0 %v3811_v4  ;;  %v3584_v25 = vld [vmem:[%s4735_s1 + $0x314] ss:$8 sps:$4 sm:$0xff]  }
  0x8e   : > { %819 = vmatmul.mubr.bf16.vlgmr.msra.gmra.mxu1 %v4100_v32  ;;  %937 = vmatprep.subr.bf16.mxu0 %v3504_v27  ;;  %v3587_v27 = vld [vmem:[%s4735_s1 + $0x394] ss:$8 sps:$4 sm:$0xff]  }
  0x8f   : > { %1082 = vmatpush1.bf16.msra.mxu1 %v3499_v29  ;;  %1113 = vmatprep.mubr.bf16.mxu1 %v3811_v4  ;;  %v3582_v29 = vld [vmem:[%s4735_s1 + $0x310] ss:$8 sps:$4 sm:$0xff]   ;;  %v1156_v30 = vpop.permute.xlu1 %1155 }
  0x90   : > { %1083 = vmatprep.subr.bf16.mxu1 %v3507_v31  ;;  %v1154_v31 = vpop.permute.xlu0 %1153 }
  0x91   : > { %938 = vmatpush1.bf16.msra.mxu0 %v3502_v33  ;;  %v3590_v33 = vld [vmem:[%s4735_s1 + $0x304] ss:$8 sps:$4 sm:$0xff]  }
  0x92   : > { %939 = vmatprep.subr.bf16.mxu0 %v3510_v34  ;;  %v3585_v34 = vld [vmem:[%s4735_s1 + $0x390] ss:$8 sps:$4 sm:$0xff]  }
  0x93   : > { %1084 = vmatpush1.bf16.msra.mxu1 %v3505_v35  ;;  %v3593_v35 = vld [vmem:[%s4735_s1 + $0x384] ss:$8 sps:$4 sm:$0xff]  }
  0x94   : > { %1085 = vmatprep.subr.bf16.mxu1 %v3513_v36  ;;  %v3588_v36 = vld [vmem:[%s4735_s1 + $0x300] ss:$8 sps:$4 sm:$0xff]  }
  0x95   : > { %940 = vmatpush1.bf16.msra.mxu0 %v3508_v37  ;;  %v3596_v37 = vld [vmem:[%s4735_s1 + $0x474] ss:$8 sps:$4 sm:$0xff]  }
  0x96   : > { %941 = vmatprep.subr.bf16.mxu0 %v3516_v38  ;;  %v3591_v38 = vld [vmem:[%s4735_s1 + $0x380] ss:$8 sps:$4 sm:$0xff]  }
  0x97   : > { %1086 = vmatpush1.bf16.msra.mxu1 %v3511_v39  ;;  %v1310_v39 = vpop.permute.xlu1 %1309 }
  0x98   : > { %1087 = vmatprep.subr.bf16.mxu1 %v3519_v40  ;;  %v1308_v40 = vpop.permute.xlu0 %1307 }
  0x99   : > { %942 = vmatpush1.bf16.msra.mxu0 %v3514_v41  ;;  %v3599_v41 = vld [vmem:[%s4735_s1 + $0x4f4] ss:$8 sps:$4 sm:$0xff]  }
  0x9a   : > { %943 = vmatprep.subr.bf16.mxu0 %v3522_v42  ;;  %v4300_v42 = vsel %vm545_vm0, %v1154_v31, %v1156_v30  ;;  %v3651_v30 = vld [vmem:[%s4735_s1 + $0x5e0] ss:$8 sps:$4 sm:$0xff]  }
  0x9b   : > { %1088 = vmatpush1.bf16.msra.mxu1 %v3517_v43  ;;  %v3594_v43 = vld [vmem:[%s4735_s1 + $0x470] ss:$8 sps:$4 sm:$0xff]  }
  0x9c   : > { %1089 = vmatprep.subr.bf16.mxu1 %v3525_v44  ;;  %v3602_v44 = vld [vmem:[%s4735_s1 + $0x464] ss:$8 sps:$4 sm:$0xff]  }
  0x9d   : > { %944 = vmatpush1.bf16.msra.mxu0 %v3520_v45  ;;  %v4309_v45 = vsel %vm545_vm0, %v1308_v40, %v1310_v39  ;;  %v3657_v39 = vld [vmem:[%s4735_s1 + $0x5d0] ss:$8 sps:$4 sm:$0xff]   ;;  %v3665_v40 = vld [vmem:[%s4735_s1 + $0x5c4] ss:$8 sps:$4 sm:$0xff]  }
  0x9e   : > { %945 = vmatprep.subr.bf16.mxu0 %v3528_v46  ;;  %v3597_v46 = vld [vmem:[%s4735_s1 + $0x4f0] ss:$8 sps:$4 sm:$0xff]  }
  0x9f   : > { %1090 = vmatpush1.bf16.msra.mxu1 %v3523_v47  ;;  %v3605_v47 = vld [vmem:[%s4735_s1 + $0x4e4] ss:$8 sps:$4 sm:$0xff]  }
  0xa0   : > { %1091 = vmatprep.subr.bf16.mxu1 %v3531_v49  ;;  %v3600_v49 = vld [vmem:[%s4735_s1 + $0x460] ss:$8 sps:$4 sm:$0xff]  }
  0xa1   : > { %946 = vmatpush1.bf16.msra.mxu0 %v3526_v50  ;;  %v3608_v50 = vld [vmem:[%s4735_s1 + $0x454] ss:$8 sps:$4 sm:$0xff]  }
  0xa2   : > { %947 = vmatprep.subr.bf16.mxu0 %v3534_v51  ;;  %v3603_v51 = vld [vmem:[%s4735_s1 + $0x4e0] ss:$8 sps:$4 sm:$0xff]  }
  0xa3   : > { %1092 = vmatpush1.bf16.msra.mxu1 %v3529_v52  ;;  %v3611_v52 = vld [vmem:[%s4735_s1 + $0x4d4] ss:$8 sps:$4 sm:$0xff]  }
  0xa4   : > { %1093 = vmatprep.subr.bf16.mxu1 %v3537_v55  ;;  %v3614_v55 = vld [vmem:[%s4735_s1 + $0x444] ss:$8 sps:$4 sm:$0xff]  }
  0xa5   : > { %948 = vmatpush1.bf16.msra.mxu0 %v3532_v53  ;;  %v3606_v53 = vld [vmem:[%s4735_s1 + $0x450] ss:$8 sps:$4 sm:$0xff]  }
  0xa6   : > { %949 = vmatprep.subr.bf16.mxu0 %v3540_v57  ;;  %v3617_v57 = vld [vmem:[%s4735_s1 + $0x4c4] ss:$8 sps:$4 sm:$0xff]  }
  0xa7   : > { %1094 = vmatpush1.bf16.msra.mxu1 %v3535_v56  ;;  %v3609_v56 = vld [vmem:[%s4735_s1 + $0x4d0] ss:$8 sps:$4 sm:$0xff]  }
  0xa8   : > { %1095 = vmatprep.subr.bf16.mxu1 %v3543_v59  ;;  %v3620_v59 = vld [vmem:[%s4735_s1 + $0x434] ss:$8 sps:$4 sm:$0xff]  }
  0xa9   : > { %950 = vmatpush1.bf16.msra.mxu0 %v3538_v58  ;;  %v3612_v58 = vld [vmem:[%s4735_s1 + $0x440] ss:$8 sps:$4 sm:$0xff]  }
  0xaa   : > { %1239 = vmatprep.subr.bf16.mxu0 %v3547_v61  ;;  %v3615_v61 = vld [vmem:[%s4735_s1 + $0x4c0] ss:$8 sps:$4 sm:$0xff]  }
  0xab   : > { %1096 = vmatpush1.bf16.msra.mxu1 %v3541_v63  ;;  %v3623_v63 = vld [vmem:[%s4735_s1 + $0x4b4] ss:$8 sps:$4 sm:$0xff]  }
  0xac   : > { %968 = vmatmul.mubr.bf16.vlgmr.msra.gmra.mxu0 %v853_v1  ;;  %1393 = vmatprep.subr.bf16.mxu1 %v3551_v2  ;;  %v3626_v2 = vld [vmem:[%s4735_s1 + $0x424] ss:$8 sps:$4 sm:$0xff]  }
  0xad   : > { %1240 = vmatpush1.bf16.msra.mxu0 %v3545_v0  ;;  %1271 = vmatprep.mubr.bf16.mxu0 %v3811_v4  ;;  %v3618_v0 = vld [vmem:[%s4735_s1 + $0x430] ss:$8 sps:$4 sm:$0xff]  }
  0xae   : > { %1114 = vmatmul.mubr.bf16.vlgmr.msra.gmra.mxu1 %v999_v5  ;;  %1241 = vmatprep.subr.bf16.mxu0 %v3554_v3  ;;  %v3621_v3 = vld [vmem:[%s4735_s1 + $0x4b0] ss:$8 sps:$4 sm:$0xff]  }
  0xaf   : > { %1394 = vmatpush1.bf16.msra.mxu1 %v3549_v6  ;;  %1425 = vmatprep.mubr.bf16.mxu1 %v3811_v4  ;;  %v3629_v6 = vld [vmem:[%s4735_s1 + $0x4a4] ss:$8 sps:$4 sm:$0xff]  }
  0xb0   : > { %1395 = vmatprep.subr.bf16.mxu1 %v3557_v8  ;;  %v3632_v8 = vld [vmem:[%s4735_s1 + $0x414] ss:$8 sps:$4 sm:$0xff]  }
  0xb1   : > { %1242 = vmatpush1.bf16.msra.mxu0 %v3552_v7  ;;  %v3624_v7 = vld [vmem:[%s4735_s1 + $0x420] ss:$8 sps:$4 sm:$0xff]  }
  0xb2   : > { %1243 = vmatprep.subr.bf16.mxu0 %v3560_v9  ;;  %v3627_v9 = vld [vmem:[%s4735_s1 + $0x4a0] ss:$8 sps:$4 sm:$0xff]  }
  0xb3   : > { %1396 = vmatpush1.bf16.msra.mxu1 %v3555_v10  ;;  %v3635_v10 = vld [vmem:[%s4735_s1 + $0x494] ss:$8 sps:$4 sm:$0xff]  }
  0xb4   : > { %1397 = vmatprep.subr.bf16.mxu1 %v3563_v12  ;;  %v3638_v12 = vld [vmem:[%s4735_s1 + $0x404] ss:$8 sps:$4 sm:$0xff]  }
  0xb5   : > { %1244 = vmatpush1.bf16.msra.mxu0 %v3558_v11  ;;  %v3630_v11 = vld [vmem:[%s4735_s1 + $0x410] ss:$8 sps:$4 sm:$0xff]  }
  0xb6   : > { %1245 = vmatprep.subr.bf16.mxu0 %v3566_v13  ;;  %v3633_v13 = vld [vmem:[%s4735_s1 + $0x490] ss:$8 sps:$4 sm:$0xff]  }
  0xb7   : > { %1398 = vmatpush1.bf16.msra.mxu1 %v3561_v14  ;;  %v3641_v14 = vld [vmem:[%s4735_s1 + $0x484] ss:$8 sps:$4 sm:$0xff]  }
  0xb8   : > { %1399 = vmatprep.subr.bf16.mxu1 %v3569_v15  ;;  %v3636_v15 = vld [vmem:[%s4735_s1 + $0x400] ss:$8 sps:$4 sm:$0xff]  }
  0xb9   : > { %1246 = vmatpush1.bf16.msra.mxu0 %v3564_v16  ;;  %v3644_v16 = vld [vmem:[%s4735_s1 + $0x574] ss:$8 sps:$4 sm:$0xff]  }
  0xba   : > { %1247 = vmatprep.subr.bf16.mxu0 %v3572_v17  ;;  %v3639_v17 = vld [vmem:[%s4735_s1 + $0x480] ss:$8 sps:$4 sm:$0xff]  }
  0xbb   : > { %1400 = vmatpush1.bf16.msra.mxu1 %v3567_v18  ;;  %v3647_v18 = vld [vmem:[%s4735_s1 + $0x5f4] ss:$8 sps:$4 sm:$0xff]  }
  0xbc   : > { %1401 = vmatprep.subr.bf16.mxu1 %v3575_v19  ;;  %v3642_v19 = vld [vmem:[%s4735_s1 + $0x570] ss:$8 sps:$4 sm:$0xff]  }
  0xbd   : > { %1248 = vmatpush1.bf16.msra.mxu0 %v3570_v20  ;;  %v3650_v20 = vld [vmem:[%s4735_s1 + $0x564] ss:$8 sps:$4 sm:$0xff]  }
  0xbe   : > { %1249 = vmatprep.subr.bf16.mxu0 %v3578_v21  ;;  %v3645_v21 = vld [vmem:[%s4735_s1 + $0x5f0] ss:$8 sps:$4 sm:$0xff]  }
  0xbf   : > { %1402 = vmatpush1.bf16.msra.mxu1 %v3573_v22  ;;  %v3786_v22 = vld [vmem:[%s3884_s8] sm:$0x7] }
  0xc0   : > { %1403 = vmatprep.subr.bf16.mxu1 %v3581_v23  ;;  %v3653_v23 = vld [vmem:[%s4735_s1 + $0x5e4] ss:$8 sps:$4 sm:$0xff]  }
  0xc1   : > { %1250 = vmatpush1.bf16.msra.mxu0 %v3576_v24 }
  0xc2   : > { %1251 = vmatprep.subr.bf16.mxu0 %v3584_v25  ;;  %v3648_v25 = vld [vmem:[%s4735_s1 + $0x560] ss:$8 sps:$4 sm:$0xff]  }
  0xc3   : > { %1404 = vmatpush1.bf16.msra.mxu1 %v3579_v26  ;;  %v3656_v26 = vld [vmem:[%s4735_s1 + $0x554] ss:$8 sps:$4 sm:$0xff]  }
  0xc4   : > { %1405 = vmatprep.subr.bf16.mxu1 %v3587_v27 }
  0xc5   : > { %1252 = vmatpush1.bf16.msra.mxu0 %v3582_v29 }
  0xc6   : > { %1253 = vmatprep.subr.bf16.mxu0 %v3590_v33 }
  0xc7   : > { %1406 = vmatpush1.bf16.msra.mxu1 %v3585_v34  ;;  %v3654_v34 = vld [vmem:[%s4735_s1 + $0x550] ss:$8 sps:$4 sm:$0xff]  }
  0xc8   : > { %1407 = vmatprep.subr.bf16.mxu1 %v3593_v35 }
  0xc9   : > { %1254 = vmatpush1.bf16.msra.mxu0 %v3588_v36  ;;  %v3662_v36 = vld [vmem:[%s4735_s1 + $0x544] ss:$8 sps:$4 sm:$0xff]  }
  0xca   : > { %1533 = vmatprep.subr.bf16.mxu0 %v3596_v37 }
  0xcb   : > { %1408 = vmatpush1.bf16.msra.mxu1 %v3591_v38 }
  0xcc   : > { %1272 = vmatmul.mubr.bf16.vlgmr.msra.gmra.mxu0 %v4300_v42  ;;  %1679 = vmatprep.subr.bf16.mxu1 %v3599_v41 }
  0xcd   : > { %1534 = vmatpush1.bf16.msra.mxu0 %v3594_v43  ;;  %1565 = vmatprep.mubr.bf16.mxu0 %v3811_v4  ;;  %v3660_v43 = vld [vmem:[%s4735_s1 + $0x540] ss:$8 sps:$4 sm:$0xff]  }
  0xce   : > { %1426 = vmatmul.mubr.bf16.vlgmr.msra.gmra.mxu1 %v4309_v45  ;;  %1535 = vmatprep.subr.bf16.mxu0 %v3602_v44  ;;  %v3668_v44 = vld [vmem:[%s4735_s1 + $0x534] ss:$8 sps:$4 sm:$0xff]  }
  0xcf   : > { %1680 = vmatpush1.bf16.msra.mxu1 %v3597_v46  ;;  %1711 = vmatprep.mubr.bf16.mxu1 %v3811_v4  ;;  %v3663_v46 = vld [vmem:[%s4735_s1 + $0x5c0] ss:$8 sps:$4 sm:$0xff]  }
  0xd0   : > { %1681 = vmatprep.subr.bf16.mxu1 %v3605_v47  ;;  %v3671_v47 = vld [vmem:[%s4735_s1 + $0x5b4] ss:$8 sps:$4 sm:$0xff]  }
  0xd1   : > { %1536 = vmatpush1.bf16.msra.mxu0 %v3600_v49  ;;  %v3666_v49 = vld [vmem:[%s4735_s1 + $0x530] ss:$8 sps:$4 sm:$0xff]  }
  0xd2   : > { %1537 = vmatprep.subr.bf16.mxu0 %v3608_v50  ;;  %v3674_v50 = vld [vmem:[%s4735_s1 + $0x524] ss:$8 sps:$4 sm:$0xff]  }
  0xd3   : > { %1682 = vmatpush1.bf16.msra.mxu1 %v3603_v51  ;;  %v3669_v51 = vld [vmem:[%s4735_s1 + $0x5b0] ss:$8 sps:$4 sm:$0xff]  }
  0xd4   : > { %1683 = vmatprep.subr.bf16.mxu1 %v3611_v52  ;;  %v3677_v52 = vld [vmem:[%s4735_s1 + $0x5a4] ss:$8 sps:$4 sm:$0xff]  }
  0xd5   : > { %1538 = vmatpush1.bf16.msra.mxu0 %v3606_v53  ;;  %v3672_v53 = vld [vmem:[%s4735_s1 + $0x520] ss:$8 sps:$4 sm:$0xff]  }
  0xd6   : > { %1539 = vmatprep.subr.bf16.mxu0 %v3614_v55  ;;  %v3680_v55 = vld [vmem:[%s4735_s1 + $0x514] ss:$8 sps:$4 sm:$0xff]  }
  0xd7   : > { %1684 = vmatpush1.bf16.msra.mxu1 %v3609_v56  ;;  %v3675_v56 = vld [vmem:[%s4735_s1 + $0x5a0] ss:$8 sps:$4 sm:$0xff]  }
  0xd8   : > { %1685 = vmatprep.subr.bf16.mxu1 %v3617_v57  ;;  %v3683_v57 = vld [vmem:[%s4735_s1 + $0x594] ss:$8 sps:$4 sm:$0xff]  }
  0xd9   : > { %1540 = vmatpush1.bf16.msra.mxu0 %v3612_v58  ;;  %v3678_v58 = vld [vmem:[%s4735_s1 + $0x510] ss:$8 sps:$4 sm:$0xff]  }
  0xda   : > { %1541 = vmatprep.subr.bf16.mxu0 %v3620_v59  ;;  %v3686_v59 = vld [vmem:[%s4735_s1 + $0x504] ss:$8 sps:$4 sm:$0xff]  }
  0xdb   : > { %1686 = vmatpush1.bf16.msra.mxu1 %v3615_v61  ;;  %v3681_v61 = vld [vmem:[%s4735_s1 + $0x590] ss:$8 sps:$4 sm:$0xff]  }
  0xdc   : > { %1687 = vmatprep.subr.bf16.mxu1 %v3623_v63  ;;  %v3689_v63 = vld [vmem:[%s4735_s1 + $0x584] ss:$8 sps:$4 sm:$0xff]  }
  0xdd   : > { %1542 = vmatpush1.bf16.msra.mxu0 %v3618_v0  ;;  %v3684_v0 = vld [vmem:[%s4735_s1 + $0x500] ss:$8 sps:$4 sm:$0xff]  }
  0xde   : > { %1543 = vmatprep.subr.bf16.mxu0 %v3626_v2  ;;  %v3692_v2 = vld [vmem:[%s4735_s1 + $0x674] ss:$8 sps:$4 sm:$0xff]  }
  0xdf   : > { %1688 = vmatpush1.bf16.msra.mxu1 %v3621_v3  ;;  %v3687_v3 = vld [vmem:[%s4735_s1 + $0x580] ss:$8 sps:$4 sm:$0xff]  }
  0xe0   : > { %1689 = vmatprep.subr.bf16.mxu1 %v3629_v6  ;;  %v3695_v6 = vld [vmem:[%s4735_s1 + $0x6f4] ss:$8 sps:$4 sm:$0xff]  }
  0xe1   : > { %1544 = vmatpush1.bf16.msra.mxu0 %v3624_v7  ;;  %v3690_v7 = vld [vmem:[%s4735_s1 + $0x670] ss:$8 sps:$4 sm:$0xff]  }
  0xe2   : > { %1545 = vmatprep.subr.bf16.mxu0 %v3632_v8  ;;  %v3698_v8 = vld [vmem:[%s4735_s1 + $0x664] ss:$8 sps:$4 sm:$0xff]  }
  0xe3   : > { %1690 = vmatpush1.bf16.msra.mxu1 %v3627_v9  ;;  %v3693_v9 = vld [vmem:[%s4735_s1 + $0x6f0] ss:$8 sps:$4 sm:$0xff]  }
  0xe4   : > { %1691 = vmatprep.subr.bf16.mxu1 %v3635_v10  ;;  %v3701_v10 = vld [vmem:[%s4735_s1 + $0x6e4] ss:$8 sps:$4 sm:$0xff]  }
  0xe5   : > { %1546 = vmatpush1.bf16.msra.mxu0 %v3630_v11  ;;  %v3696_v11 = vld [vmem:[%s4735_s1 + $0x660] ss:$8 sps:$4 sm:$0xff]  }
  0xe6   : > { %1547 = vmatprep.subr.bf16.mxu0 %v3638_v12  ;;  %v3704_v12 = vld [vmem:[%s4735_s1 + $0x654] ss:$8 sps:$4 sm:$0xff]  }
  0xe7   : > { %1692 = vmatpush1.bf16.msra.mxu1 %v3633_v13  ;;  %v3707_v13 = vld [vmem:[%s4735_s1 + $0x6d4] ss:$8 sps:$4 sm:$0xff]  }
  0xe8   : > { %1693 = vmatprep.subr.bf16.mxu1 %v3641_v14  ;;  %v3710_v14 = vld [vmem:[%s4735_s1 + $0x644] ss:$8 sps:$4 sm:$0xff]  }
  0xe9   : > { %1548 = vmatpush1.bf16.msra.mxu0 %v3636_v15  ;;  %v3705_v15 = vld [vmem:[%s4735_s1 + $0x6d0] ss:$8 sps:$4 sm:$0xff]  }
  0xea   : > { %1825 = vmatprep.subr.bf16.mxu0 %v3644_v16  ;;  %v3713_v16 = vld [vmem:[%s4735_s1 + $0x6c4] ss:$8 sps:$4 sm:$0xff]  }
  0xeb   : > { %1694 = vmatpush1.bf16.msra.mxu1 %v3639_v17  ;;  %v3708_v17 = vld [vmem:[%s4735_s1 + $0x640] ss:$8 sps:$4 sm:$0xff]  }
  0xec   : > { %1566 = vmatmul.mubr.bf16.vlgmr.msra.gmra.mxu0 %v3786_v22  ;;  %1971 = vmatprep.subr.bf16.mxu1 %v3647_v18  ;;  %v3716_v18 = vld [vmem:[%s4735_s1 + $0x634] ss:$8 sps:$4 sm:$0xff]   ;;  %v3722_v22 = vld [vmem:[%s4735_s1 + $0x624] ss:$8 sps:$4 sm:$0xff]  }
  0xed   : > { %v362_v24 = vpop.f32.mrf.mxu0  ;;  %1826 = vmatpush1.bf16.msra.mxu0 %v3642_v19  ;;  %1857 = vmatprep.mubr.bf16.mxu0 %v3811_v4  ;;  %v3711_v19 = vld [vmem:[%s4735_s1 + $0x6c0] ss:$8 sps:$4 sm:$0xff]  }
  0xee   : > { %1712 = vmatmul.mubr.bf16.vlgmr.msra.gmra.mxu1 %v393_v54  ;;  %1827 = vmatprep.subr.bf16.mxu0 %v3650_v20  ;;  %v3719_v20 = vld [vmem:[%s4735_s1 + $0x6b4] ss:$8 sps:$4 sm:$0xff]  }
  0xef   : > { %v364_v27 = vpop.f32.mrf.mxu0  ;;  %v509_v29 = vpop.f32.mrf.mxu1  ;;  %1972 = vmatpush1.bf16.msra.mxu1 %v3645_v21  ;;  %2003 = vmatprep.mubr.bf16.mxu1 %v3811_v4  ;;  %v3714_v21 = vld [vmem:[%s4735_s1 + $0x630] ss:$8 sps:$4 sm:$0xff]  }
  0xf0   : > { %v4431_v31 = vadd.f32 %v509_v29, %v362_v24  ;;  %1973 = vmatprep.subr.bf16.mxu1 %v3653_v23  ;;  %v3717_v23 = vld [vmem:[%s4735_s1 + $0x6b0] ss:$8 sps:$4 sm:$0xff]   ;;  %v3725_v24 = vld [vmem:[%s4735_s1 + $0x6a4] ss:$8 sps:$4 sm:$0xff]   ;;  %v3731_v29 = vld [vmem:[%s4735_s1 + $0x694] ss:$8 sps:$4 sm:$0xff]  }
  0xf1   : > { %v366_v54 = vpop.f32.mrf.mxu0  ;;  %v511_v33 = vpop.f32.mrf.mxu1  ;;  %1828 = vmatpush1.bf16.msra.mxu0 %v3648_v25  ;;  %v3720_v25 = vld [vmem:[%s4735_s1 + $0x620] ss:$8 sps:$4 sm:$0xff]  }
  0xf2   : > { %v4439_v35 = vadd.f32 %v511_v33, %v364_v27  ;;  %1829 = vmatprep.subr.bf16.mxu0 %v3656_v26  ;;  %v3728_v26 = vld [vmem:[%s4735_s1 + $0x614] ss:$8 sps:$4 sm:$0xff]   ;;  %v3723_v27 = vld [vmem:[%s4735_s1 + $0x6a0] ss:$8 sps:$4 sm:$0xff]   ;;  %v3729_v54 = vld [vmem:[%s4735_s1 + $0x690] ss:$8 sps:$4 sm:$0xff]  }
  0xf3   : > { %v367_v37 = vpop.f32.mrf.mxu0  ;;  %v513_v38 = vpop.f32.mrf.mxu1  ;;  %1974 = vmatpush1.bf16.msra.mxu1 %v3651_v30  ;;  %v3726_v30 = vld [vmem:[%s4735_s1 + $0x610] ss:$8 sps:$4 sm:$0xff]   ;;  %v3737_v33 = vld [vmem:[%s4735_s1 + $0x684] ss:$8 sps:$4 sm:$0xff]  }
  0xf4   : > { %1975 = vmatprep.subr.bf16.mxu1 %v3659_v48  ;;  %v3734_v48 = vld [vmem:[%s4735_s1 + $0x604] ss:$8 sps:$4 sm:$0xff]   ;;  %v3735_v37 = vld [vmem:[%s4735_s1 + $0x680] ss:$8 sps:$4 sm:$0xff]   ;;  %v3743_v38 = vld [vmem:[%s4735_s1 + $0x7f4] ss:$8 sps:$4 sm:$0xff]  }
  0xf5   : > { %v514_v41 = vpop.f32.mrf.mxu1  ;;  %1830 = vmatpush1.bf16.msra.mxu0 %v3654_v34  ;;  %v3732_v34 = vld [vmem:[%s4735_s1 + $0x600] ss:$8 sps:$4 sm:$0xff]  }
  0xf6   : > { %1831 = vmatprep.subr.bf16.mxu0 %v3662_v36  ;;  %v3740_v36 = vld [vmem:[%s4735_s1 + $0x774] ss:$8 sps:$4 sm:$0xff]   ;;  %v3741_v41 = vld [vmem:[%s4735_s1 + $0x7f0] ss:$8 sps:$4 sm:$0xff]  }
  0xf7   : > { %1976 = vmatpush1.bf16.msra.mxu1 %v3657_v39  ;;  %v3738_v39 = vld [vmem:[%s4735_s1 + $0x770] ss:$8 sps:$4 sm:$0xff]  }
  0xf8   : > { %1977 = vmatprep.subr.bf16.mxu1 %v3665_v40  ;;  %v3746_v40 = vld [vmem:[%s4735_s1 + $0x764] ss:$8 sps:$4 sm:$0xff]  }
  0xf9   : > { %1832 = vmatpush1.bf16.msra.mxu0 %v3660_v43  ;;  %v3749_v43 = vld [vmem:[%s4735_s1 + $0x7e4] ss:$8 sps:$4 sm:$0xff]  }
  0xfa   : > { %1833 = vmatprep.subr.bf16.mxu0 %v3668_v44  ;;  %v3744_v44 = vld [vmem:[%s4735_s1 + $0x760] ss:$8 sps:$4 sm:$0xff]  }
  0xfb   : > { %1978 = vmatpush1.bf16.msra.mxu1 %v3663_v46  ;;  %v3755_v46 = vld [vmem:[%s4735_s1 + $0x7d4] ss:$8 sps:$4 sm:$0xff]  }
  0xfc   : > { %1979 = vmatprep.subr.bf16.mxu1 %v3671_v47  ;;  %v3761_v47 = vld [vmem:[%s4735_s1 + $0x7c4] ss:$8 sps:$4 sm:$0xff]  }
  0xfd   : > { %1834 = vmatpush1.bf16.msra.mxu0 %v3666_v49  ;;  %v3756_v49 = vld [vmem:[%s4735_s1 + $0x740] ss:$8 sps:$4 sm:$0xff]  }
  0xfe   : > { %1835 = vmatprep.subr.bf16.mxu0 %v3674_v50  ;;  %v3764_v50 = vld [vmem:[%s4735_s1 + $0x734] ss:$8 sps:$4 sm:$0xff]  }
  0xff   : > { %1980 = vmatpush1.bf16.msra.mxu1 %v3669_v51  ;;  %v3759_v51 = vld [vmem:[%s4735_s1 + $0x7c0] ss:$8 sps:$4 sm:$0xff]  }
 0x100   : > { %1981 = vmatprep.subr.bf16.mxu1 %v3677_v52  ;;  %v3767_v52 = vld [vmem:[%s4735_s1 + $0x7b4] ss:$8 sps:$4 sm:$0xff]  }
 0x101   : > { %1836 = vmatpush1.bf16.msra.mxu0 %v3672_v53  ;;  %v3762_v53 = vld [vmem:[%s4735_s1 + $0x730] ss:$8 sps:$4 sm:$0xff]  }
 0x102   : > { %1837 = vmatprep.subr.bf16.mxu0 %v3680_v55  ;;  %v3770_v55 = vld [vmem:[%s4735_s1 + $0x724] ss:$8 sps:$4 sm:$0xff]  }
 0x103   : > { %1982 = vmatpush1.bf16.msra.mxu1 %v3675_v56  ;;  %v3765_v56 = vld [vmem:[%s4735_s1 + $0x7b0] ss:$8 sps:$4 sm:$0xff]  }
 0x104   : > { %1983 = vmatprep.subr.bf16.mxu1 %v3683_v57  ;;  %v3773_v57 = vld [vmem:[%s4735_s1 + $0x7a4] ss:$8 sps:$4 sm:$0xff]  }
 0x105   : > { %1838 = vmatpush1.bf16.msra.mxu0 %v3678_v58  ;;  %v3768_v58 = vld [vmem:[%s4735_s1 + $0x720] ss:$8 sps:$4 sm:$0xff]  }
 0x106   : > { %1839 = vmatprep.subr.bf16.mxu0 %v3686_v59  ;;  %v3776_v59 = vld [vmem:[%s4735_s1 + $0x714] ss:$8 sps:$4 sm:$0xff]  }
 0x107   : > { %1984 = vmatpush1.bf16.msra.mxu1 %v3681_v61  ;;  %v3771_v61 = vld [vmem:[%s4735_s1 + $0x7a0] ss:$8 sps:$4 sm:$0xff]  }
 0x108   : > { %1985 = vmatprep.subr.bf16.mxu1 %v3689_v63  ;;  %v3779_v63 = vld [vmem:[%s4735_s1 + $0x794] ss:$8 sps:$4 sm:$0xff]  }
 0x109   : > { %1840 = vmatpush1.bf16.msra.mxu0 %v3684_v0  ;;  %v3774_v0 = vld [vmem:[%s4735_s1 + $0x710] ss:$8 sps:$4 sm:$0xff]  }
 0x10a   : > { %2117 = vmatprep.subr.bf16.mxu0 %v3692_v2  ;;  %v3782_v2 = vld [vmem:[%s4735_s1 + $0x704] ss:$8 sps:$4 sm:$0xff]  }
 0x10b   : > { %1986 = vmatpush1.bf16.msra.mxu1 %v3687_v3  ;;  %v3777_v3 = vld [vmem:[%s4735_s1 + $0x790] ss:$8 sps:$4 sm:$0xff]  }
 0x10c   : > { %1858 = vmatmul.mubr.bf16.vlgmr.msra.gmra.mxu0 %v4090_v28  ;;  %2263 = vmatprep.subr.bf16.mxu1 %v3695_v6  ;;  %v3699_v28 = vld [vmem:[%s4735_s1 + $0x6e0] ss:$8 sps:$4 sm:$0xff]   ;;  %v3785_v6 = vld [vmem:[%s4735_s1 + $0x784] ss:$8 sps:$4 sm:$0xff]  }
 0x10d   : > { %2118 = vmatpush1.bf16.msra.mxu0 %v3690_v7  ;;  %2149 = vmatprep.mubr.bf16.mxu0 %v3811_v4  ;;  %v3780_v7 = vld [vmem:[%s4735_s1 + $0x700] ss:$8 sps:$4 sm:$0xff]  }
 0x10e   : > { %2004 = vmatmul.mubr.bf16.vlgmr.msra.gmra.mxu1 %v4100_v32  ;;  %2119 = vmatprep.subr.bf16.mxu0 %v3698_v8  ;;  %v3702_v32 = vld [vmem:[%s4735_s1 + $0x650] ss:$8 sps:$4 sm:$0xff]   ;;  %v3783_v8 = vld [vmem:[%s4735_s1 + $0x780] ss:$8 sps:$4 sm:$0xff]  }
 0x10f   : > { %2264 = vmatpush1.bf16.msra.mxu1 %v3693_v9  ;;  %2295 = vmatprep.mubr.bf16.mxu1 %v3811_v4 }
 0x110   : > { %2265 = vmatprep.subr.bf16.mxu1 %v3701_v10 }
 0x111   : > { %2120 = vmatpush1.bf16.msra.mxu0 %v3696_v11 }
 0x112   : > { %2121 = vmatprep.subr.bf16.mxu0 %v3704_v12 }
 0x113   : > { %2266 = vmatpush1.bf16.msra.mxu1 %v3699_v28 }
 0x114   : > { %2267 = vmatprep.subr.bf16.mxu1 %v3707_v13 }
 0x115   : > { %2122 = vmatpush1.bf16.msra.mxu0 %v3702_v32 }
 0x116   : > { %2123 = vmatprep.subr.bf16.mxu0 %v3710_v14 }
 0x117   : > { %2268 = vmatpush1.bf16.msra.mxu1 %v3705_v15 }
 0x118   : > { %2269 = vmatprep.subr.bf16.mxu1 %v3713_v16 }
 0x119   : > { %2124 = vmatpush1.bf16.msra.mxu0 %v3708_v17 }
 0x11a   : > { %2125 = vmatprep.subr.bf16.mxu0 %v3716_v18 }
 0x11b   : > { %2270 = vmatpush1.bf16.msra.mxu1 %v3711_v19 }
 0x11c   : > { %2271 = vmatprep.subr.bf16.mxu1 %v3719_v20 }
 0x11d   : > { %2126 = vmatpush1.bf16.msra.mxu0 %v3714_v21 }
 0x11e   : > { %2127 = vmatprep.subr.bf16.mxu0 %v3722_v22 }
 0x11f   : > { %2272 = vmatpush1.bf16.msra.mxu1 %v3717_v23 }
 0x120   : > { %2273 = vmatprep.subr.bf16.mxu1 %v3725_v24 }
 0x121   : > { %2128 = vmatpush1.bf16.msra.mxu0 %v3720_v25 }
 0x122   : > { %2129 = vmatprep.subr.bf16.mxu0 %v3728_v26 }
 0x123   : > { %2274 = vmatpush1.bf16.msra.mxu1 %v3723_v27 }
 0x124   : > { %2275 = vmatprep.subr.bf16.mxu1 %v3731_v29 }
 0x125   : > { %2130 = vmatpush1.bf16.msra.mxu0 %v3726_v30 }
 0x126   : > { %2131 = vmatprep.subr.bf16.mxu0 %v3734_v48 }
 0x127   : > { %2276 = vmatpush1.bf16.msra.mxu1 %v3729_v54 }
 0x128   : > { %2277 = vmatprep.subr.bf16.mxu1 %v3737_v33 }
 0x129   : > { %2132 = vmatpush1.bf16.msra.mxu0 %v3732_v34 }
 0x12a   : > { %2409 = vmatprep.subr.bf16.mxu0 %v3740_v36 }
 0x12b   : > { %2278 = vmatpush1.bf16.msra.mxu1 %v3735_v37 }
 0x12c   : > { %2150 = vmatmul.mubr.bf16.vlgmr.msra.gmra.mxu0 %v853_v1  ;;  %2555 = vmatprep.subr.bf16.mxu1 %v3743_v38  ;;  %v3747_v1 = vld [vmem:[%s4735_s1 + $0x7e0] ss:$8 sps:$4 sm:$0xff]  }
 0x12d   : > { %2410 = vmatpush1.bf16.msra.mxu0 %v3738_v39  ;;  %2441 = vmatprep.mubr.bf16.mxu0 %v3811_v4 }
 0x12e   : > { %2296 = vmatmul.mubr.bf16.vlgmr.msra.gmra.mxu1 %v999_v5  ;;  %2411 = vmatprep.subr.bf16.mxu0 %v3746_v40  ;;  %v3758_v5 = vld [vmem:[%s4735_s1 + $0x744] ss:$8 sps:$4 sm:$0xff]  }
 0x12f   : > { %2556 = vmatpush1.bf16.msra.mxu1 %v3741_v41  ;;  %2587 = vmatprep.mubr.bf16.mxu1 %v3811_v4  ;;  %v3753_v4 = vld [vmem:[%s4735_s1 + $0x7d0] ss:$8 sps:$4 sm:$0xff]  }
 0x130   : > { %2557 = vmatprep.subr.bf16.mxu1 %v3749_v43 }
 0x131   : > { %2412 = vmatpush1.bf16.msra.mxu0 %v3744_v44 }
 0x132   : > { %2413 = vmatprep.subr.bf16.mxu0 %v3752_v60 }
 0x133   : > { %2558 = vmatpush1.bf16.msra.mxu1 %v3747_v1 }
 0x134   : > { %2559 = vmatprep.subr.bf16.mxu1 %v3755_v46 }
 0x135   : > { %2414 = vmatpush1.bf16.msra.mxu0 %v3750_v62 }
 0x136   : > { %2415 = vmatprep.subr.bf16.mxu0 %v3758_v5 }
 0x137   : > { %2560 = vmatpush1.bf16.msra.mxu1 %v3753_v4 }
 0x138   : > { %2561 = vmatprep.subr.bf16.mxu1 %v3761_v47 }
 0x139   : > { %2416 = vmatpush1.bf16.msra.mxu0 %v3756_v49 }
 0x13a   : > { %2417 = vmatprep.subr.bf16.mxu0 %v3764_v50 }
 0x13b   : > { %2562 = vmatpush1.bf16.msra.mxu1 %v3759_v51 }
 0x13c   : > { %2563 = vmatprep.subr.bf16.mxu1 %v3767_v52 }
 0x13d   : > { %2418 = vmatpush1.bf16.msra.mxu0 %v3762_v53 }
 0x13e   : > { %2419 = vmatprep.subr.bf16.mxu0 %v3770_v55 }
 0x13f   : > { %2564 = vmatpush1.bf16.msra.mxu1 %v3765_v56 }
 0x140   : > { %2565 = vmatprep.subr.bf16.mxu1 %v3773_v57 }
 0x141   : > { %2420 = vmatpush1.bf16.msra.mxu0 %v3768_v58 }
 0x142   : > { %2421 = vmatprep.subr.bf16.mxu0 %v3776_v59 }
 0x143   : > { %2566 = vmatpush1.bf16.msra.mxu1 %v3771_v61 }
 0x144   : > { %2567 = vmatprep.subr.bf16.mxu1 %v3779_v63 }
 0x145   : > { %2422 = vmatpush1.bf16.msra.mxu0 %v3774_v0 }
 0x146   : > { %2423 = vmatprep.subr.bf16.mxu0 %v3782_v2 }
 0x147   : > { %2568 = vmatpush1.bf16.msra.mxu1 %v3777_v3 }
 0x148   : > { %2569 = vmatprep.subr.bf16.mxu1 %v3785_v6 }
 0x149   : > { %2424 = vmatpush1.bf16.msra.mxu0 %v3780_v7 }
 0x14b   : > { %2570 = vmatpush1.bf16.msra.mxu1 %v3783_v8 }
 0x14c   : > { %2442 = vmatmul.mubr.bf16.vlgmr.msra.gmra.mxu0 %v4300_v42  ;;  %v662_v9 = vpop.f32.mrf.mxu0 }
 0x14d   : > { %v669_v10 = vadd.f32 %v662_v9, %v4431_v31 }
 0x14e   : > { %2588 = vmatmul.mubr.bf16.vlgmr.msra.gmra.mxu1 %v4309_v45  ;;  %v664_v11 = vpop.f32.mrf.mxu0  ;;  %v820_v12 = vpop.f32.mrf.mxu1 }
 0x14f   : > { %v670_v28 = vadd.f32 %v664_v11, %v4439_v35  ;;  %v827_v13 = vadd.f32 %v820_v12, %v669_v10 }
 0x150   : > { %v666_v32 = vpop.f32.mrf.mxu0  ;;  %v822_v14 = vpop.f32.mrf.mxu1 }
 0x151   : > { %v828_v15 = vadd.f32 %v822_v14, %v670_v28 }
 0x152   : > { %v667_v16 = vpop.f32.mrf.mxu0  ;;  %v824_v17 = vpop.f32.mrf.mxu1 }
 0x154   : > { %v825_v18 = vpop.f32.mrf.mxu1 }
 0x16c   : > { %v969_v19 = vpop.f32.mrf.mxu0 }
 0x16d   : > { %v976_v20 = vadd.f32 %v969_v19, %v827_v13 }
 0x16e   : > { %v971_v21 = vpop.f32.mrf.mxu0  ;;  %v1115_v42 = vpop.f32.mrf.mxu1 }
 0x16f   : > { %v977_v22 = vadd.f32 %v971_v21, %v828_v15  ;;  %v1122_v23 = vadd.f32 %v1115_v42, %v976_v20 }
 0x170   : > { %v973_v31 = vpop.f32.mrf.mxu0  ;;  %v1117_v24 = vpop.f32.mrf.mxu1 }
 0x171   : > { %v1123_v45 = vadd.f32 %v1117_v24, %v977_v22 }
 0x172   : > { %v974_v25 = vpop.f32.mrf.mxu0  ;;  %v1119_v26 = vpop.f32.mrf.mxu1 }
 0x174   : > { %v1120_v27 = vpop.f32.mrf.mxu1 }
 0x18c   : > { %v1273_v35 = vpop.f32.mrf.mxu0 }
 0x18d   : > { %v1280_v29 = vadd.f32 %v1273_v35, %v1122_v23 }
 0x18e   : > { %v1275_v30 = vpop.f32.mrf.mxu0  ;;  %v1427_v48 = vpop.f32.mrf.mxu1 }
 0x18f   : > { %v1281_v54 = vadd.f32 %v1275_v30, %v1123_v45  ;;  %v1434_v33 = vadd.f32 %v1427_v48, %v1280_v29 }
 0x190   : > { %v1277_v34 = vpop.f32.mrf.mxu0  ;;  %v1429_v36 = vpop.f32.mrf.mxu1 }
 0x191   : > { %v1435_v37 = vadd.f32 %v1429_v36, %v1281_v54 }
 0x192   : > { %v1278_v38 = vpop.f32.mrf.mxu0  ;;  %v1431_v39 = vpop.f32.mrf.mxu1 }
 0x194   : > { %v1432_v40 = vpop.f32.mrf.mxu1 }
 0x1ac   : > { %v1567_v41 = vpop.f32.mrf.mxu0 }
 0x1ad   : > { %v1576_v43 = vrot.slane %v1567_v41, 1 }
 0x1ae   : > { %v1569_v44 = vpop.f32.mrf.mxu0  ;;  %v1713_v60 = vpop.f32.mrf.mxu1 }
 0x1af   : > { %v1580_v1 = vadd.f32 %v1576_v43, %v1434_v33  ;;  %v1577_v46 = vrot.slane %v1569_v44, 1  ;;  %v1722_v62 = vrot.slane %v1713_v60, 1 }
 0x1b0   : > { %v1571_v5 = vpop.f32.mrf.mxu0  ;;  %v1715_v4 = vpop.f32.mrf.mxu1 }
 0x1b1   : > { %v1581_v47 = vadd.f32 %v1577_v46, %v1435_v37  ;;  %v1726_v49 = vadd.f32 %v1722_v62, %v1580_v1  ;;  %v1723_v50 = vrot.slane %v1715_v4, 1 }
 0x1b2   : > { %v1572_v51 = vpop.f32.mrf.mxu0  ;;  %v1717_v52 = vpop.f32.mrf.mxu1 }
 0x1b3   : > { %v1727_v53 = vadd.f32 %v1723_v50, %v1581_v47  ;;  %v2625_v51 = vlaneseq }
 0x1b4   : > { %v1718_v55 = vpop.f32.mrf.mxu1 }
 0x1b5   : > { %vm2639_vm2 = vcmp.lt.s32.totalorder %v2625_v51, 256 }
 0x1cc   : > { %v1859_v56 = vpop.f32.mrf.mxu0 }
 0x1cd   : > { %v1868_v28 = vrot.slane %v1859_v56, 1 }
 0x1ce   : > { %v1861_v57 = vpop.f32.mrf.mxu0  ;;  %v2005_v58 = vpop.f32.mrf.mxu1 }
 0x1cf   : > { %v1869_v13 = vrot.slane %v1861_v57, 1  ;;  %v1872_v32 = vadd.f32 %v1868_v28, %v1726_v49  ;;  %v2014_v14 = vrot.slane %v2005_v58, 1  ;;  %v3813_v49 = vmov 1966171168  }
 0x1d0   : > { %v1863_v59 = vpop.f32.mrf.mxu0  ;;  %v2007_v61 = vpop.f32.mrf.mxu1  ;;  %v2623_v50 = vunpack.c.l.s4 %v3813_v49 }
 0x1d1   : > { %v1873_v15 = vadd.f32 %v1869_v13, %v1727_v53  ;;  %v2015_v16 = vrot.slane %v2007_v61, 1  ;;  %v2018_v18 = vadd.f32 %v2014_v14, %v1872_v32 }
 0x1d2   : > { %v1864_v63 = vpop.f32.mrf.mxu0  ;;  %v2009_v0 = vpop.f32.mrf.mxu1 }
 0x1d3   : > { %v2019_v20 = vadd.f32 %v2015_v16, %v1873_v15  ;;  %v2624_v0 = vunpack.c.0.s8 %v2623_v50 }
 0x1d4   : > { %v2010_v2 = vpop.f32.mrf.mxu1 }
 0x1d5   : > { %v2626_v2 = vshrl.u32 %v2625_v51, 7 }
 0x1d7   : > { %v2627_v13 = vsub.s32 %v2624_v0, %v2626_v2 }
 0x1ec   : > { %v2151_v3 = vpop.f32.mrf.mxu0 }
 0x1ed   : > { %v2160_v17 = vrot.slane %v2151_v3, 1 }
 0x1ee   : > { %v2153_v6 = vpop.f32.mrf.mxu0  ;;  %v2297_v7 = vpop.f32.mrf.mxu1 }
 0x1ef   : > { %v2161_v19 = vrot.slane %v2153_v6, 1  ;;  %v2164_v21 = vadd.f32 %v2160_v17, %v2018_v18  ;;  %v2306_v42 = vrot.slane %v2297_v7, 1 }
 0x1f0   : > { %v2155_v8 = vpop.f32.mrf.mxu0  ;;  %v2299_v9 = vpop.f32.mrf.mxu1 }
 0x1f1   : > { %v2165_v22 = vadd.f32 %v2161_v19, %v2019_v20  ;;  %v2307_v23 = vrot.slane %v2299_v9, 1  ;;  %v2310_v24 = vadd.f32 %v2306_v42, %v2164_v21 }
 0x1f2   : > { %v2156_v10 = vpop.f32.mrf.mxu0  ;;  %v2301_v11 = vpop.f32.mrf.mxu1 }
 0x1f3   : > { %v2311_v27 = vadd.f32 %v2307_v23, %v2165_v22 }
 0x1f4   : > { %v2302_v12 = vpop.f32.mrf.mxu1 }
 0x20c   : > { %v2443_v31 = vpop.f32.mrf.mxu0 }
 0x20d   : > { %v2452_v45 = vrot.slane %v2443_v31, 1 }
 0x20e   : > { %v2445_v25 = vpop.f32.mrf.mxu0  ;;  %v2589_v26 = vpop.f32.mrf.mxu1 }
 0x20f   : > { %v2456_v35 = vadd.f32 %v2452_v45, %v2310_v24  ;;  %v2453_v29 = vrot.slane %v2445_v25, 1  ;;  %v2598_v30 = vrot.slane %v2589_v26, 1 }
 0x210   : > { %v2447_v48 = vpop.f32.mrf.mxu0  ;;  %v2591_v54 = vpop.f32.mrf.mxu1 }
 0x211   : > { %v2457_v33 = vadd.f32 %v2453_v29, %v2311_v27  ;;  %v2602_v34 = vadd.f32 %v2598_v30, %v2456_v35  ;;  %v2599_v36 = vrot.slane %v2591_v54, 1 }
 0x212   : > { %v2448_v37 = vpop.f32.mrf.mxu0  ;;  %v2593_v38 = vpop.f32.mrf.mxu1 }
 0x213   : > { %v2605_v39 = vsel %vm2604_vm1, %v2602_v34, 0.0  ;;  %v2642_v40 = vmul.f32 %v2602_v34, %v2602_v34  ;;  %v2603_v41 = vadd.f32 %v2599_v36, %v2457_v33 }
 0x214   : > { %v2606_v43 = vrot.slane %v2605_v39, 4  ;;  %v2594_v44 = vpop.f32.mrf.mxu1 }
 0x215   : > { %v2644_v60 = vsel %vm2604_vm1, %v2642_v40, 0.0  ;;  %v2612_v1 = vsel %vm2604_vm1, %v2603_v41, 0.0  ;;  %v2643_v46 = vmul.f32 %v2603_v41, %v2603_v41  ;;  %v3355_v62 = vpack.c.bf16 %v2603_v41, %v2602_v34 }
 0x216   : > { %v2607_v5 = vadd.f32 %v2606_v43, %v2605_v39  ;;  %v2645_v4 = vrot.slane %v2644_v60, 4  ;;  %v2613_v47 = vrot.slane %v2612_v1, 4 }
 0x217   : > { %v2651_v52 = vsel %vm2604_vm1, %v2643_v46, 0.0  ;;  %3356 = vst.sshfl [vmem:[%s220_s22] sm:$0x33 pattern:$0x76325410] %v3355_v62 }
 0x218   : > { %v2608_v53 = vrot.slane %v2607_v5, 2  ;;  %v2646_v55 = vadd.f32 %v2645_v4, %v2644_v60  ;;  %v2614_v56 = vadd.f32 %v2613_v47, %v2612_v1  ;;  %v2652_v57 = vrot.slane %v2651_v52, 4 }
 0x21a   : > { %v2609_v58 = vadd.f32 %v2608_v53, %v2607_v5  ;;  %v2647_v59 = vrot.slane %v2646_v55, 2  ;;  %v2615_v61 = vrot.slane %v2614_v56, 2  ;;  %v2653_v63 = vadd.f32 %v2652_v57, %v2651_v52 }
 0x21c   : > { %v2610_v3 = vrot.slane %v2609_v58, 1  ;;  %v2648_v6 = vadd.f32 %v2647_v59, %v2646_v55  ;;  %v2616_v7 = vadd.f32 %v2615_v61, %v2614_v56  ;;  %v2654_v8 = vrot.slane %v2653_v63, 2 }
 0x21e   : > { %v2649_v9 = vrot.slane %v2648_v6, 1  ;;  %v2617_v10 = vrot.slane %v2616_v7, 1  ;;  %v2655_v11 = vadd.f32 %v2654_v8, %v2653_v63  ;;  %v2611_v12 = vadd.f32 %v2610_v3, %v2609_v58 }
 0x220   : > { %v2618_v28 = vadd.f32 %v2617_v10, %v2616_v7  ;;  %v2656_v32 = vrot.slane %v2655_v11, 1  ;;  %v2650_v14 = vadd.f32 %v2649_v9, %v2648_v6 }
 0x222   : > { %v2621_v15 = vcombine.low %v2611_v12, %v2618_v28  ;;  %v2657_v16 = vadd.f32 %v2656_v32, %v2655_v11 }
 0x224   : > { %v2628_v17 = vrot.slane %v2621_v15, %v2627_v13  ;;  %v2660_v18 = vcombine.low %v2650_v14, %v2657_v16 }
 0x226   : > { %v2635_v19 = vrot.slane %v2628_v17, %v2627_v13  ;;  %v2667_v20 = vrot.slane %v2660_v18, %v2627_v13 }
 0x228   : > { %2641 = vst.msk [vmem:[%s229_s25] ss:$2 sm:$0x3] %vm2639_vm2, %v2635_v19  ;;  %v2674_v21 = vrot.slane %v2667_v20, %v2627_v13 }
 0x22a   : > { %3354 = vst.msk [vmem:[%s229_s25 + $0x1] ss:$2 sm:$0x3] %vm2639_vm2, %v2674_v21 }
 0x22b PF: > { %s14_s14 = sadd.s32 1, %s3809_s14   ;;  %s4738_s12 = smov %s3805_s13 }
 0x22c   : > { %p11_p5 = scmp.ge.s32.totalorder %s14_s14, 4   ;;  %s4739_s13 = smov %s4741_s15 }
 0x22e   :  { %13 = sbr.rel (!%p11_p5) target bundleno = 2 (0x2), region = 86 }

</bundles_post_ra>
